<compile_context>
chip_gen: v7x
topology: tpu7x:2x2x1
jax: 0.10.0
libtpu: 0.0.40
codegen_flags: <defaults>
</compile_context>

<pallas_src>
import math
import functools

import numpy as np
import jax
import jax.numpy as jnp
from jax.experimental import pallas as pl
from jax.experimental.pallas import tpu as pltpu


_LANES = 128  # lane width of the packed parameter slab


# ----------------------------- Fused forward kernel ------------------------------

def _forward_kernel(x_ref, slab_ref, o_ref, *, layout, num_heads, use_sab,
                    n_inds, n_out, d_h, d_out, block_info, res_on, scale):
    """Entire ApproximaNetRes forward in one kernel. All activations stay in
    vregs/VMEM; the only stores are the final (B, 1) sigmoid output."""

    def tensor(name):
        off, r, c = layout[name]          # static python ints -> static slice load
        return slab_ref[off:off + r, :c]

    def linear(x2d, name):
        w = tensor(name + "/w")           # (din, dout)
        b = tensor(name + "/b")           # (1, dout)
        return jnp.dot(x2d, w, preferred_element_type=jnp.float32) + b

    dV = d_h
    dh = dV // num_heads
    # Per-head lane masks, computed once (trace-time constants, VPU-only use).
    lane = jax.lax.broadcasted_iota(jnp.int32, (1, 1, dV), 2)
    head_masks = [((lane >= h * dh) & (lane < (h + 1) * dh)).astype(jnp.float32)
                  for h in range(num_heads)]

    def mab(Q, K, prefix):
        # Multihead Attention Block (Lee et al., ln=False), fully in-register.
        Bq, Nq, dq = Q.shape
        Bk, Nk, dk = K.shape
        assert Bq == Bk or Bq == 1, "MAB expects Q batch of 1 (broadcast) or == K batch"
        Qp = linear(Q.reshape(Bq * Nq, dq), prefix + "/fc_q").reshape(Bq, Nq, dV)
        if Bq == 1 and Bk > 1:            # inducing points / PMA seeds: broadcast in-kernel
            Qp = jnp.broadcast_to(Qp, (Bk, Nq, dV))
        K2 = K.reshape(Bk * Nk, dk)
        Kp = linear(K2, prefix + "/fc_k").reshape(Bk, Nk, dV)
        Vp = linear(K2, prefix + "/fc_v").reshape(Bk, Nk, dV)

        # Per-head attention via lane masks: no lane slices, no concat, no transpose.
        attn = jnp.zeros((Bk, Nq, dV), jnp.float32)
        for m in head_masks:
            s = jnp.einsum('bqd,bkd->bqk', Qp * m, Kp,
                           preferred_element_type=jnp.float32) * scale
            smax = jnp.max(s, axis=-1, keepdims=True)
            p = jnp.exp(s - smax)
            a = p / jnp.sum(p, axis=-1, keepdims=True)      # exact divide
            attn = attn + jnp.einsum('bqk,bkd->bqd', a, Vp * m,
                                     preferred_element_type=jnp.float32)
        O = Qp + attn                                        # per-head Q residual
        Oo = linear(O.reshape(Bk * Nq, dV), prefix + "/fc_o")
        return O + jnp.maximum(Oo, 0.0).reshape(Bk, Nq, dV)  # O + relu(fc_o(O))

    x = x_ref[...]
    B = x.shape[0]

    def sab_block(X, name):
        return mab(X, X, name + "/mab")

    def isab_block(X, name):
        I = tensor(name + "/I").reshape(1, n_inds, d_h)
        Hm = mab(I, X, name + "/mab0")
        return mab(X, Hm, name + "/mab1")

    # TODO(synk): SetTransformer internals were not provided with the module;
    # this follows the canonical Lee et al. architecture: enc = 2x (I)SAB,
    # dec = PMA + Linear(dim_hidden, dim_output), no LayerNorm, no dropout.
    blk = sab_block if use_sab else isab_block
    h = blk(x, "enc0")
    h = blk(h, "enc1")
    S = tensor("pma/S").reshape(1, n_out, d_h)
    h = mab(S, h, "pma/mab")                                 # (B, n_out, d_h)
    h = linear(h.reshape(B * n_out, d_h), "dec_fc")          # (B*n_out, d_out)
    out = h.reshape(B, n_out * d_out)                        # torch.flatten(1, 2)

    # Decoder MLP: Linear/ReLU pairs, optional residuals, inter-block
    # down-projections, aggregation Linear + Sigmoid (mirrors the torch loop).
    former = out
    li = 0
    n_blocks = len(block_info)
    for bi, (n_layers, _dim) in enumerate(block_info):
        for i in range(n_layers * 2):
            if res_on and i % 4 == 0:
                former = out
            if res_on and i % 4 == 3:
                out = out + former
            if i % 2 == 0:                 # Linear(dim, dim)
                out = linear(out, "dec%d" % li)
                li += 1
            else:                          # ReLU
                out = jnp.maximum(out, 0.0)
        if bi < n_blocks - 1:              # inter-block Linear(dim, dim // 2)
            out = linear(out, "dec%d" % li)
            li += 1
    out = linear(out, "agg")
    o_ref[...] = jax.nn.sigmoid(out).astype(o_ref.dtype)


def approximanet_res_forward(slab, x, *, layout, num_heads, use_sab, n_inds,
                             n_out, d_h, d_out, block_info, res_on):
    B = x.shape[0]
    kern = functools.partial(
        _forward_kernel, layout=layout, num_heads=num_heads, use_sab=use_sab,
        n_inds=n_inds, n_out=n_out, d_h=d_h, d_out=d_out,
        block_info=tuple(block_info), res_on=bool(res_on),
        scale=1.0 / math.sqrt(d_h))
    out = pl.pallas_call(
        kern,
        out_shape=jax.ShapeDtypeStruct((B, 1), jnp.float32),
        in_specs=[pl.BlockSpec(memory_space=pltpu.MemorySpace.VMEM),
                  pl.BlockSpec(memory_space=pltpu.MemorySpace.VMEM)],
        out_specs=pl.BlockSpec(memory_space=pltpu.MemorySpace.VMEM),
    )(x, slab)
    # torch.squeeze: for batch==1 this becomes a 0-d scalar, same as torch
    return jnp.squeeze(out)


# --------------------------- Parameter construction / packing -------------------------

def _init_linear(key, din, dout):
    kw, kb = jax.random.split(key)
    bound = 1.0 / math.sqrt(din)
    return (jax.random.uniform(kw, (din, dout), jnp.float32, -bound, bound),
            jax.random.uniform(kb, (1, dout), jnp.float32, -bound, bound))


def _xavier(key, shape):
    fan_in, fan_out = shape[-2], shape[-1]
    bound = math.sqrt(6.0 / (fan_in + fan_out))
    return jax.random.uniform(key, shape, jnp.float32, -bound, bound)


def _pack_slab(tensors):
    """Pack all 2-D parameter tensors into one (R, 128) f32 slab with 8-aligned
    row offsets. Returns (slab, layout) with layout[name] = (row_off, rows, cols)."""
    layout = {}
    off = 0
    for name, t in tensors.items():
        r, c = t.shape
        assert c <= _LANES, f"{name}: width {c} exceeds {_LANES} lanes"
        layout[name] = (off, r, c)
        off += ((r + 7) // 8) * 8
    total = max(((off + 7) // 8) * 8, 8)
    slab = np.zeros((total, _LANES), np.float32)
    for name, t in tensors.items():
        o, r, c = layout[name]
        slab[o:o + r, :c] = np.asarray(t)
    return jnp.asarray(slab), layout


def init_model(key, cfg):
    d_in, d_h = cfg["transInputDim"], cfg["hiddenDim"]
    d_out, n_out = cfg["transOutputDim"], cfg["transOutputNum"]
    n_inds, use_sab = cfg["ISABInds"], cfg["useSAB"]

    tensors = {}
    keys = iter(jax.random.split(key, 128))

    def add_linear(name, din, dout):
        w, b = _init_linear(next(keys), din, dout)
        tensors[name + "/w"] = w
        tensors[name + "/b"] = b

    def add_mab(prefix, dq, dk, dv):
        add_linear(prefix + "/fc_q", dq, dv)
        add_linear(prefix + "/fc_k", dk, dv)
        add_linear(prefix + "/fc_v", dk, dv)
        add_linear(prefix + "/fc_o", dv, dv)

    def add_block(name, din, dout):
        if use_sab:
            add_mab(name + "/mab", din, din, dout)
        else:
            tensors[name + "/I"] = _xavier(next(keys), (n_inds, dout))
            add_mab(name + "/mab0", dout, din, dout)
            add_mab(name + "/mab1", din, dout, dout)

    add_block("enc0", d_in, d_h)
    add_block("enc1", d_h, d_h)
    tensors["pma/S"] = _xavier(next(keys), (n_out, d_h))
    add_mab("pma/mab", d_h, d_h, d_h)
    add_linear("dec_fc", d_h, d_out)

    full_dim = d_out * n_out
    block_info = [(cfg["fullForwardLayers"], full_dim),
                  (cfg["halfForwardLayers"], full_dim // 2),
                  (cfg["quarterForwardLayers"], full_dim // 4),
                  (cfg["eightForwardLayers"], full_dim // 8)]

    # TODO(synk): getTransformLayer / getActivationLayer were not provided; with
    # batchNorm=False and dropOut=0.0 they are assumed to be Linear(d, d) and ReLU.
    dec_dims = []
    for (n_layers, dim) in block_info:
        for _ in range(n_layers):
            dec_dims.append((dim, dim))
        dec_dims.append((dim, dim // 2))
    dec_dims.pop(-1)
    for i, (di, do) in enumerate(dec_dims):
        add_linear("dec%d" % i, di, do)
    add_linear("agg", full_dim // 8, 1)

    slab, layout = _pack_slab(tensors)
    return slab, layout, block_info


# ----------------------------------- Main ------------------------------------

if __name__ == "__main__":
    cfg = dict(transInputDim=16, transNHead=4, hiddenDim=32, transOutputDim=32,
               transOutputNum=1, useSAB=False, ISABInds=8,
               fullForwardLayers=2, halfForwardLayers=2, quarterForwardLayers=2,
               eightForwardLayers=2, resOn=False, batchNorm=False, dropOut=0.0)

    key = jax.random.PRNGKey(0)
    pkey, xkey = jax.random.split(key)
    slab, layout, block_info = init_model(pkey, cfg)

    batch, set_size = 2, 8
    x = jax.random.normal(xkey, (batch, set_size, cfg["transInputDim"]), jnp.float32)

    # Replicate the (precedence-faithful) resOn sanity check from __init__.
    full_dim = cfg["transOutputDim"] * cfg["transOutputNum"]
    res_on = cfg["resOn"]
    if (res_on and cfg["fullForwardLayers"] % 2 != 0) or (full_dim // 2) % 2 != 0 \
            or (full_dim // 4) % 2 != 0 or (full_dim // 8) % 2 != 0:
        res_on = False

    fwd = jax.jit(functools.partial(
        approximanet_res_forward,
        layout=layout,
        num_heads=cfg["transNHead"],
        use_sab=cfg["useSAB"],
        n_inds=cfg["ISABInds"],
        n_out=cfg["transOutputNum"],
        d_h=cfg["hiddenDim"],
        d_out=cfg["transOutputDim"],
        block_info=tuple(block_info),
        res_on=res_on))

    out = fwd(slab, x)
    out = jax.block_until_ready(out)
    assert out.shape == (batch,), out.shape
    assert bool(jnp.all(jnp.isfinite(out)))
    print("KERNEL_OK")
</pallas_src>

<mosaic_0001>
module attributes {stable_mosaic.version = 11 : i64} {
  func.func @_forward_kernel(%arg0: memref<2x8x16xf32, #tpu.memory_space<vmem>>, %arg1: memref<1104x128xf32, #tpu.memory_space<vmem>>, %arg2: memref<2x1xf32, #tpu.memory_space<vmem>>) attributes {dimension_semantics = [], scalar_prefetch = 0 : i64, scratch_operands = 0 : i64, tpu.core_type = #tpu.core_type<tc>} {
    %0 = tpu.iota {dimensions = array<i32: 2>} : vector<1x1x32xi32>
    %c0_i32 = arith.constant 0 : i32
    %1 = vector.broadcast %c0_i32 : i32 to vector<1x1x32xi32>
    %2 = arith.cmpi sge, %0, %1 : vector<1x1x32xi32>
    %c8_i32 = arith.constant 8 : i32
    %3 = vector.broadcast %c8_i32 : i32 to vector<1x1x32xi32>
    %4 = arith.cmpi slt, %0, %3 : vector<1x1x32xi32>
    %5 = arith.andi %2, %4 : vector<1x1x32xi1>
    %6 = arith.extui %5 : vector<1x1x32xi1> to vector<1x1x32xi32>
    %7 = arith.sitofp %6 : vector<1x1x32xi32> to vector<1x1x32xf32>
    %c8_i32_0 = arith.constant 8 : i32
    %8 = vector.broadcast %c8_i32_0 : i32 to vector<1x1x32xi32>
    %9 = arith.cmpi sge, %0, %8 : vector<1x1x32xi32>
    %c16_i32 = arith.constant 16 : i32
    %10 = vector.broadcast %c16_i32 : i32 to vector<1x1x32xi32>
    %11 = arith.cmpi slt, %0, %10 : vector<1x1x32xi32>
    %12 = arith.andi %9, %11 : vector<1x1x32xi1>
    %13 = arith.extui %12 : vector<1x1x32xi1> to vector<1x1x32xi32>
    %14 = arith.sitofp %13 : vector<1x1x32xi32> to vector<1x1x32xf32>
    %c16_i32_1 = arith.constant 16 : i32
    %15 = vector.broadcast %c16_i32_1 : i32 to vector<1x1x32xi32>
    %16 = arith.cmpi sge, %0, %15 : vector<1x1x32xi32>
    %c24_i32 = arith.constant 24 : i32
    %17 = vector.broadcast %c24_i32 : i32 to vector<1x1x32xi32>
    %18 = arith.cmpi slt, %0, %17 : vector<1x1x32xi32>
    %19 = arith.andi %16, %18 : vector<1x1x32xi1>
    %20 = arith.extui %19 : vector<1x1x32xi1> to vector<1x1x32xi32>
    %21 = arith.sitofp %20 : vector<1x1x32xi32> to vector<1x1x32xf32>
    %c24_i32_2 = arith.constant 24 : i32
    %22 = vector.broadcast %c24_i32_2 : i32 to vector<1x1x32xi32>
    %23 = arith.cmpi sge, %0, %22 : vector<1x1x32xi32>
    %c32_i32 = arith.constant 32 : i32
    %24 = vector.broadcast %c32_i32 : i32 to vector<1x1x32xi32>
    %25 = arith.cmpi slt, %0, %24 : vector<1x1x32xi32>
    %26 = arith.andi %23, %25 : vector<1x1x32xi1>
    %27 = arith.extui %26 : vector<1x1x32xi1> to vector<1x1x32xi32>
    %28 = arith.sitofp %27 : vector<1x1x32xi32> to vector<1x1x32xf32>
    %c0 = arith.constant 0 : index
    %c0_3 = arith.constant 0 : index
    %c0_4 = arith.constant 0 : index
    %29 = vector.load %arg0[%c0, %c0_3, %c0_4] : memref<2x8x16xf32, #tpu.memory_space<vmem>>, vector<2x8x16xf32>
    %c0_5 = arith.constant 0 : index
    %c0_6 = arith.constant 0 : index
    %30 = vector.load %arg1[%c0_5, %c0_6] : memref<1104x128xf32, #tpu.memory_space<vmem>>, vector<8x32xf32>
    %31 = vector.shape_cast %30 : vector<8x32xf32> to vector<1x8x32xf32>
    %32 = vector.shape_cast %31 : vector<1x8x32xf32> to vector<8x32xf32>
    %c8 = arith.constant 8 : index
    %c0_7 = arith.constant 0 : index
    %33 = vector.load %arg1[%c8, %c0_7] : memref<1104x128xf32, #tpu.memory_space<vmem>>, vector<32x32xf32>
    %c40 = arith.constant 40 : index
    %c0_8 = arith.constant 0 : index
    %34 = vector.load %arg1[%c40, %c0_8] : memref<1104x128xf32, #tpu.memory_space<vmem>>, vector<1x32xf32>
    %cst = arith.constant dense<0.000000e+00> : vector<8x32xf32>
    %35 = tpu.matmul %32, %33, %cst {dimension_numbers = #tpu.dot_dimension_numbers<[1], [0], [0], [1], [0, 0, 1, 1], [], []>} : vector<8x32xf32>, vector<32x32xf32>, vector<8x32xf32> -> vector<8x32xf32>
    %36 = vector.broadcast %34 : vector<1x32xf32> to vector<8x32xf32>
    %37 = arith.addf %35, %36 : vector<8x32xf32>
    %38 = vector.shape_cast %37 : vector<8x32xf32> to vector<1x8x32xf32>
    %39 = vector.shape_cast %38 : vector<1x8x32xf32> to vector<1x8x32xf32>
    %40 = vector.broadcast %39 : vector<1x8x32xf32> to vector<2x8x32xf32>
    %41 = vector.shape_cast %29 : vector<2x8x16xf32> to vector<16x16xf32>
    %c48 = arith.constant 48 : index
    %c0_9 = arith.constant 0 : index
    %42 = vector.load %arg1[%c48, %c0_9] : memref<1104x128xf32, #tpu.memory_space<vmem>>, vector<16x32xf32>
    %c64 = arith.constant 64 : index
    %c0_10 = arith.constant 0 : index
    %43 = vector.load %arg1[%c64, %c0_10] : memref<1104x128xf32, #tpu.memory_space<vmem>>, vector<1x32xf32>
    %cst_11 = arith.constant dense<0.000000e+00> : vector<16x32xf32>
    %44 = tpu.matmul %41, %42, %cst_11 {dimension_numbers = #tpu.dot_dimension_numbers<[1], [0], [0], [1], [0, 0, 1, 1], [], []>} : vector<16x16xf32>, vector<16x32xf32>, vector<16x32xf32> -> vector<16x32xf32>
    %45 = vector.broadcast %43 : vector<1x32xf32> to vector<16x32xf32>
    %46 = arith.addf %44, %45 : vector<16x32xf32>
    %47 = vector.shape_cast %46 : vector<16x32xf32> to vector<2x8x32xf32>
    %c72 = arith.constant 72 : index
    %c0_12 = arith.constant 0 : index
    %48 = vector.load %arg1[%c72, %c0_12] : memref<1104x128xf32, #tpu.memory_space<vmem>>, vector<16x32xf32>
    %c88 = arith.constant 88 : index
    %c0_13 = arith.constant 0 : index
    %49 = vector.load %arg1[%c88, %c0_13] : memref<1104x128xf32, #tpu.memory_space<vmem>>, vector<1x32xf32>
    %cst_14 = arith.constant dense<0.000000e+00> : vector<16x32xf32>
    %50 = tpu.matmul %41, %48, %cst_14 {dimension_numbers = #tpu.dot_dimension_numbers<[1], [0], [0], [1], [0, 0, 1, 1], [], []>} : vector<16x16xf32>, vector<16x32xf32>, vector<16x32xf32> -> vector<16x32xf32>
    %51 = vector.broadcast %49 : vector<1x32xf32> to vector<16x32xf32>
    %52 = arith.addf %50, %51 : vector<16x32xf32>
    %53 = vector.shape_cast %52 : vector<16x32xf32> to vector<2x8x32xf32>
    %cst_15 = arith.constant 0.000000e+00 : f32
    %54 = vector.broadcast %cst_15 : f32 to vector<2x8x32xf32>
    %55 = vector.broadcast %7 : vector<1x1x32xf32> to vector<2x8x32xf32>
    %56 = arith.mulf %40, %55 : vector<2x8x32xf32>
    "tpu.trace_start"() <{level = 10 : i32, message = "bqd,bkd->bqk"}> : () -> ()
    %cst_16 = arith.constant dense<0.000000e+00> : vector<2x8x8xf32>
    %57 = tpu.matmul %56, %47, %cst_16 {dimension_numbers = #tpu.dot_dimension_numbers<[2], [2], [1], [1], [0, 0, 0, 1, 1, 1], [0], [0]>} : vector<2x8x32xf32>, vector<2x8x32xf32>, vector<2x8x8xf32> -> vector<2x8x8xf32>
    "tpu.trace_stop"() : () -> ()
    %cst_17 = arith.constant 0.176776692 : f32
    %58 = vector.broadcast %cst_17 : f32 to vector<2x8x8xf32>
    %59 = arith.mulf %57, %58 : vector<2x8x8xf32>
    %cst_18 = arith.constant dense<0xFF800000> : vector<2x8xf32>
    %60 = vector.multi_reduction <maximumf>, %59, %cst_18 [2] : vector<2x8x8xf32> to vector<2x8xf32>
    %61 = vector.shape_cast %60 : vector<2x8xf32> to vector<2x8x1xf32>
    %62 = vector.broadcast %61 : vector<2x8x1xf32> to vector<2x8x8xf32>
    %63 = arith.subf %59, %62 : vector<2x8x8xf32>
    %64 = math.exp %63 : vector<2x8x8xf32>
    %cst_19 = arith.constant dense<0.000000e+00> : vector<2x8xf32>
    %65 = vector.multi_reduction <add>, %64, %cst_19 [2] : vector<2x8x8xf32> to vector<2x8xf32>
    %66 = vector.shape_cast %65 : vector<2x8xf32> to vector<2x8x1xf32>
    %67 = vector.broadcast %66 : vector<2x8x1xf32> to vector<2x8x8xf32>
    %68 = arith.divf %64, %67 : vector<2x8x8xf32>
    %69 = vector.broadcast %7 : vector<1x1x32xf32> to vector<2x8x32xf32>
    %70 = arith.mulf %53, %69 : vector<2x8x32xf32>
    "tpu.trace_start"() <{level = 10 : i32, message = "bqk,bkd->bqd"}> : () -> ()
    %cst_20 = arith.constant dense<0.000000e+00> : vector<2x8x32xf32>
    %71 = tpu.matmul %68, %70, %cst_20 {dimension_numbers = #tpu.dot_dimension_numbers<[2], [1], [1], [2], [0, 0, 0, 1, 1, 2], [0], [0]>} : vector<2x8x8xf32>, vector<2x8x32xf32>, vector<2x8x32xf32> -> vector<2x8x32xf32>
    "tpu.trace_stop"() : () -> ()
    %72 = arith.addf %54, %71 : vector<2x8x32xf32>
    %73 = vector.broadcast %14 : vector<1x1x32xf32> to vector<2x8x32xf32>
    %74 = arith.mulf %40, %73 : vector<2x8x32xf32>
    "tpu.trace_start"() <{level = 10 : i32, message = "bqd,bkd->bqk"}> : () -> ()
    %cst_21 = arith.constant dense<0.000000e+00> : vector<2x8x8xf32>
    %75 = tpu.matmul %74, %47, %cst_21 {dimension_numbers = #tpu.dot_dimension_numbers<[2], [2], [1], [1], [0, 0, 0, 1, 1, 1], [0], [0]>} : vector<2x8x32xf32>, vector<2x8x32xf32>, vector<2x8x8xf32> -> vector<2x8x8xf32>
    "tpu.trace_stop"() : () -> ()
    %cst_22 = arith.constant 0.176776692 : f32
    %76 = vector.broadcast %cst_22 : f32 to vector<2x8x8xf32>
    %77 = arith.mulf %75, %76 : vector<2x8x8xf32>
    %cst_23 = arith.constant dense<0xFF800000> : vector<2x8xf32>
    %78 = vector.multi_reduction <maximumf>, %77, %cst_23 [2] : vector<2x8x8xf32> to vector<2x8xf32>
    %79 = vector.shape_cast %78 : vector<2x8xf32> to vector<2x8x1xf32>
    %80 = vector.broadcast %79 : vector<2x8x1xf32> to vector<2x8x8xf32>
    %81 = arith.subf %77, %80 : vector<2x8x8xf32>
    %82 = math.exp %81 : vector<2x8x8xf32>
    %cst_24 = arith.constant dense<0.000000e+00> : vector<2x8xf32>
    %83 = vector.multi_reduction <add>, %82, %cst_24 [2] : vector<2x8x8xf32> to vector<2x8xf32>
    %84 = vector.shape_cast %83 : vector<2x8xf32> to vector<2x8x1xf32>
    %85 = vector.broadcast %84 : vector<2x8x1xf32> to vector<2x8x8xf32>
    %86 = arith.divf %82, %85 : vector<2x8x8xf32>
    %87 = vector.broadcast %14 : vector<1x1x32xf32> to vector<2x8x32xf32>
    %88 = arith.mulf %53, %87 : vector<2x8x32xf32>
    "tpu.trace_start"() <{level = 10 : i32, message = "bqk,bkd->bqd"}> : () -> ()
    %cst_25 = arith.constant dense<0.000000e+00> : vector<2x8x32xf32>
    %89 = tpu.matmul %86, %88, %cst_25 {dimension_numbers = #tpu.dot_dimension_numbers<[2], [1], [1], [2], [0, 0, 0, 1, 1, 2], [0], [0]>} : vector<2x8x8xf32>, vector<2x8x32xf32>, vector<2x8x32xf32> -> vector<2x8x32xf32>
    "tpu.trace_stop"() : () -> ()
    %90 = arith.addf %72, %89 : vector<2x8x32xf32>
    %91 = vector.broadcast %21 : vector<1x1x32xf32> to vector<2x8x32xf32>
    %92 = arith.mulf %40, %91 : vector<2x8x32xf32>
    "tpu.trace_start"() <{level = 10 : i32, message = "bqd,bkd->bqk"}> : () -> ()
    %cst_26 = arith.constant dense<0.000000e+00> : vector<2x8x8xf32>
    %93 = tpu.matmul %92, %47, %cst_26 {dimension_numbers = #tpu.dot_dimension_numbers<[2], [2], [1], [1], [0, 0, 0, 1, 1, 1], [0], [0]>} : vector<2x8x32xf32>, vector<2x8x32xf32>, vector<2x8x8xf32> -> vector<2x8x8xf32>
    "tpu.trace_stop"() : () -> ()
    %cst_27 = arith.constant 0.176776692 : f32
    %94 = vector.broadcast %cst_27 : f32 to vector<2x8x8xf32>
    %95 = arith.mulf %93, %94 : vector<2x8x8xf32>
    %cst_28 = arith.constant dense<0xFF800000> : vector<2x8xf32>
    %96 = vector.multi_reduction <maximumf>, %95, %cst_28 [2] : vector<2x8x8xf32> to vector<2x8xf32>
    %97 = vector.shape_cast %96 : vector<2x8xf32> to vector<2x8x1xf32>
    %98 = vector.broadcast %97 : vector<2x8x1xf32> to vector<2x8x8xf32>
    %99 = arith.subf %95, %98 : vector<2x8x8xf32>
    %100 = math.exp %99 : vector<2x8x8xf32>
    %cst_29 = arith.constant dense<0.000000e+00> : vector<2x8xf32>
    %101 = vector.multi_reduction <add>, %100, %cst_29 [2] : vector<2x8x8xf32> to vector<2x8xf32>
    %102 = vector.shape_cast %101 : vector<2x8xf32> to vector<2x8x1xf32>
    %103 = vector.broadcast %102 : vector<2x8x1xf32> to vector<2x8x8xf32>
    %104 = arith.divf %100, %103 : vector<2x8x8xf32>
    %105 = vector.broadcast %21 : vector<1x1x32xf32> to vector<2x8x32xf32>
    %106 = arith.mulf %53, %105 : vector<2x8x32xf32>
    "tpu.trace_start"() <{level = 10 : i32, message = "bqk,bkd->bqd"}> : () -> ()
    %cst_30 = arith.constant dense<0.000000e+00> : vector<2x8x32xf32>
    %107 = tpu.matmul %104, %106, %cst_30 {dimension_numbers = #tpu.dot_dimension_numbers<[2], [1], [1], [2], [0, 0, 0, 1, 1, 2], [0], [0]>} : vector<2x8x8xf32>, vector<2x8x32xf32>, vector<2x8x32xf32> -> vector<2x8x32xf32>
    "tpu.trace_stop"() : () -> ()
    %108 = arith.addf %90, %107 : vector<2x8x32xf32>
    %109 = vector.broadcast %28 : vector<1x1x32xf32> to vector<2x8x32xf32>
    %110 = arith.mulf %40, %109 : vector<2x8x32xf32>
    "tpu.trace_start"() <{level = 10 : i32, message = "bqd,bkd->bqk"}> : () -> ()
    %cst_31 = arith.constant dense<0.000000e+00> : vector<2x8x8xf32>
    %111 = tpu.matmul %110, %47, %cst_31 {dimension_numbers = #tpu.dot_dimension_numbers<[2], [2], [1], [1], [0, 0, 0, 1, 1, 1], [0], [0]>} : vector<2x8x32xf32>, vector<2x8x32xf32>, vector<2x8x8xf32> -> vector<2x8x8xf32>
    "tpu.trace_stop"() : () -> ()
    %cst_32 = arith.constant 0.176776692 : f32
    %112 = vector.broadcast %cst_32 : f32 to vector<2x8x8xf32>
    %113 = arith.mulf %111, %112 : vector<2x8x8xf32>
    %cst_33 = arith.constant dense<0xFF800000> : vector<2x8xf32>
    %114 = vector.multi_reduction <maximumf>, %113, %cst_33 [2] : vector<2x8x8xf32> to vector<2x8xf32>
    %115 = vector.shape_cast %114 : vector<2x8xf32> to vector<2x8x1xf32>
    %116 = vector.broadcast %115 : vector<2x8x1xf32> to vector<2x8x8xf32>
    %117 = arith.subf %113, %116 : vector<2x8x8xf32>
    %118 = math.exp %117 : vector<2x8x8xf32>
    %cst_34 = arith.constant dense<0.000000e+00> : vector<2x8xf32>
    %119 = vector.multi_reduction <add>, %118, %cst_34 [2] : vector<2x8x8xf32> to vector<2x8xf32>
    %120 = vector.shape_cast %119 : vector<2x8xf32> to vector<2x8x1xf32>
    %121 = vector.broadcast %120 : vector<2x8x1xf32> to vector<2x8x8xf32>
    %122 = arith.divf %118, %121 : vector<2x8x8xf32>
    %123 = vector.broadcast %28 : vector<1x1x32xf32> to vector<2x8x32xf32>
    %124 = arith.mulf %53, %123 : vector<2x8x32xf32>
    "tpu.trace_start"() <{level = 10 : i32, message = "bqk,bkd->bqd"}> : () -> ()
    %cst_35 = arith.constant dense<0.000000e+00> : vector<2x8x32xf32>
    %125 = tpu.matmul %122, %124, %cst_35 {dimension_numbers = #tpu.dot_dimension_numbers<[2], [1], [1], [2], [0, 0, 0, 1, 1, 2], [0], [0]>} : vector<2x8x8xf32>, vector<2x8x32xf32>, vector<2x8x32xf32> -> vector<2x8x32xf32>
    "tpu.trace_stop"() : () -> ()
    %126 = arith.addf %108, %125 : vector<2x8x32xf32>
    %127 = arith.addf %40, %126 : vector<2x8x32xf32>
    %128 = vector.shape_cast %127 : vector<2x8x32xf32> to vector<16x32xf32>
    %c96 = arith.constant 96 : index
    %c0_36 = arith.constant 0 : index
    %129 = vector.load %arg1[%c96, %c0_36] : memref<1104x128xf32, #tpu.memory_space<vmem>>, vector<32x32xf32>
    %c128 = arith.constant 128 : index
    %c0_37 = arith.constant 0 : index
    %130 = vector.load %arg1[%c128, %c0_37] : memref<1104x128xf32, #tpu.memory_space<vmem>>, vector<1x32xf32>
    %cst_38 = arith.constant dense<0.000000e+00> : vector<16x32xf32>
    %131 = tpu.matmul %128, %129, %cst_38 {dimension_numbers = #tpu.dot_dimension_numbers<[1], [0], [0], [1], [0, 0, 1, 1], [], []>} : vector<16x32xf32>, vector<32x32xf32>, vector<16x32xf32> -> vector<16x32xf32>
    %132 = vector.broadcast %130 : vector<1x32xf32> to vector<16x32xf32>
    %133 = arith.addf %131, %132 : vector<16x32xf32>
    %cst_39 = arith.constant 0.000000e+00 : f32
    %134 = vector.broadcast %cst_39 : f32 to vector<16x32xf32>
    %135 = arith.maximumf %133, %134 : vector<16x32xf32>
    %136 = vector.shape_cast %135 : vector<16x32xf32> to vector<2x8x32xf32>
    %137 = arith.addf %127, %136 : vector<2x8x32xf32>
    %138 = vector.shape_cast %29 : vector<2x8x16xf32> to vector<16x16xf32>
    %c136 = arith.constant 136 : index
    %c0_40 = arith.constant 0 : index
    %139 = vector.load %arg1[%c136, %c0_40] : memref<1104x128xf32, #tpu.memory_space<vmem>>, vector<16x32xf32>
    %c152 = arith.constant 152 : index
    %c0_41 = arith.constant 0 : index
    %140 = vector.load %arg1[%c152, %c0_41] : memref<1104x128xf32, #tpu.memory_space<vmem>>, vector<1x32xf32>
    %cst_42 = arith.constant dense<0.000000e+00> : vector<16x32xf32>
    %141 = tpu.matmul %138, %139, %cst_42 {dimension_numbers = #tpu.dot_dimension_numbers<[1], [0], [0], [1], [0, 0, 1, 1], [], []>} : vector<16x16xf32>, vector<16x32xf32>, vector<16x32xf32> -> vector<16x32xf32>
    %142 = vector.broadcast %140 : vector<1x32xf32> to vector<16x32xf32>
    %143 = arith.addf %141, %142 : vector<16x32xf32>
    %144 = vector.shape_cast %143 : vector<16x32xf32> to vector<2x8x32xf32>
    %145 = vector.shape_cast %137 : vector<2x8x32xf32> to vector<16x32xf32>
    %c160 = arith.constant 160 : index
    %c0_43 = arith.constant 0 : index
    %146 = vector.load %arg1[%c160, %c0_43] : memref<1104x128xf32, #tpu.memory_space<vmem>>, vector<32x32xf32>
    %c192 = arith.constant 192 : index
    %c0_44 = arith.constant 0 : index
    %147 = vector.load %arg1[%c192, %c0_44] : memref<1104x128xf32, #tpu.memory_space<vmem>>, vector<1x32xf32>
    %cst_45 = arith.constant dense<0.000000e+00> : vector<16x32xf32>
    %148 = tpu.matmul %145, %146, %cst_45 {dimension_numbers = #tpu.dot_dimension_numbers<[1], [0], [0], [1], [0, 0, 1, 1], [], []>} : vector<16x32xf32>, vector<32x32xf32>, vector<16x32xf32> -> vector<16x32xf32>
    %149 = vector.broadcast %147 : vector<1x32xf32> to vector<16x32xf32>
    %150 = arith.addf %148, %149 : vector<16x32xf32>
    %151 = vector.shape_cast %150 : vector<16x32xf32> to vector<2x8x32xf32>
    %c200 = arith.constant 200 : index
    %c0_46 = arith.constant 0 : index
    %152 = vector.load %arg1[%c200, %c0_46] : memref<1104x128xf32, #tpu.memory_space<vmem>>, vector<32x32xf32>
    %c232 = arith.constant 232 : index
    %c0_47 = arith.constant 0 : index
    %153 = vector.load %arg1[%c232, %c0_47] : memref<1104x128xf32, #tpu.memory_space<vmem>>, vector<1x32xf32>
    %cst_48 = arith.constant dense<0.000000e+00> : vector<16x32xf32>
    %154 = tpu.matmul %145, %152, %cst_48 {dimension_numbers = #tpu.dot_dimension_numbers<[1], [0], [0], [1], [0, 0, 1, 1], [], []>} : vector<16x32xf32>, vector<32x32xf32>, vector<16x32xf32> -> vector<16x32xf32>
    %155 = vector.broadcast %153 : vector<1x32xf32> to vector<16x32xf32>
    %156 = arith.addf %154, %155 : vector<16x32xf32>
    %157 = vector.shape_cast %156 : vector<16x32xf32> to vector<2x8x32xf32>
    %cst_49 = arith.constant 0.000000e+00 : f32
    %158 = vector.broadcast %cst_49 : f32 to vector<2x8x32xf32>
    %159 = vector.broadcast %7 : vector<1x1x32xf32> to vector<2x8x32xf32>
    %160 = arith.mulf %144, %159 : vector<2x8x32xf32>
    "tpu.trace_start"() <{level = 10 : i32, message = "bqd,bkd->bqk"}> : () -> ()
    %cst_50 = arith.constant dense<0.000000e+00> : vector<2x8x8xf32>
    %161 = tpu.matmul %160, %151, %cst_50 {dimension_numbers = #tpu.dot_dimension_numbers<[2], [2], [1], [1], [0, 0, 0, 1, 1, 1], [0], [0]>} : vector<2x8x32xf32>, vector<2x8x32xf32>, vector<2x8x8xf32> -> vector<2x8x8xf32>
    "tpu.trace_stop"() : () -> ()
    %cst_51 = arith.constant 0.176776692 : f32
    %162 = vector.broadcast %cst_51 : f32 to vector<2x8x8xf32>
    %163 = arith.mulf %161, %162 : vector<2x8x8xf32>
    %cst_52 = arith.constant dense<0xFF800000> : vector<2x8xf32>
    %164 = vector.multi_reduction <maximumf>, %163, %cst_52 [2] : vector<2x8x8xf32> to vector<2x8xf32>
    %165 = vector.shape_cast %164 : vector<2x8xf32> to vector<2x8x1xf32>
    %166 = vector.broadcast %165 : vector<2x8x1xf32> to vector<2x8x8xf32>
    %167 = arith.subf %163, %166 : vector<2x8x8xf32>
    %168 = math.exp %167 : vector<2x8x8xf32>
    %cst_53 = arith.constant dense<0.000000e+00> : vector<2x8xf32>
    %169 = vector.multi_reduction <add>, %168, %cst_53 [2] : vector<2x8x8xf32> to vector<2x8xf32>
    %170 = vector.shape_cast %169 : vector<2x8xf32> to vector<2x8x1xf32>
    %171 = vector.broadcast %170 : vector<2x8x1xf32> to vector<2x8x8xf32>
    %172 = arith.divf %168, %171 : vector<2x8x8xf32>
    %173 = vector.broadcast %7 : vector<1x1x32xf32> to vector<2x8x32xf32>
    %174 = arith.mulf %157, %173 : vector<2x8x32xf32>
    "tpu.trace_start"() <{level = 10 : i32, message = "bqk,bkd->bqd"}> : () -> ()
    %cst_54 = arith.constant dense<0.000000e+00> : vector<2x8x32xf32>
    %175 = tpu.matmul %172, %174, %cst_54 {dimension_numbers = #tpu.dot_dimension_numbers<[2], [1], [1], [2], [0, 0, 0, 1, 1, 2], [0], [0]>} : vector<2x8x8xf32>, vector<2x8x32xf32>, vector<2x8x32xf32> -> vector<2x8x32xf32>
    "tpu.trace_stop"() : () -> ()
    %176 = arith.addf %158, %175 : vector<2x8x32xf32>
    %177 = vector.broadcast %14 : vector<1x1x32xf32> to vector<2x8x32xf32>
    %178 = arith.mulf %144, %177 : vector<2x8x32xf32>
    "tpu.trace_start"() <{level = 10 : i32, message = "bqd,bkd->bqk"}> : () -> ()
    %cst_55 = arith.constant dense<0.000000e+00> : vector<2x8x8xf32>
    %179 = tpu.matmul %178, %151, %cst_55 {dimension_numbers = #tpu.dot_dimension_numbers<[2], [2], [1], [1], [0, 0, 0, 1, 1, 1], [0], [0]>} : vector<2x8x32xf32>, vector<2x8x32xf32>, vector<2x8x8xf32> -> vector<2x8x8xf32>
    "tpu.trace_stop"() : () -> ()
    %cst_56 = arith.constant 0.176776692 : f32
    %180 = vector.broadcast %cst_56 : f32 to vector<2x8x8xf32>
    %181 = arith.mulf %179, %180 : vector<2x8x8xf32>
    %cst_57 = arith.constant dense<0xFF800000> : vector<2x8xf32>
    %182 = vector.multi_reduction <maximumf>, %181, %cst_57 [2] : vector<2x8x8xf32> to vector<2x8xf32>
    %183 = vector.shape_cast %182 : vector<2x8xf32> to vector<2x8x1xf32>
    %184 = vector.broadcast %183 : vector<2x8x1xf32> to vector<2x8x8xf32>
    %185 = arith.subf %181, %184 : vector<2x8x8xf32>
    %186 = math.exp %185 : vector<2x8x8xf32>
    %cst_58 = arith.constant dense<0.000000e+00> : vector<2x8xf32>
    %187 = vector.multi_reduction <add>, %186, %cst_58 [2] : vector<2x8x8xf32> to vector<2x8xf32>
    %188 = vector.shape_cast %187 : vector<2x8xf32> to vector<2x8x1xf32>
    %189 = vector.broadcast %188 : vector<2x8x1xf32> to vector<2x8x8xf32>
    %190 = arith.divf %186, %189 : vector<2x8x8xf32>
    %191 = vector.broadcast %14 : vector<1x1x32xf32> to vector<2x8x32xf32>
    %192 = arith.mulf %157, %191 : vector<2x8x32xf32>
    "tpu.trace_start"() <{level = 10 : i32, message = "bqk,bkd->bqd"}> : () -> ()
    %cst_59 = arith.constant dense<0.000000e+00> : vector<2x8x32xf32>
    %193 = tpu.matmul %190, %192, %cst_59 {dimension_numbers = #tpu.dot_dimension_numbers<[2], [1], [1], [2], [0, 0, 0, 1, 1, 2], [0], [0]>} : vector<2x8x8xf32>, vector<2x8x32xf32>, vector<2x8x32xf32> -> vector<2x8x32xf32>
    "tpu.trace_stop"() : () -> ()
    %194 = arith.addf %176, %193 : vector<2x8x32xf32>
    %195 = vector.broadcast %21 : vector<1x1x32xf32> to vector<2x8x32xf32>
    %196 = arith.mulf %144, %195 : vector<2x8x32xf32>
    "tpu.trace_start"() <{level = 10 : i32, message = "bqd,bkd->bqk"}> : () -> ()
    %cst_60 = arith.constant dense<0.000000e+00> : vector<2x8x8xf32>
    %197 = tpu.matmul %196, %151, %cst_60 {dimension_numbers = #tpu.dot_dimension_numbers<[2], [2], [1], [1], [0, 0, 0, 1, 1, 1], [0], [0]>} : vector<2x8x32xf32>, vector<2x8x32xf32>, vector<2x8x8xf32> -> vector<2x8x8xf32>
    "tpu.trace_stop"() : () -> ()
    %cst_61 = arith.constant 0.176776692 : f32
    %198 = vector.broadcast %cst_61 : f32 to vector<2x8x8xf32>
    %199 = arith.mulf %197, %198 : vector<2x8x8xf32>
    %cst_62 = arith.constant dense<0xFF800000> : vector<2x8xf32>
    %200 = vector.multi_reduction <maximumf>, %199, %cst_62 [2] : vector<2x8x8xf32> to vector<2x8xf32>
    %201 = vector.shape_cast %200 : vector<2x8xf32> to vector<2x8x1xf32>
    %202 = vector.broadcast %201 : vector<2x8x1xf32> to vector<2x8x8xf32>
    %203 = arith.subf %199, %202 : vector<2x8x8xf32>
    %204 = math.exp %203 : vector<2x8x8xf32>
    %cst_63 = arith.constant dense<0.000000e+00> : vector<2x8xf32>
    %205 = vector.multi_reduction <add>, %204, %cst_63 [2] : vector<2x8x8xf32> to vector<2x8xf32>
    %206 = vector.shape_cast %205 : vector<2x8xf32> to vector<2x8x1xf32>
    %207 = vector.broadcast %206 : vector<2x8x1xf32> to vector<2x8x8xf32>
    %208 = arith.divf %204, %207 : vector<2x8x8xf32>
    %209 = vector.broadcast %21 : vector<1x1x32xf32> to vector<2x8x32xf32>
    %210 = arith.mulf %157, %209 : vector<2x8x32xf32>
    "tpu.trace_start"() <{level = 10 : i32, message = "bqk,bkd->bqd"}> : () -> ()
    %cst_64 = arith.constant dense<0.000000e+00> : vector<2x8x32xf32>
    %211 = tpu.matmul %208, %210, %cst_64 {dimension_numbers = #tpu.dot_dimension_numbers<[2], [1], [1], [2], [0, 0, 0, 1, 1, 2], [0], [0]>} : vector<2x8x8xf32>, vector<2x8x32xf32>, vector<2x8x32xf32> -> vector<2x8x32xf32>
    "tpu.trace_stop"() : () -> ()
    %212 = arith.addf %194, %211 : vector<2x8x32xf32>
    %213 = vector.broadcast %28 : vector<1x1x32xf32> to vector<2x8x32xf32>
    %214 = arith.mulf %144, %213 : vector<2x8x32xf32>
    "tpu.trace_start"() <{level = 10 : i32, message = "bqd,bkd->bqk"}> : () -> ()
    %cst_65 = arith.constant dense<0.000000e+00> : vector<2x8x8xf32>
    %215 = tpu.matmul %214, %151, %cst_65 {dimension_numbers = #tpu.dot_dimension_numbers<[2], [2], [1], [1], [0, 0, 0, 1, 1, 1], [0], [0]>} : vector<2x8x32xf32>, vector<2x8x32xf32>, vector<2x8x8xf32> -> vector<2x8x8xf32>
    "tpu.trace_stop"() : () -> ()
    %cst_66 = arith.constant 0.176776692 : f32
    %216 = vector.broadcast %cst_66 : f32 to vector<2x8x8xf32>
    %217 = arith.mulf %215, %216 : vector<2x8x8xf32>
    %cst_67 = arith.constant dense<0xFF800000> : vector<2x8xf32>
    %218 = vector.multi_reduction <maximumf>, %217, %cst_67 [2] : vector<2x8x8xf32> to vector<2x8xf32>
    %219 = vector.shape_cast %218 : vector<2x8xf32> to vector<2x8x1xf32>
    %220 = vector.broadcast %219 : vector<2x8x1xf32> to vector<2x8x8xf32>
    %221 = arith.subf %217, %220 : vector<2x8x8xf32>
    %222 = math.exp %221 : vector<2x8x8xf32>
    %cst_68 = arith.constant dense<0.000000e+00> : vector<2x8xf32>
    %223 = vector.multi_reduction <add>, %222, %cst_68 [2] : vector<2x8x8xf32> to vector<2x8xf32>
    %224 = vector.shape_cast %223 : vector<2x8xf32> to vector<2x8x1xf32>
    %225 = vector.broadcast %224 : vector<2x8x1xf32> to vector<2x8x8xf32>
    %226 = arith.divf %222, %225 : vector<2x8x8xf32>
    %227 = vector.broadcast %28 : vector<1x1x32xf32> to vector<2x8x32xf32>
    %228 = arith.mulf %157, %227 : vector<2x8x32xf32>
    "tpu.trace_start"() <{level = 10 : i32, message = "bqk,bkd->bqd"}> : () -> ()
    %cst_69 = arith.constant dense<0.000000e+00> : vector<2x8x32xf32>
    %229 = tpu.matmul %226, %228, %cst_69 {dimension_numbers = #tpu.dot_dimension_numbers<[2], [1], [1], [2], [0, 0, 0, 1, 1, 2], [0], [0]>} : vector<2x8x8xf32>, vector<2x8x32xf32>, vector<2x8x32xf32> -> vector<2x8x32xf32>
    "tpu.trace_stop"() : () -> ()
    %230 = arith.addf %212, %229 : vector<2x8x32xf32>
    %231 = arith.addf %144, %230 : vector<2x8x32xf32>
    %232 = vector.shape_cast %231 : vector<2x8x32xf32> to vector<16x32xf32>
    %c240 = arith.constant 240 : index
    %c0_70 = arith.constant 0 : index
    %233 = vector.load %arg1[%c240, %c0_70] : memref<1104x128xf32, #tpu.memory_space<vmem>>, vector<32x32xf32>
    %c272 = arith.constant 272 : index
    %c0_71 = arith.constant 0 : index
    %234 = vector.load %arg1[%c272, %c0_71] : memref<1104x128xf32, #tpu.memory_space<vmem>>, vector<1x32xf32>
    %cst_72 = arith.constant dense<0.000000e+00> : vector<16x32xf32>
    %235 = tpu.matmul %232, %233, %cst_72 {dimension_numbers = #tpu.dot_dimension_numbers<[1], [0], [0], [1], [0, 0, 1, 1], [], []>} : vector<16x32xf32>, vector<32x32xf32>, vector<16x32xf32> -> vector<16x32xf32>
    %236 = vector.broadcast %234 : vector<1x32xf32> to vector<16x32xf32>
    %237 = arith.addf %235, %236 : vector<16x32xf32>
    %cst_73 = arith.constant 0.000000e+00 : f32
    %238 = vector.broadcast %cst_73 : f32 to vector<16x32xf32>
    %239 = arith.maximumf %237, %238 : vector<16x32xf32>
    %240 = vector.shape_cast %239 : vector<16x32xf32> to vector<2x8x32xf32>
    %241 = arith.addf %231, %240 : vector<2x8x32xf32>
    %c280 = arith.constant 280 : index
    %c0_74 = arith.constant 0 : index
    %242 = vector.load %arg1[%c280, %c0_74] : memref<1104x128xf32, #tpu.memory_space<vmem>>, vector<8x32xf32>
    %243 = vector.shape_cast %242 : vector<8x32xf32> to vector<1x8x32xf32>
    %244 = vector.shape_cast %243 : vector<1x8x32xf32> to vector<8x32xf32>
    %c288 = arith.constant 288 : index
    %c0_75 = arith.constant 0 : index
    %245 = vector.load %arg1[%c288, %c0_75] : memref<1104x128xf32, #tpu.memory_space<vmem>>, vector<32x32xf32>
    %c320 = arith.constant 320 : index
    %c0_76 = arith.constant 0 : index
    %246 = vector.load %arg1[%c320, %c0_76] : memref<1104x128xf32, #tpu.memory_space<vmem>>, vector<1x32xf32>
    %cst_77 = arith.constant dense<0.000000e+00> : vector<8x32xf32>
    %247 = tpu.matmul %244, %245, %cst_77 {dimension_numbers = #tpu.dot_dimension_numbers<[1], [0], [0], [1], [0, 0, 1, 1], [], []>} : vector<8x32xf32>, vector<32x32xf32>, vector<8x32xf32> -> vector<8x32xf32>
    %248 = vector.broadcast %246 : vector<1x32xf32> to vector<8x32xf32>
    %249 = arith.addf %247, %248 : vector<8x32xf32>
    %250 = vector.shape_cast %249 : vector<8x32xf32> to vector<1x8x32xf32>
    %251 = vector.shape_cast %250 : vector<1x8x32xf32> to vector<1x8x32xf32>
    %252 = vector.broadcast %251 : vector<1x8x32xf32> to vector<2x8x32xf32>
    %253 = vector.shape_cast %241 : vector<2x8x32xf32> to vector<16x32xf32>
    %c328 = arith.constant 328 : index
    %c0_78 = arith.constant 0 : index
    %254 = vector.load %arg1[%c328, %c0_78] : memref<1104x128xf32, #tpu.memory_space<vmem>>, vector<32x32xf32>
    %c360 = arith.constant 360 : index
    %c0_79 = arith.constant 0 : index
    %255 = vector.load %arg1[%c360, %c0_79] : memref<1104x128xf32, #tpu.memory_space<vmem>>, vector<1x32xf32>
    %cst_80 = arith.constant dense<0.000000e+00> : vector<16x32xf32>
    %256 = tpu.matmul %253, %254, %cst_80 {dimension_numbers = #tpu.dot_dimension_numbers<[1], [0], [0], [1], [0, 0, 1, 1], [], []>} : vector<16x32xf32>, vector<32x32xf32>, vector<16x32xf32> -> vector<16x32xf32>
    %257 = vector.broadcast %255 : vector<1x32xf32> to vector<16x32xf32>
    %258 = arith.addf %256, %257 : vector<16x32xf32>
    %259 = vector.shape_cast %258 : vector<16x32xf32> to vector<2x8x32xf32>
    %c368 = arith.constant 368 : index
    %c0_81 = arith.constant 0 : index
    %260 = vector.load %arg1[%c368, %c0_81] : memref<1104x128xf32, #tpu.memory_space<vmem>>, vector<32x32xf32>
    %c400 = arith.constant 400 : index
    %c0_82 = arith.constant 0 : index
    %261 = vector.load %arg1[%c400, %c0_82] : memref<1104x128xf32, #tpu.memory_space<vmem>>, vector<1x32xf32>
    %cst_83 = arith.constant dense<0.000000e+00> : vector<16x32xf32>
    %262 = tpu.matmul %253, %260, %cst_83 {dimension_numbers = #tpu.dot_dimension_numbers<[1], [0], [0], [1], [0, 0, 1, 1], [], []>} : vector<16x32xf32>, vector<32x32xf32>, vector<16x32xf32> -> vector<16x32xf32>
    %263 = vector.broadcast %261 : vector<1x32xf32> to vector<16x32xf32>
    %264 = arith.addf %262, %263 : vector<16x32xf32>
    %265 = vector.shape_cast %264 : vector<16x32xf32> to vector<2x8x32xf32>
    %cst_84 = arith.constant 0.000000e+00 : f32
    %266 = vector.broadcast %cst_84 : f32 to vector<2x8x32xf32>
    %267 = vector.broadcast %7 : vector<1x1x32xf32> to vector<2x8x32xf32>
    %268 = arith.mulf %252, %267 : vector<2x8x32xf32>
    "tpu.trace_start"() <{level = 10 : i32, message = "bqd,bkd->bqk"}> : () -> ()
    %cst_85 = arith.constant dense<0.000000e+00> : vector<2x8x8xf32>
    %269 = tpu.matmul %268, %259, %cst_85 {dimension_numbers = #tpu.dot_dimension_numbers<[2], [2], [1], [1], [0, 0, 0, 1, 1, 1], [0], [0]>} : vector<2x8x32xf32>, vector<2x8x32xf32>, vector<2x8x8xf32> -> vector<2x8x8xf32>
    "tpu.trace_stop"() : () -> ()
    %cst_86 = arith.constant 0.176776692 : f32
    %270 = vector.broadcast %cst_86 : f32 to vector<2x8x8xf32>
    %271 = arith.mulf %269, %270 : vector<2x8x8xf32>
    %cst_87 = arith.constant dense<0xFF800000> : vector<2x8xf32>
    %272 = vector.multi_reduction <maximumf>, %271, %cst_87 [2] : vector<2x8x8xf32> to vector<2x8xf32>
    %273 = vector.shape_cast %272 : vector<2x8xf32> to vector<2x8x1xf32>
    %274 = vector.broadcast %273 : vector<2x8x1xf32> to vector<2x8x8xf32>
    %275 = arith.subf %271, %274 : vector<2x8x8xf32>
    %276 = math.exp %275 : vector<2x8x8xf32>
    %cst_88 = arith.constant dense<0.000000e+00> : vector<2x8xf32>
    %277 = vector.multi_reduction <add>, %276, %cst_88 [2] : vector<2x8x8xf32> to vector<2x8xf32>
    %278 = vector.shape_cast %277 : vector<2x8xf32> to vector<2x8x1xf32>
    %279 = vector.broadcast %278 : vector<2x8x1xf32> to vector<2x8x8xf32>
    %280 = arith.divf %276, %279 : vector<2x8x8xf32>
    %281 = vector.broadcast %7 : vector<1x1x32xf32> to vector<2x8x32xf32>
    %282 = arith.mulf %265, %281 : vector<2x8x32xf32>
    "tpu.trace_start"() <{level = 10 : i32, message = "bqk,bkd->bqd"}> : () -> ()
    %cst_89 = arith.constant dense<0.000000e+00> : vector<2x8x32xf32>
    %283 = tpu.matmul %280, %282, %cst_89 {dimension_numbers = #tpu.dot_dimension_numbers<[2], [1], [1], [2], [0, 0, 0, 1, 1, 2], [0], [0]>} : vector<2x8x8xf32>, vector<2x8x32xf32>, vector<2x8x32xf32> -> vector<2x8x32xf32>
    "tpu.trace_stop"() : () -> ()
    %284 = arith.addf %266, %283 : vector<2x8x32xf32>
    %285 = vector.broadcast %14 : vector<1x1x32xf32> to vector<2x8x32xf32>
    %286 = arith.mulf %252, %285 : vector<2x8x32xf32>
    "tpu.trace_start"() <{level = 10 : i32, message = "bqd,bkd->bqk"}> : () -> ()
    %cst_90 = arith.constant dense<0.000000e+00> : vector<2x8x8xf32>
    %287 = tpu.matmul %286, %259, %cst_90 {dimension_numbers = #tpu.dot_dimension_numbers<[2], [2], [1], [1], [0, 0, 0, 1, 1, 1], [0], [0]>} : vector<2x8x32xf32>, vector<2x8x32xf32>, vector<2x8x8xf32> -> vector<2x8x8xf32>
    "tpu.trace_stop"() : () -> ()
    %cst_91 = arith.constant 0.176776692 : f32
    %288 = vector.broadcast %cst_91 : f32 to vector<2x8x8xf32>
    %289 = arith.mulf %287, %288 : vector<2x8x8xf32>
    %cst_92 = arith.constant dense<0xFF800000> : vector<2x8xf32>
    %290 = vector.multi_reduction <maximumf>, %289, %cst_92 [2] : vector<2x8x8xf32> to vector<2x8xf32>
    %291 = vector.shape_cast %290 : vector<2x8xf32> to vector<2x8x1xf32>
    %292 = vector.broadcast %291 : vector<2x8x1xf32> to vector<2x8x8xf32>
    %293 = arith.subf %289, %292 : vector<2x8x8xf32>
    %294 = math.exp %293 : vector<2x8x8xf32>
    %cst_93 = arith.constant dense<0.000000e+00> : vector<2x8xf32>
    %295 = vector.multi_reduction <add>, %294, %cst_93 [2] : vector<2x8x8xf32> to vector<2x8xf32>
    %296 = vector.shape_cast %295 : vector<2x8xf32> to vector<2x8x1xf32>
    %297 = vector.broadcast %296 : vector<2x8x1xf32> to vector<2x8x8xf32>
    %298 = arith.divf %294, %297 : vector<2x8x8xf32>
    %299 = vector.broadcast %14 : vector<1x1x32xf32> to vector<2x8x32xf32>
    %300 = arith.mulf %265, %299 : vector<2x8x32xf32>
    "tpu.trace_start"() <{level = 10 : i32, message = "bqk,bkd->bqd"}> : () -> ()
    %cst_94 = arith.constant dense<0.000000e+00> : vector<2x8x32xf32>
    %301 = tpu.matmul %298, %300, %cst_94 {dimension_numbers = #tpu.dot_dimension_numbers<[2], [1], [1], [2], [0, 0, 0, 1, 1, 2], [0], [0]>} : vector<2x8x8xf32>, vector<2x8x32xf32>, vector<2x8x32xf32> -> vector<2x8x32xf32>
    "tpu.trace_stop"() : () -> ()
    %302 = arith.addf %284, %301 : vector<2x8x32xf32>
    %303 = vector.broadcast %21 : vector<1x1x32xf32> to vector<2x8x32xf32>
    %304 = arith.mulf %252, %303 : vector<2x8x32xf32>
    "tpu.trace_start"() <{level = 10 : i32, message = "bqd,bkd->bqk"}> : () -> ()
    %cst_95 = arith.constant dense<0.000000e+00> : vector<2x8x8xf32>
    %305 = tpu.matmul %304, %259, %cst_95 {dimension_numbers = #tpu.dot_dimension_numbers<[2], [2], [1], [1], [0, 0, 0, 1, 1, 1], [0], [0]>} : vector<2x8x32xf32>, vector<2x8x32xf32>, vector<2x8x8xf32> -> vector<2x8x8xf32>
    "tpu.trace_stop"() : () -> ()
    %cst_96 = arith.constant 0.176776692 : f32
    %306 = vector.broadcast %cst_96 : f32 to vector<2x8x8xf32>
    %307 = arith.mulf %305, %306 : vector<2x8x8xf32>
    %cst_97 = arith.constant dense<0xFF800000> : vector<2x8xf32>
    %308 = vector.multi_reduction <maximumf>, %307, %cst_97 [2] : vector<2x8x8xf32> to vector<2x8xf32>
    %309 = vector.shape_cast %308 : vector<2x8xf32> to vector<2x8x1xf32>
    %310 = vector.broadcast %309 : vector<2x8x1xf32> to vector<2x8x8xf32>
    %311 = arith.subf %307, %310 : vector<2x8x8xf32>
    %312 = math.exp %311 : vector<2x8x8xf32>
    %cst_98 = arith.constant dense<0.000000e+00> : vector<2x8xf32>
    %313 = vector.multi_reduction <add>, %312, %cst_98 [2] : vector<2x8x8xf32> to vector<2x8xf32>
    %314 = vector.shape_cast %313 : vector<2x8xf32> to vector<2x8x1xf32>
    %315 = vector.broadcast %314 : vector<2x8x1xf32> to vector<2x8x8xf32>
    %316 = arith.divf %312, %315 : vector<2x8x8xf32>
    %317 = vector.broadcast %21 : vector<1x1x32xf32> to vector<2x8x32xf32>
    %318 = arith.mulf %265, %317 : vector<2x8x32xf32>
    "tpu.trace_start"() <{level = 10 : i32, message = "bqk,bkd->bqd"}> : () -> ()
    %cst_99 = arith.constant dense<0.000000e+00> : vector<2x8x32xf32>
    %319 = tpu.matmul %316, %318, %cst_99 {dimension_numbers = #tpu.dot_dimension_numbers<[2], [1], [1], [2], [0, 0, 0, 1, 1, 2], [0], [0]>} : vector<2x8x8xf32>, vector<2x8x32xf32>, vector<2x8x32xf32> -> vector<2x8x32xf32>
    "tpu.trace_stop"() : () -> ()
    %320 = arith.addf %302, %319 : vector<2x8x32xf32>
    %321 = vector.broadcast %28 : vector<1x1x32xf32> to vector<2x8x32xf32>
    %322 = arith.mulf %252, %321 : vector<2x8x32xf32>
    "tpu.trace_start"() <{level = 10 : i32, message = "bqd,bkd->bqk"}> : () -> ()
    %cst_100 = arith.constant dense<0.000000e+00> : vector<2x8x8xf32>
    %323 = tpu.matmul %322, %259, %cst_100 {dimension_numbers = #tpu.dot_dimension_numbers<[2], [2], [1], [1], [0, 0, 0, 1, 1, 1], [0], [0]>} : vector<2x8x32xf32>, vector<2x8x32xf32>, vector<2x8x8xf32> -> vector<2x8x8xf32>
    "tpu.trace_stop"() : () -> ()
    %cst_101 = arith.constant 0.176776692 : f32
    %324 = vector.broadcast %cst_101 : f32 to vector<2x8x8xf32>
    %325 = arith.mulf %323, %324 : vector<2x8x8xf32>
    %cst_102 = arith.constant dense<0xFF800000> : vector<2x8xf32>
    %326 = vector.multi_reduction <maximumf>, %325, %cst_102 [2] : vector<2x8x8xf32> to vector<2x8xf32>
    %327 = vector.shape_cast %326 : vector<2x8xf32> to vector<2x8x1xf32>
    %328 = vector.broadcast %327 : vector<2x8x1xf32> to vector<2x8x8xf32>
    %329 = arith.subf %325, %328 : vector<2x8x8xf32>
    %330 = math.exp %329 : vector<2x8x8xf32>
    %cst_103 = arith.constant dense<0.000000e+00> : vector<2x8xf32>
    %331 = vector.multi_reduction <add>, %330, %cst_103 [2] : vector<2x8x8xf32> to vector<2x8xf32>
    %332 = vector.shape_cast %331 : vector<2x8xf32> to vector<2x8x1xf32>
    %333 = vector.broadcast %332 : vector<2x8x1xf32> to vector<2x8x8xf32>
    %334 = arith.divf %330, %333 : vector<2x8x8xf32>
    %335 = vector.broadcast %28 : vector<1x1x32xf32> to vector<2x8x32xf32>
    %336 = arith.mulf %265, %335 : vector<2x8x32xf32>
    "tpu.trace_start"() <{level = 10 : i32, message = "bqk,bkd->bqd"}> : () -> ()
    %cst_104 = arith.constant dense<0.000000e+00> : vector<2x8x32xf32>
    %337 = tpu.matmul %334, %336, %cst_104 {dimension_numbers = #tpu.dot_dimension_numbers<[2], [1], [1], [2], [0, 0, 0, 1, 1, 2], [0], [0]>} : vector<2x8x8xf32>, vector<2x8x32xf32>, vector<2x8x32xf32> -> vector<2x8x32xf32>
    "tpu.trace_stop"() : () -> ()
    %338 = arith.addf %320, %337 : vector<2x8x32xf32>
    %339 = arith.addf %252, %338 : vector<2x8x32xf32>
    %340 = vector.shape_cast %339 : vector<2x8x32xf32> to vector<16x32xf32>
    %c408 = arith.constant 408 : index
    %c0_105 = arith.constant 0 : index
    %341 = vector.load %arg1[%c408, %c0_105] : memref<1104x128xf32, #tpu.memory_space<vmem>>, vector<32x32xf32>
    %c440 = arith.constant 440 : index
    %c0_106 = arith.constant 0 : index
    %342 = vector.load %arg1[%c440, %c0_106] : memref<1104x128xf32, #tpu.memory_space<vmem>>, vector<1x32xf32>
    %cst_107 = arith.constant dense<0.000000e+00> : vector<16x32xf32>
    %343 = tpu.matmul %340, %341, %cst_107 {dimension_numbers = #tpu.dot_dimension_numbers<[1], [0], [0], [1], [0, 0, 1, 1], [], []>} : vector<16x32xf32>, vector<32x32xf32>, vector<16x32xf32> -> vector<16x32xf32>
    %344 = vector.broadcast %342 : vector<1x32xf32> to vector<16x32xf32>
    %345 = arith.addf %343, %344 : vector<16x32xf32>
    %cst_108 = arith.constant 0.000000e+00 : f32
    %346 = vector.broadcast %cst_108 : f32 to vector<16x32xf32>
    %347 = arith.maximumf %345, %346 : vector<16x32xf32>
    %348 = vector.shape_cast %347 : vector<16x32xf32> to vector<2x8x32xf32>
    %349 = arith.addf %339, %348 : vector<2x8x32xf32>
    %350 = vector.shape_cast %241 : vector<2x8x32xf32> to vector<16x32xf32>
    %c448 = arith.constant 448 : index
    %c0_109 = arith.constant 0 : index
    %351 = vector.load %arg1[%c448, %c0_109] : memref<1104x128xf32, #tpu.memory_space<vmem>>, vector<32x32xf32>
    %c480 = arith.constant 480 : index
    %c0_110 = arith.constant 0 : index
    %352 = vector.load %arg1[%c480, %c0_110] : memref<1104x128xf32, #tpu.memory_space<vmem>>, vector<1x32xf32>
    %cst_111 = arith.constant dense<0.000000e+00> : vector<16x32xf32>
    %353 = tpu.matmul %350, %351, %cst_111 {dimension_numbers = #tpu.dot_dimension_numbers<[1], [0], [0], [1], [0, 0, 1, 1], [], []>} : vector<16x32xf32>, vector<32x32xf32>, vector<16x32xf32> -> vector<16x32xf32>
    %354 = vector.broadcast %352 : vector<1x32xf32> to vector<16x32xf32>
    %355 = arith.addf %353, %354 : vector<16x32xf32>
    %356 = vector.shape_cast %355 : vector<16x32xf32> to vector<2x8x32xf32>
    %357 = vector.shape_cast %349 : vector<2x8x32xf32> to vector<16x32xf32>
    %c488 = arith.constant 488 : index
    %c0_112 = arith.constant 0 : index
    %358 = vector.load %arg1[%c488, %c0_112] : memref<1104x128xf32, #tpu.memory_space<vmem>>, vector<32x32xf32>
    %c520 = arith.constant 520 : index
    %c0_113 = arith.constant 0 : index
    %359 = vector.load %arg1[%c520, %c0_113] : memref<1104x128xf32, #tpu.memory_space<vmem>>, vector<1x32xf32>
    %cst_114 = arith.constant dense<0.000000e+00> : vector<16x32xf32>
    %360 = tpu.matmul %357, %358, %cst_114 {dimension_numbers = #tpu.dot_dimension_numbers<[1], [0], [0], [1], [0, 0, 1, 1], [], []>} : vector<16x32xf32>, vector<32x32xf32>, vector<16x32xf32> -> vector<16x32xf32>
    %361 = vector.broadcast %359 : vector<1x32xf32> to vector<16x32xf32>
    %362 = arith.addf %360, %361 : vector<16x32xf32>
    %363 = vector.shape_cast %362 : vector<16x32xf32> to vector<2x8x32xf32>
    %c528 = arith.constant 528 : index
    %c0_115 = arith.constant 0 : index
    %364 = vector.load %arg1[%c528, %c0_115] : memref<1104x128xf32, #tpu.memory_space<vmem>>, vector<32x32xf32>
    %c560 = arith.constant 560 : index
    %c0_116 = arith.constant 0 : index
    %365 = vector.load %arg1[%c560, %c0_116] : memref<1104x128xf32, #tpu.memory_space<vmem>>, vector<1x32xf32>
    %cst_117 = arith.constant dense<0.000000e+00> : vector<16x32xf32>
    %366 = tpu.matmul %357, %364, %cst_117 {dimension_numbers = #tpu.dot_dimension_numbers<[1], [0], [0], [1], [0, 0, 1, 1], [], []>} : vector<16x32xf32>, vector<32x32xf32>, vector<16x32xf32> -> vector<16x32xf32>
    %367 = vector.broadcast %365 : vector<1x32xf32> to vector<16x32xf32>
    %368 = arith.addf %366, %367 : vector<16x32xf32>
    %369 = vector.shape_cast %368 : vector<16x32xf32> to vector<2x8x32xf32>
    %cst_118 = arith.constant 0.000000e+00 : f32
    %370 = vector.broadcast %cst_118 : f32 to vector<2x8x32xf32>
    %371 = vector.broadcast %7 : vector<1x1x32xf32> to vector<2x8x32xf32>
    %372 = arith.mulf %356, %371 : vector<2x8x32xf32>
    "tpu.trace_start"() <{level = 10 : i32, message = "bqd,bkd->bqk"}> : () -> ()
    %cst_119 = arith.constant dense<0.000000e+00> : vector<2x8x8xf32>
    %373 = tpu.matmul %372, %363, %cst_119 {dimension_numbers = #tpu.dot_dimension_numbers<[2], [2], [1], [1], [0, 0, 0, 1, 1, 1], [0], [0]>} : vector<2x8x32xf32>, vector<2x8x32xf32>, vector<2x8x8xf32> -> vector<2x8x8xf32>
    "tpu.trace_stop"() : () -> ()
    %cst_120 = arith.constant 0.176776692 : f32
    %374 = vector.broadcast %cst_120 : f32 to vector<2x8x8xf32>
    %375 = arith.mulf %373, %374 : vector<2x8x8xf32>
    %cst_121 = arith.constant dense<0xFF800000> : vector<2x8xf32>
    %376 = vector.multi_reduction <maximumf>, %375, %cst_121 [2] : vector<2x8x8xf32> to vector<2x8xf32>
    %377 = vector.shape_cast %376 : vector<2x8xf32> to vector<2x8x1xf32>
    %378 = vector.broadcast %377 : vector<2x8x1xf32> to vector<2x8x8xf32>
    %379 = arith.subf %375, %378 : vector<2x8x8xf32>
    %380 = math.exp %379 : vector<2x8x8xf32>
    %cst_122 = arith.constant dense<0.000000e+00> : vector<2x8xf32>
    %381 = vector.multi_reduction <add>, %380, %cst_122 [2] : vector<2x8x8xf32> to vector<2x8xf32>
    %382 = vector.shape_cast %381 : vector<2x8xf32> to vector<2x8x1xf32>
    %383 = vector.broadcast %382 : vector<2x8x1xf32> to vector<2x8x8xf32>
    %384 = arith.divf %380, %383 : vector<2x8x8xf32>
    %385 = vector.broadcast %7 : vector<1x1x32xf32> to vector<2x8x32xf32>
    %386 = arith.mulf %369, %385 : vector<2x8x32xf32>
    "tpu.trace_start"() <{level = 10 : i32, message = "bqk,bkd->bqd"}> : () -> ()
    %cst_123 = arith.constant dense<0.000000e+00> : vector<2x8x32xf32>
    %387 = tpu.matmul %384, %386, %cst_123 {dimension_numbers = #tpu.dot_dimension_numbers<[2], [1], [1], [2], [0, 0, 0, 1, 1, 2], [0], [0]>} : vector<2x8x8xf32>, vector<2x8x32xf32>, vector<2x8x32xf32> -> vector<2x8x32xf32>
    "tpu.trace_stop"() : () -> ()
    %388 = arith.addf %370, %387 : vector<2x8x32xf32>
    %389 = vector.broadcast %14 : vector<1x1x32xf32> to vector<2x8x32xf32>
    %390 = arith.mulf %356, %389 : vector<2x8x32xf32>
    "tpu.trace_start"() <{level = 10 : i32, message = "bqd,bkd->bqk"}> : () -> ()
    %cst_124 = arith.constant dense<0.000000e+00> : vector<2x8x8xf32>
    %391 = tpu.matmul %390, %363, %cst_124 {dimension_numbers = #tpu.dot_dimension_numbers<[2], [2], [1], [1], [0, 0, 0, 1, 1, 1], [0], [0]>} : vector<2x8x32xf32>, vector<2x8x32xf32>, vector<2x8x8xf32> -> vector<2x8x8xf32>
    "tpu.trace_stop"() : () -> ()
    %cst_125 = arith.constant 0.176776692 : f32
    %392 = vector.broadcast %cst_125 : f32 to vector<2x8x8xf32>
    %393 = arith.mulf %391, %392 : vector<2x8x8xf32>
    %cst_126 = arith.constant dense<0xFF800000> : vector<2x8xf32>
    %394 = vector.multi_reduction <maximumf>, %393, %cst_126 [2] : vector<2x8x8xf32> to vector<2x8xf32>
    %395 = vector.shape_cast %394 : vector<2x8xf32> to vector<2x8x1xf32>
    %396 = vector.broadcast %395 : vector<2x8x1xf32> to vector<2x8x8xf32>
    %397 = arith.subf %393, %396 : vector<2x8x8xf32>
    %398 = math.exp %397 : vector<2x8x8xf32>
    %cst_127 = arith.constant dense<0.000000e+00> : vector<2x8xf32>
    %399 = vector.multi_reduction <add>, %398, %cst_127 [2] : vector<2x8x8xf32> to vector<2x8xf32>
    %400 = vector.shape_cast %399 : vector<2x8xf32> to vector<2x8x1xf32>
    %401 = vector.broadcast %400 : vector<2x8x1xf32> to vector<2x8x8xf32>
    %402 = arith.divf %398, %401 : vector<2x8x8xf32>
    %403 = vector.broadcast %14 : vector<1x1x32xf32> to vector<2x8x32xf32>
    %404 = arith.mulf %369, %403 : vector<2x8x32xf32>
    "tpu.trace_start"() <{level = 10 : i32, message = "bqk,bkd->bqd"}> : () -> ()
    %cst_128 = arith.constant dense<0.000000e+00> : vector<2x8x32xf32>
    %405 = tpu.matmul %402, %404, %cst_128 {dimension_numbers = #tpu.dot_dimension_numbers<[2], [1], [1], [2], [0, 0, 0, 1, 1, 2], [0], [0]>} : vector<2x8x8xf32>, vector<2x8x32xf32>, vector<2x8x32xf32> -> vector<2x8x32xf32>
    "tpu.trace_stop"() : () -> ()
    %406 = arith.addf %388, %405 : vector<2x8x32xf32>
    %407 = vector.broadcast %21 : vector<1x1x32xf32> to vector<2x8x32xf32>
    %408 = arith.mulf %356, %407 : vector<2x8x32xf32>
    "tpu.trace_start"() <{level = 10 : i32, message = "bqd,bkd->bqk"}> : () -> ()
    %cst_129 = arith.constant dense<0.000000e+00> : vector<2x8x8xf32>
    %409 = tpu.matmul %408, %363, %cst_129 {dimension_numbers = #tpu.dot_dimension_numbers<[2], [2], [1], [1], [0, 0, 0, 1, 1, 1], [0], [0]>} : vector<2x8x32xf32>, vector<2x8x32xf32>, vector<2x8x8xf32> -> vector<2x8x8xf32>
    "tpu.trace_stop"() : () -> ()
    %cst_130 = arith.constant 0.176776692 : f32
    %410 = vector.broadcast %cst_130 : f32 to vector<2x8x8xf32>
    %411 = arith.mulf %409, %410 : vector<2x8x8xf32>
    %cst_131 = arith.constant dense<0xFF800000> : vector<2x8xf32>
    %412 = vector.multi_reduction <maximumf>, %411, %cst_131 [2] : vector<2x8x8xf32> to vector<2x8xf32>
    %413 = vector.shape_cast %412 : vector<2x8xf32> to vector<2x8x1xf32>
    %414 = vector.broadcast %413 : vector<2x8x1xf32> to vector<2x8x8xf32>
    %415 = arith.subf %411, %414 : vector<2x8x8xf32>
    %416 = math.exp %415 : vector<2x8x8xf32>
    %cst_132 = arith.constant dense<0.000000e+00> : vector<2x8xf32>
    %417 = vector.multi_reduction <add>, %416, %cst_132 [2] : vector<2x8x8xf32> to vector<2x8xf32>
    %418 = vector.shape_cast %417 : vector<2x8xf32> to vector<2x8x1xf32>
    %419 = vector.broadcast %418 : vector<2x8x1xf32> to vector<2x8x8xf32>
    %420 = arith.divf %416, %419 : vector<2x8x8xf32>
    %421 = vector.broadcast %21 : vector<1x1x32xf32> to vector<2x8x32xf32>
    %422 = arith.mulf %369, %421 : vector<2x8x32xf32>
    "tpu.trace_start"() <{level = 10 : i32, message = "bqk,bkd->bqd"}> : () -> ()
    %cst_133 = arith.constant dense<0.000000e+00> : vector<2x8x32xf32>
    %423 = tpu.matmul %420, %422, %cst_133 {dimension_numbers = #tpu.dot_dimension_numbers<[2], [1], [1], [2], [0, 0, 0, 1, 1, 2], [0], [0]>} : vector<2x8x8xf32>, vector<2x8x32xf32>, vector<2x8x32xf32> -> vector<2x8x32xf32>
    "tpu.trace_stop"() : () -> ()
    %424 = arith.addf %406, %423 : vector<2x8x32xf32>
    %425 = vector.broadcast %28 : vector<1x1x32xf32> to vector<2x8x32xf32>
    %426 = arith.mulf %356, %425 : vector<2x8x32xf32>
    "tpu.trace_start"() <{level = 10 : i32, message = "bqd,bkd->bqk"}> : () -> ()
    %cst_134 = arith.constant dense<0.000000e+00> : vector<2x8x8xf32>
    %427 = tpu.matmul %426, %363, %cst_134 {dimension_numbers = #tpu.dot_dimension_numbers<[2], [2], [1], [1], [0, 0, 0, 1, 1, 1], [0], [0]>} : vector<2x8x32xf32>, vector<2x8x32xf32>, vector<2x8x8xf32> -> vector<2x8x8xf32>
    "tpu.trace_stop"() : () -> ()
    %cst_135 = arith.constant 0.176776692 : f32
    %428 = vector.broadcast %cst_135 : f32 to vector<2x8x8xf32>
    %429 = arith.mulf %427, %428 : vector<2x8x8xf32>
    %cst_136 = arith.constant dense<0xFF800000> : vector<2x8xf32>
    %430 = vector.multi_reduction <maximumf>, %429, %cst_136 [2] : vector<2x8x8xf32> to vector<2x8xf32>
    %431 = vector.shape_cast %430 : vector<2x8xf32> to vector<2x8x1xf32>
    %432 = vector.broadcast %431 : vector<2x8x1xf32> to vector<2x8x8xf32>
    %433 = arith.subf %429, %432 : vector<2x8x8xf32>
    %434 = math.exp %433 : vector<2x8x8xf32>
    %cst_137 = arith.constant dense<0.000000e+00> : vector<2x8xf32>
    %435 = vector.multi_reduction <add>, %434, %cst_137 [2] : vector<2x8x8xf32> to vector<2x8xf32>
    %436 = vector.shape_cast %435 : vector<2x8xf32> to vector<2x8x1xf32>
    %437 = vector.broadcast %436 : vector<2x8x1xf32> to vector<2x8x8xf32>
    %438 = arith.divf %434, %437 : vector<2x8x8xf32>
    %439 = vector.broadcast %28 : vector<1x1x32xf32> to vector<2x8x32xf32>
    %440 = arith.mulf %369, %439 : vector<2x8x32xf32>
    "tpu.trace_start"() <{level = 10 : i32, message = "bqk,bkd->bqd"}> : () -> ()
    %cst_138 = arith.constant dense<0.000000e+00> : vector<2x8x32xf32>
    %441 = tpu.matmul %438, %440, %cst_138 {dimension_numbers = #tpu.dot_dimension_numbers<[2], [1], [1], [2], [0, 0, 0, 1, 1, 2], [0], [0]>} : vector<2x8x8xf32>, vector<2x8x32xf32>, vector<2x8x32xf32> -> vector<2x8x32xf32>
    "tpu.trace_stop"() : () -> ()
    %442 = arith.addf %424, %441 : vector<2x8x32xf32>
    %443 = arith.addf %356, %442 : vector<2x8x32xf32>
    %444 = vector.shape_cast %443 : vector<2x8x32xf32> to vector<16x32xf32>
    %c568 = arith.constant 568 : index
    %c0_139 = arith.constant 0 : index
    %445 = vector.load %arg1[%c568, %c0_139] : memref<1104x128xf32, #tpu.memory_space<vmem>>, vector<32x32xf32>
    %c600 = arith.constant 600 : index
    %c0_140 = arith.constant 0 : index
    %446 = vector.load %arg1[%c600, %c0_140] : memref<1104x128xf32, #tpu.memory_space<vmem>>, vector<1x32xf32>
    %cst_141 = arith.constant dense<0.000000e+00> : vector<16x32xf32>
    %447 = tpu.matmul %444, %445, %cst_141 {dimension_numbers = #tpu.dot_dimension_numbers<[1], [0], [0], [1], [0, 0, 1, 1], [], []>} : vector<16x32xf32>, vector<32x32xf32>, vector<16x32xf32> -> vector<16x32xf32>
    %448 = vector.broadcast %446 : vector<1x32xf32> to vector<16x32xf32>
    %449 = arith.addf %447, %448 : vector<16x32xf32>
    %cst_142 = arith.constant 0.000000e+00 : f32
    %450 = vector.broadcast %cst_142 : f32 to vector<16x32xf32>
    %451 = arith.maximumf %449, %450 : vector<16x32xf32>
    %452 = vector.shape_cast %451 : vector<16x32xf32> to vector<2x8x32xf32>
    %453 = arith.addf %443, %452 : vector<2x8x32xf32>
    %c608 = arith.constant 608 : index
    %c0_143 = arith.constant 0 : index
    %454 = vector.load %arg1[%c608, %c0_143] : memref<1104x128xf32, #tpu.memory_space<vmem>>, vector<1x32xf32>
    %455 = vector.shape_cast %454 : vector<1x32xf32> to vector<1x1x32xf32>
    %456 = vector.shape_cast %455 : vector<1x1x32xf32> to vector<1x32xf32>
    %c616 = arith.constant 616 : index
    %c0_144 = arith.constant 0 : index
    %457 = vector.load %arg1[%c616, %c0_144] : memref<1104x128xf32, #tpu.memory_space<vmem>>, vector<32x32xf32>
    %c648 = arith.constant 648 : index
    %c0_145 = arith.constant 0 : index
    %458 = vector.load %arg1[%c648, %c0_145] : memref<1104x128xf32, #tpu.memory_space<vmem>>, vector<1x32xf32>
    %cst_146 = arith.constant dense<0.000000e+00> : vector<1x32xf32>
    %459 = tpu.matmul %456, %457, %cst_146 {dimension_numbers = #tpu.dot_dimension_numbers<[1], [0], [0], [1], [0, 0, 1, 1], [], []>} : vector<1x32xf32>, vector<32x32xf32>, vector<1x32xf32> -> vector<1x32xf32>
    %460 = arith.addf %459, %458 : vector<1x32xf32>
    %461 = vector.shape_cast %460 : vector<1x32xf32> to vector<1x1x32xf32>
    %462 = vector.shape_cast %461 : vector<1x1x32xf32> to vector<1x1x32xf32>
    %463 = vector.broadcast %462 : vector<1x1x32xf32> to vector<2x1x32xf32>
    %464 = vector.shape_cast %453 : vector<2x8x32xf32> to vector<16x32xf32>
    %c656 = arith.constant 656 : index
    %c0_147 = arith.constant 0 : index
    %465 = vector.load %arg1[%c656, %c0_147] : memref<1104x128xf32, #tpu.memory_space<vmem>>, vector<32x32xf32>
    %c688 = arith.constant 688 : index
    %c0_148 = arith.constant 0 : index
    %466 = vector.load %arg1[%c688, %c0_148] : memref<1104x128xf32, #tpu.memory_space<vmem>>, vector<1x32xf32>
    %cst_149 = arith.constant dense<0.000000e+00> : vector<16x32xf32>
    %467 = tpu.matmul %464, %465, %cst_149 {dimension_numbers = #tpu.dot_dimension_numbers<[1], [0], [0], [1], [0, 0, 1, 1], [], []>} : vector<16x32xf32>, vector<32x32xf32>, vector<16x32xf32> -> vector<16x32xf32>
    %468 = vector.broadcast %466 : vector<1x32xf32> to vector<16x32xf32>
    %469 = arith.addf %467, %468 : vector<16x32xf32>
    %470 = vector.shape_cast %469 : vector<16x32xf32> to vector<2x8x32xf32>
    %c696 = arith.constant 696 : index
    %c0_150 = arith.constant 0 : index
    %471 = vector.load %arg1[%c696, %c0_150] : memref<1104x128xf32, #tpu.memory_space<vmem>>, vector<32x32xf32>
    %c728 = arith.constant 728 : index
    %c0_151 = arith.constant 0 : index
    %472 = vector.load %arg1[%c728, %c0_151] : memref<1104x128xf32, #tpu.memory_space<vmem>>, vector<1x32xf32>
    %cst_152 = arith.constant dense<0.000000e+00> : vector<16x32xf32>
    %473 = tpu.matmul %464, %471, %cst_152 {dimension_numbers = #tpu.dot_dimension_numbers<[1], [0], [0], [1], [0, 0, 1, 1], [], []>} : vector<16x32xf32>, vector<32x32xf32>, vector<16x32xf32> -> vector<16x32xf32>
    %474 = vector.broadcast %472 : vector<1x32xf32> to vector<16x32xf32>
    %475 = arith.addf %473, %474 : vector<16x32xf32>
    %476 = vector.shape_cast %475 : vector<16x32xf32> to vector<2x8x32xf32>
    %cst_153 = arith.constant 0.000000e+00 : f32
    %477 = vector.broadcast %cst_153 : f32 to vector<2x1x32xf32>
    %478 = vector.broadcast %7 : vector<1x1x32xf32> to vector<2x1x32xf32>
    %479 = arith.mulf %463, %478 : vector<2x1x32xf32>
    "tpu.trace_start"() <{level = 10 : i32, message = "bqd,bkd->bqk"}> : () -> ()
    %cst_154 = arith.constant dense<0.000000e+00> : vector<2x1x8xf32>
    %480 = tpu.matmul %479, %470, %cst_154 {dimension_numbers = #tpu.dot_dimension_numbers<[2], [2], [1], [1], [0, 0, 0, 1, 1, 1], [0], [0]>} : vector<2x1x32xf32>, vector<2x8x32xf32>, vector<2x1x8xf32> -> vector<2x1x8xf32>
    "tpu.trace_stop"() : () -> ()
    %cst_155 = arith.constant 0.176776692 : f32
    %481 = vector.broadcast %cst_155 : f32 to vector<2x1x8xf32>
    %482 = arith.mulf %480, %481 : vector<2x1x8xf32>
    %cst_156 = arith.constant dense<0xFF800000> : vector<2x1xf32>
    %483 = vector.multi_reduction <maximumf>, %482, %cst_156 [2] : vector<2x1x8xf32> to vector<2x1xf32>
    %484 = vector.shape_cast %483 : vector<2x1xf32> to vector<2x1x1xf32>
    %485 = vector.broadcast %484 : vector<2x1x1xf32> to vector<2x1x8xf32>
    %486 = arith.subf %482, %485 : vector<2x1x8xf32>
    %487 = math.exp %486 : vector<2x1x8xf32>
    %cst_157 = arith.constant dense<0.000000e+00> : vector<2x1xf32>
    %488 = vector.multi_reduction <add>, %487, %cst_157 [2] : vector<2x1x8xf32> to vector<2x1xf32>
    %489 = vector.shape_cast %488 : vector<2x1xf32> to vector<2x1x1xf32>
    %490 = vector.broadcast %489 : vector<2x1x1xf32> to vector<2x1x8xf32>
    %491 = arith.divf %487, %490 : vector<2x1x8xf32>
    %492 = vector.broadcast %7 : vector<1x1x32xf32> to vector<2x8x32xf32>
    %493 = arith.mulf %476, %492 : vector<2x8x32xf32>
    "tpu.trace_start"() <{level = 10 : i32, message = "bqk,bkd->bqd"}> : () -> ()
    %cst_158 = arith.constant dense<0.000000e+00> : vector<2x1x32xf32>
    %494 = tpu.matmul %491, %493, %cst_158 {dimension_numbers = #tpu.dot_dimension_numbers<[2], [1], [1], [2], [0, 0, 0, 1, 1, 2], [0], [0]>} : vector<2x1x8xf32>, vector<2x8x32xf32>, vector<2x1x32xf32> -> vector<2x1x32xf32>
    "tpu.trace_stop"() : () -> ()
    %495 = arith.addf %477, %494 : vector<2x1x32xf32>
    %496 = vector.broadcast %14 : vector<1x1x32xf32> to vector<2x1x32xf32>
    %497 = arith.mulf %463, %496 : vector<2x1x32xf32>
    "tpu.trace_start"() <{level = 10 : i32, message = "bqd,bkd->bqk"}> : () -> ()
    %cst_159 = arith.constant dense<0.000000e+00> : vector<2x1x8xf32>
    %498 = tpu.matmul %497, %470, %cst_159 {dimension_numbers = #tpu.dot_dimension_numbers<[2], [2], [1], [1], [0, 0, 0, 1, 1, 1], [0], [0]>} : vector<2x1x32xf32>, vector<2x8x32xf32>, vector<2x1x8xf32> -> vector<2x1x8xf32>
    "tpu.trace_stop"() : () -> ()
    %cst_160 = arith.constant 0.176776692 : f32
    %499 = vector.broadcast %cst_160 : f32 to vector<2x1x8xf32>
    %500 = arith.mulf %498, %499 : vector<2x1x8xf32>
    %cst_161 = arith.constant dense<0xFF800000> : vector<2x1xf32>
    %501 = vector.multi_reduction <maximumf>, %500, %cst_161 [2] : vector<2x1x8xf32> to vector<2x1xf32>
    %502 = vector.shape_cast %501 : vector<2x1xf32> to vector<2x1x1xf32>
    %503 = vector.broadcast %502 : vector<2x1x1xf32> to vector<2x1x8xf32>
    %504 = arith.subf %500, %503 : vector<2x1x8xf32>
    %505 = math.exp %504 : vector<2x1x8xf32>
    %cst_162 = arith.constant dense<0.000000e+00> : vector<2x1xf32>
    %506 = vector.multi_reduction <add>, %505, %cst_162 [2] : vector<2x1x8xf32> to vector<2x1xf32>
    %507 = vector.shape_cast %506 : vector<2x1xf32> to vector<2x1x1xf32>
    %508 = vector.broadcast %507 : vector<2x1x1xf32> to vector<2x1x8xf32>
    %509 = arith.divf %505, %508 : vector<2x1x8xf32>
    %510 = vector.broadcast %14 : vector<1x1x32xf32> to vector<2x8x32xf32>
    %511 = arith.mulf %476, %510 : vector<2x8x32xf32>
    "tpu.trace_start"() <{level = 10 : i32, message = "bqk,bkd->bqd"}> : () -> ()
    %cst_163 = arith.constant dense<0.000000e+00> : vector<2x1x32xf32>
    %512 = tpu.matmul %509, %511, %cst_163 {dimension_numbers = #tpu.dot_dimension_numbers<[2], [1], [1], [2], [0, 0, 0, 1, 1, 2], [0], [0]>} : vector<2x1x8xf32>, vector<2x8x32xf32>, vector<2x1x32xf32> -> vector<2x1x32xf32>
    "tpu.trace_stop"() : () -> ()
    %513 = arith.addf %495, %512 : vector<2x1x32xf32>
    %514 = vector.broadcast %21 : vector<1x1x32xf32> to vector<2x1x32xf32>
    %515 = arith.mulf %463, %514 : vector<2x1x32xf32>
    "tpu.trace_start"() <{level = 10 : i32, message = "bqd,bkd->bqk"}> : () -> ()
    %cst_164 = arith.constant dense<0.000000e+00> : vector<2x1x8xf32>
    %516 = tpu.matmul %515, %470, %cst_164 {dimension_numbers = #tpu.dot_dimension_numbers<[2], [2], [1], [1], [0, 0, 0, 1, 1, 1], [0], [0]>} : vector<2x1x32xf32>, vector<2x8x32xf32>, vector<2x1x8xf32> -> vector<2x1x8xf32>
    "tpu.trace_stop"() : () -> ()
    %cst_165 = arith.constant 0.176776692 : f32
    %517 = vector.broadcast %cst_165 : f32 to vector<2x1x8xf32>
    %518 = arith.mulf %516, %517 : vector<2x1x8xf32>
    %cst_166 = arith.constant dense<0xFF800000> : vector<2x1xf32>
    %519 = vector.multi_reduction <maximumf>, %518, %cst_166 [2] : vector<2x1x8xf32> to vector<2x1xf32>
    %520 = vector.shape_cast %519 : vector<2x1xf32> to vector<2x1x1xf32>
    %521 = vector.broadcast %520 : vector<2x1x1xf32> to vector<2x1x8xf32>
    %522 = arith.subf %518, %521 : vector<2x1x8xf32>
    %523 = math.exp %522 : vector<2x1x8xf32>
    %cst_167 = arith.constant dense<0.000000e+00> : vector<2x1xf32>
    %524 = vector.multi_reduction <add>, %523, %cst_167 [2] : vector<2x1x8xf32> to vector<2x1xf32>
    %525 = vector.shape_cast %524 : vector<2x1xf32> to vector<2x1x1xf32>
    %526 = vector.broadcast %525 : vector<2x1x1xf32> to vector<2x1x8xf32>
    %527 = arith.divf %523, %526 : vector<2x1x8xf32>
    %528 = vector.broadcast %21 : vector<1x1x32xf32> to vector<2x8x32xf32>
    %529 = arith.mulf %476, %528 : vector<2x8x32xf32>
    "tpu.trace_start"() <{level = 10 : i32, message = "bqk,bkd->bqd"}> : () -> ()
    %cst_168 = arith.constant dense<0.000000e+00> : vector<2x1x32xf32>
    %530 = tpu.matmul %527, %529, %cst_168 {dimension_numbers = #tpu.dot_dimension_numbers<[2], [1], [1], [2], [0, 0, 0, 1, 1, 2], [0], [0]>} : vector<2x1x8xf32>, vector<2x8x32xf32>, vector<2x1x32xf32> -> vector<2x1x32xf32>
    "tpu.trace_stop"() : () -> ()
    %531 = arith.addf %513, %530 : vector<2x1x32xf32>
    %532 = vector.broadcast %28 : vector<1x1x32xf32> to vector<2x1x32xf32>
    %533 = arith.mulf %463, %532 : vector<2x1x32xf32>
    "tpu.trace_start"() <{level = 10 : i32, message = "bqd,bkd->bqk"}> : () -> ()
    %cst_169 = arith.constant dense<0.000000e+00> : vector<2x1x8xf32>
    %534 = tpu.matmul %533, %470, %cst_169 {dimension_numbers = #tpu.dot_dimension_numbers<[2], [2], [1], [1], [0, 0, 0, 1, 1, 1], [0], [0]>} : vector<2x1x32xf32>, vector<2x8x32xf32>, vector<2x1x8xf32> -> vector<2x1x8xf32>
    "tpu.trace_stop"() : () -> ()
    %cst_170 = arith.constant 0.176776692 : f32
    %535 = vector.broadcast %cst_170 : f32 to vector<2x1x8xf32>
    %536 = arith.mulf %534, %535 : vector<2x1x8xf32>
    %cst_171 = arith.constant dense<0xFF800000> : vector<2x1xf32>
    %537 = vector.multi_reduction <maximumf>, %536, %cst_171 [2] : vector<2x1x8xf32> to vector<2x1xf32>
    %538 = vector.shape_cast %537 : vector<2x1xf32> to vector<2x1x1xf32>
    %539 = vector.broadcast %538 : vector<2x1x1xf32> to vector<2x1x8xf32>
    %540 = arith.subf %536, %539 : vector<2x1x8xf32>
    %541 = math.exp %540 : vector<2x1x8xf32>
    %cst_172 = arith.constant dense<0.000000e+00> : vector<2x1xf32>
    %542 = vector.multi_reduction <add>, %541, %cst_172 [2] : vector<2x1x8xf32> to vector<2x1xf32>
    %543 = vector.shape_cast %542 : vector<2x1xf32> to vector<2x1x1xf32>
    %544 = vector.broadcast %543 : vector<2x1x1xf32> to vector<2x1x8xf32>
    %545 = arith.divf %541, %544 : vector<2x1x8xf32>
    %546 = vector.broadcast %28 : vector<1x1x32xf32> to vector<2x8x32xf32>
    %547 = arith.mulf %476, %546 : vector<2x8x32xf32>
    "tpu.trace_start"() <{level = 10 : i32, message = "bqk,bkd->bqd"}> : () -> ()
    %cst_173 = arith.constant dense<0.000000e+00> : vector<2x1x32xf32>
    %548 = tpu.matmul %545, %547, %cst_173 {dimension_numbers = #tpu.dot_dimension_numbers<[2], [1], [1], [2], [0, 0, 0, 1, 1, 2], [0], [0]>} : vector<2x1x8xf32>, vector<2x8x32xf32>, vector<2x1x32xf32> -> vector<2x1x32xf32>
    "tpu.trace_stop"() : () -> ()
    %549 = arith.addf %531, %548 : vector<2x1x32xf32>
    %550 = arith.addf %463, %549 : vector<2x1x32xf32>
    %551 = vector.shape_cast %550 : vector<2x1x32xf32> to vector<2x32xf32>
    %c736 = arith.constant 736 : index
    %c0_174 = arith.constant 0 : index
    %552 = vector.load %arg1[%c736, %c0_174] : memref<1104x128xf32, #tpu.memory_space<vmem>>, vector<32x32xf32>
    %c768 = arith.constant 768 : index
    %c0_175 = arith.constant 0 : index
    %553 = vector.load %arg1[%c768, %c0_175] : memref<1104x128xf32, #tpu.memory_space<vmem>>, vector<1x32xf32>
    %cst_176 = arith.constant dense<0.000000e+00> : vector<2x32xf32>
    %554 = tpu.matmul %551, %552, %cst_176 {dimension_numbers = #tpu.dot_dimension_numbers<[1], [0], [0], [1], [0, 0, 1, 1], [], []>} : vector<2x32xf32>, vector<32x32xf32>, vector<2x32xf32> -> vector<2x32xf32>
    %555 = vector.broadcast %553 : vector<1x32xf32> to vector<2x32xf32>
    %556 = arith.addf %554, %555 : vector<2x32xf32>
    %cst_177 = arith.constant 0.000000e+00 : f32
    %557 = vector.broadcast %cst_177 : f32 to vector<2x32xf32>
    %558 = arith.maximumf %556, %557 : vector<2x32xf32>
    %559 = vector.shape_cast %558 : vector<2x32xf32> to vector<2x1x32xf32>
    %560 = arith.addf %550, %559 : vector<2x1x32xf32>
    %561 = vector.shape_cast %560 : vector<2x1x32xf32> to vector<2x32xf32>
    %c776 = arith.constant 776 : index
    %c0_178 = arith.constant 0 : index
    %562 = vector.load %arg1[%c776, %c0_178] : memref<1104x128xf32, #tpu.memory_space<vmem>>, vector<32x32xf32>
    %c808 = arith.constant 808 : index
    %c0_179 = arith.constant 0 : index
    %563 = vector.load %arg1[%c808, %c0_179] : memref<1104x128xf32, #tpu.memory_space<vmem>>, vector<1x32xf32>
    %cst_180 = arith.constant dense<0.000000e+00> : vector<2x32xf32>
    %564 = tpu.matmul %561, %562, %cst_180 {dimension_numbers = #tpu.dot_dimension_numbers<[1], [0], [0], [1], [0, 0, 1, 1], [], []>} : vector<2x32xf32>, vector<32x32xf32>, vector<2x32xf32> -> vector<2x32xf32>
    %565 = vector.broadcast %563 : vector<1x32xf32> to vector<2x32xf32>
    %566 = arith.addf %564, %565 : vector<2x32xf32>
    %c816 = arith.constant 816 : index
    %c0_181 = arith.constant 0 : index
    %567 = vector.load %arg1[%c816, %c0_181] : memref<1104x128xf32, #tpu.memory_space<vmem>>, vector<32x32xf32>
    %c848 = arith.constant 848 : index
    %c0_182 = arith.constant 0 : index
    %568 = vector.load %arg1[%c848, %c0_182] : memref<1104x128xf32, #tpu.memory_space<vmem>>, vector<1x32xf32>
    %cst_183 = arith.constant dense<0.000000e+00> : vector<2x32xf32>
    %569 = tpu.matmul %566, %567, %cst_183 {dimension_numbers = #tpu.dot_dimension_numbers<[1], [0], [0], [1], [0, 0, 1, 1], [], []>} : vector<2x32xf32>, vector<32x32xf32>, vector<2x32xf32> -> vector<2x32xf32>
    %570 = vector.broadcast %568 : vector<1x32xf32> to vector<2x32xf32>
    %571 = arith.addf %569, %570 : vector<2x32xf32>
    %cst_184 = arith.constant 0.000000e+00 : f32
    %572 = vector.broadcast %cst_184 : f32 to vector<2x32xf32>
    %573 = arith.maximumf %571, %572 : vector<2x32xf32>
    %c856 = arith.constant 856 : index
    %c0_185 = arith.constant 0 : index
    %574 = vector.load %arg1[%c856, %c0_185] : memref<1104x128xf32, #tpu.memory_space<vmem>>, vector<32x32xf32>
    %c888 = arith.constant 888 : index
    %c0_186 = arith.constant 0 : index
    %575 = vector.load %arg1[%c888, %c0_186] : memref<1104x128xf32, #tpu.memory_space<vmem>>, vector<1x32xf32>
    %cst_187 = arith.constant dense<0.000000e+00> : vector<2x32xf32>
    %576 = tpu.matmul %573, %574, %cst_187 {dimension_numbers = #tpu.dot_dimension_numbers<[1], [0], [0], [1], [0, 0, 1, 1], [], []>} : vector<2x32xf32>, vector<32x32xf32>, vector<2x32xf32> -> vector<2x32xf32>
    %577 = vector.broadcast %575 : vector<1x32xf32> to vector<2x32xf32>
    %578 = arith.addf %576, %577 : vector<2x32xf32>
    %cst_188 = arith.constant 0.000000e+00 : f32
    %579 = vector.broadcast %cst_188 : f32 to vector<2x32xf32>
    %580 = arith.maximumf %578, %579 : vector<2x32xf32>
    %c896 = arith.constant 896 : index
    %c0_189 = arith.constant 0 : index
    %581 = vector.load %arg1[%c896, %c0_189] : memref<1104x128xf32, #tpu.memory_space<vmem>>, vector<32x16xf32>
    %c928 = arith.constant 928 : index
    %c0_190 = arith.constant 0 : index
    %582 = vector.load %arg1[%c928, %c0_190] : memref<1104x128xf32, #tpu.memory_space<vmem>>, vector<1x16xf32>
    %cst_191 = arith.constant dense<0.000000e+00> : vector<2x16xf32>
    %583 = tpu.matmul %580, %581, %cst_191 {dimension_numbers = #tpu.dot_dimension_numbers<[1], [0], [0], [1], [0, 0, 1, 1], [], []>} : vector<2x32xf32>, vector<32x16xf32>, vector<2x16xf32> -> vector<2x16xf32>
    %584 = vector.broadcast %582 : vector<1x16xf32> to vector<2x16xf32>
    %585 = arith.addf %583, %584 : vector<2x16xf32>
    %c936 = arith.constant 936 : index
    %c0_192 = arith.constant 0 : index
    %586 = vector.load %arg1[%c936, %c0_192] : memref<1104x128xf32, #tpu.memory_space<vmem>>, vector<16x16xf32>
    %c952 = arith.constant 952 : index
    %c0_193 = arith.constant 0 : index
    %587 = vector.load %arg1[%c952, %c0_193] : memref<1104x128xf32, #tpu.memory_space<vmem>>, vector<1x16xf32>
    %cst_194 = arith.constant dense<0.000000e+00> : vector<2x16xf32>
    %588 = tpu.matmul %585, %586, %cst_194 {dimension_numbers = #tpu.dot_dimension_numbers<[1], [0], [0], [1], [0, 0, 1, 1], [], []>} : vector<2x16xf32>, vector<16x16xf32>, vector<2x16xf32> -> vector<2x16xf32>
    %589 = vector.broadcast %587 : vector<1x16xf32> to vector<2x16xf32>
    %590 = arith.addf %588, %589 : vector<2x16xf32>
    %cst_195 = arith.constant 0.000000e+00 : f32
    %591 = vector.broadcast %cst_195 : f32 to vector<2x16xf32>
    %592 = arith.maximumf %590, %591 : vector<2x16xf32>
    %c960 = arith.constant 960 : index
    %c0_196 = arith.constant 0 : index
    %593 = vector.load %arg1[%c960, %c0_196] : memref<1104x128xf32, #tpu.memory_space<vmem>>, vector<16x16xf32>
    %c976 = arith.constant 976 : index
    %c0_197 = arith.constant 0 : index
    %594 = vector.load %arg1[%c976, %c0_197] : memref<1104x128xf32, #tpu.memory_space<vmem>>, vector<1x16xf32>
    %cst_198 = arith.constant dense<0.000000e+00> : vector<2x16xf32>
    %595 = tpu.matmul %592, %593, %cst_198 {dimension_numbers = #tpu.dot_dimension_numbers<[1], [0], [0], [1], [0, 0, 1, 1], [], []>} : vector<2x16xf32>, vector<16x16xf32>, vector<2x16xf32> -> vector<2x16xf32>
    %596 = vector.broadcast %594 : vector<1x16xf32> to vector<2x16xf32>
    %597 = arith.addf %595, %596 : vector<2x16xf32>
    %cst_199 = arith.constant 0.000000e+00 : f32
    %598 = vector.broadcast %cst_199 : f32 to vector<2x16xf32>
    %599 = arith.maximumf %597, %598 : vector<2x16xf32>
    %c984 = arith.constant 984 : index
    %c0_200 = arith.constant 0 : index
    %600 = vector.load %arg1[%c984, %c0_200] : memref<1104x128xf32, #tpu.memory_space<vmem>>, vector<16x8xf32>
    %c1000 = arith.constant 1000 : index
    %c0_201 = arith.constant 0 : index
    %601 = vector.load %arg1[%c1000, %c0_201] : memref<1104x128xf32, #tpu.memory_space<vmem>>, vector<1x8xf32>
    %cst_202 = arith.constant dense<0.000000e+00> : vector<2x8xf32>
    %602 = tpu.matmul %599, %600, %cst_202 {dimension_numbers = #tpu.dot_dimension_numbers<[1], [0], [0], [1], [0, 0, 1, 1], [], []>} : vector<2x16xf32>, vector<16x8xf32>, vector<2x8xf32> -> vector<2x8xf32>
    %603 = vector.broadcast %601 : vector<1x8xf32> to vector<2x8xf32>
    %604 = arith.addf %602, %603 : vector<2x8xf32>
    %c1008 = arith.constant 1008 : index
    %c0_203 = arith.constant 0 : index
    %605 = vector.load %arg1[%c1008, %c0_203] : memref<1104x128xf32, #tpu.memory_space<vmem>>, vector<8x8xf32>
    %c1016 = arith.constant 1016 : index
    %c0_204 = arith.constant 0 : index
    %606 = vector.load %arg1[%c1016, %c0_204] : memref<1104x128xf32, #tpu.memory_space<vmem>>, vector<1x8xf32>
    %cst_205 = arith.constant dense<0.000000e+00> : vector<2x8xf32>
    %607 = tpu.matmul %604, %605, %cst_205 {dimension_numbers = #tpu.dot_dimension_numbers<[1], [0], [0], [1], [0, 0, 1, 1], [], []>} : vector<2x8xf32>, vector<8x8xf32>, vector<2x8xf32> -> vector<2x8xf32>
    %608 = vector.broadcast %606 : vector<1x8xf32> to vector<2x8xf32>
    %609 = arith.addf %607, %608 : vector<2x8xf32>
    %cst_206 = arith.constant 0.000000e+00 : f32
    %610 = vector.broadcast %cst_206 : f32 to vector<2x8xf32>
    %611 = arith.maximumf %609, %610 : vector<2x8xf32>
    %c1024 = arith.constant 1024 : index
    %c0_207 = arith.constant 0 : index
    %612 = vector.load %arg1[%c1024, %c0_207] : memref<1104x128xf32, #tpu.memory_space<vmem>>, vector<8x8xf32>
    %c1032 = arith.constant 1032 : index
    %c0_208 = arith.constant 0 : index
    %613 = vector.load %arg1[%c1032, %c0_208] : memref<1104x128xf32, #tpu.memory_space<vmem>>, vector<1x8xf32>
    %cst_209 = arith.constant dense<0.000000e+00> : vector<2x8xf32>
    %614 = tpu.matmul %611, %612, %cst_209 {dimension_numbers = #tpu.dot_dimension_numbers<[1], [0], [0], [1], [0, 0, 1, 1], [], []>} : vector<2x8xf32>, vector<8x8xf32>, vector<2x8xf32> -> vector<2x8xf32>
    %615 = vector.broadcast %613 : vector<1x8xf32> to vector<2x8xf32>
    %616 = arith.addf %614, %615 : vector<2x8xf32>
    %cst_210 = arith.constant 0.000000e+00 : f32
    %617 = vector.broadcast %cst_210 : f32 to vector<2x8xf32>
    %618 = arith.maximumf %616, %617 : vector<2x8xf32>
    %c1040 = arith.constant 1040 : index
    %c0_211 = arith.constant 0 : index
    %619 = vector.load %arg1[%c1040, %c0_211] : memref<1104x128xf32, #tpu.memory_space<vmem>>, vector<8x4xf32>
    %c1048 = arith.constant 1048 : index
    %c0_212 = arith.constant 0 : index
    %620 = vector.load %arg1[%c1048, %c0_212] : memref<1104x128xf32, #tpu.memory_space<vmem>>, vector<1x4xf32>
    %cst_213 = arith.constant dense<0.000000e+00> : vector<2x4xf32>
    %621 = tpu.matmul %618, %619, %cst_213 {dimension_numbers = #tpu.dot_dimension_numbers<[1], [0], [0], [1], [0, 0, 1, 1], [], []>} : vector<2x8xf32>, vector<8x4xf32>, vector<2x4xf32> -> vector<2x4xf32>
    %622 = vector.broadcast %620 : vector<1x4xf32> to vector<2x4xf32>
    %623 = arith.addf %621, %622 : vector<2x4xf32>
    %c1056 = arith.constant 1056 : index
    %c0_214 = arith.constant 0 : index
    %624 = vector.load %arg1[%c1056, %c0_214] : memref<1104x128xf32, #tpu.memory_space<vmem>>, vector<4x4xf32>
    %c1064 = arith.constant 1064 : index
    %c0_215 = arith.constant 0 : index
    %625 = vector.load %arg1[%c1064, %c0_215] : memref<1104x128xf32, #tpu.memory_space<vmem>>, vector<1x4xf32>
    %cst_216 = arith.constant dense<0.000000e+00> : vector<2x4xf32>
    %626 = tpu.matmul %623, %624, %cst_216 {dimension_numbers = #tpu.dot_dimension_numbers<[1], [0], [0], [1], [0, 0, 1, 1], [], []>} : vector<2x4xf32>, vector<4x4xf32>, vector<2x4xf32> -> vector<2x4xf32>
    %627 = vector.broadcast %625 : vector<1x4xf32> to vector<2x4xf32>
    %628 = arith.addf %626, %627 : vector<2x4xf32>
    %cst_217 = arith.constant 0.000000e+00 : f32
    %629 = vector.broadcast %cst_217 : f32 to vector<2x4xf32>
    %630 = arith.maximumf %628, %629 : vector<2x4xf32>
    %c1072 = arith.constant 1072 : index
    %c0_218 = arith.constant 0 : index
    %631 = vector.load %arg1[%c1072, %c0_218] : memref<1104x128xf32, #tpu.memory_space<vmem>>, vector<4x4xf32>
    %c1080 = arith.constant 1080 : index
    %c0_219 = arith.constant 0 : index
    %632 = vector.load %arg1[%c1080, %c0_219] : memref<1104x128xf32, #tpu.memory_space<vmem>>, vector<1x4xf32>
    %cst_220 = arith.constant dense<0.000000e+00> : vector<2x4xf32>
    %633 = tpu.matmul %630, %631, %cst_220 {dimension_numbers = #tpu.dot_dimension_numbers<[1], [0], [0], [1], [0, 0, 1, 1], [], []>} : vector<2x4xf32>, vector<4x4xf32>, vector<2x4xf32> -> vector<2x4xf32>
    %634 = vector.broadcast %632 : vector<1x4xf32> to vector<2x4xf32>
    %635 = arith.addf %633, %634 : vector<2x4xf32>
    %cst_221 = arith.constant 0.000000e+00 : f32
    %636 = vector.broadcast %cst_221 : f32 to vector<2x4xf32>
    %637 = arith.maximumf %635, %636 : vector<2x4xf32>
    %c1088 = arith.constant 1088 : index
    %c0_222 = arith.constant 0 : index
    %638 = vector.load %arg1[%c1088, %c0_222] : memref<1104x128xf32, #tpu.memory_space<vmem>>, vector<4x1xf32>
    %c1096 = arith.constant 1096 : index
    %c0_223 = arith.constant 0 : index
    %639 = vector.load %arg1[%c1096, %c0_223] : memref<1104x128xf32, #tpu.memory_space<vmem>>, vector<1x1xf32>
    %cst_224 = arith.constant dense<0.000000e+00> : vector<2x1xf32>
    %640 = tpu.matmul %637, %638, %cst_224 {dimension_numbers = #tpu.dot_dimension_numbers<[1], [0], [0], [1], [0, 0, 1, 1], [], []>} : vector<2x4xf32>, vector<4x1xf32>, vector<2x1xf32> -> vector<2x1xf32>
    %641 = vector.broadcast %639 : vector<1x1xf32> to vector<2x1xf32>
    %642 = arith.addf %640, %641 : vector<2x1xf32>
    %643 = arith.negf %642 : vector<2x1xf32>
    %644 = math.exp %643 : vector<2x1xf32>
    %cst_225 = arith.constant 1.000000e+00 : f32
    %645 = vector.broadcast %cst_225 : f32 to vector<2x1xf32>
    %646 = arith.addf %645, %644 : vector<2x1xf32>
    %647 = arith.divf %645, %646 : vector<2x1xf32>
    %c0_226 = arith.constant 0 : index
    %c0_227 = arith.constant 0 : index
    %648 = vector.load %arg2[%c0_226, %c0_227] : memref<2x1xf32, #tpu.memory_space<vmem>>, vector<2x1xf32>
    tpu.vector_store %arg2[%c0_226, %c0_227], %647 {strides = array<i32>} : memref<2x1xf32, #tpu.memory_space<vmem>>, vector<2x1xf32>,
    return
  }
}

</mosaic_0001>

<bundles_post_ra>
// kernel: approximanet_res_forward.1
= control target key start
LH: loop header
LB: loop body
LE: loop exit
PB: predicated region body
PF: predicated region fallthrough
CT: control target
= control target key end

     0   :  { %7 = vsyncpa [#allocation3], 0  ;;  %s11826_s0 = inlined_call_operand.hbm [shape: f32[2,8,16], index: 0, kind: input, shape index: {}]   ;;  %s11827_s1 = inlined_call_operand.hbm [shape: f32[1104,128], index: 1, kind: input, shape index: {}]   ;;  %s11828_s2 = inlined_call_operand.vmem [shape: f32[2,1], index: 2, kind: output, shape index: {}]  }
   0x1   :  { %8 = vsyncpa [#allocation5], 0  ;;  %s10940_s9 = smov [#allocation2]   ;;  %s10892_s13 = scalar_lea.hbm %s11826_s0, 256 }
   0x2   :  { %s14_s10 = sshll.u32 %s10940_s9, 4  ;;  %p10893_p0 = scmp.ne.s32.totalorder %s11826_s0, %s10892_s13  ;;  %s15_s10 = int_to_ptr.vmem [resolvable:$true] %s14_s10 }
   0x3   :  { %p10896_p1 = scmp.lt.u32.totalorder %s10892_s13, %s11826_s0 }
   0x5   :  { %p10898_p2 = pnand %p10896_p1, %p10893_p0 }
   0x7   :  { %10901 = shalt.err (!%p10898_p2)
}
   0x8   :  { %s10902_s18 = scalar_lea.vmem %s15_s10, 256  ;;  %p10907_p4 = scmp.lt.s32.totalorder %s15_s10, %s15_s10 }
   0x9   :  { %p10903_p3 = scmp.ne.s32.totalorder %s15_s10, %s10902_s18  ;;  %p10908_p5 = scmp.lt.s32.totalorder %s10902_s18, %s10902_s18 }
   0xb   :  { %p10909_p6 = por %p10908_p5, %p10907_p4 }
   0xd   :  { %p10910_p7 = pnand %p10909_p6, %p10903_p3 }
   0xf   :  { %10913 = shalt.err (!%p10910_p7)
}
  0x10   :  { %s10941_s19 = smov 128   ;;  %s10942_s20 = smov 8  }
  0x11   :  { %20 = dma.hbm_to_vmem [thread:$0]  %s11826_s0, 256, %s15_s10, [#allocation3], %s10941_s19, %s10941_s19, %s10942_s20  }
  0x12   :  { %s10943_s23 = smov [#allocation4]   ;;  %s10914_s27 = scalar_lea.hbm %s11827_s1, 17664 }
  0x13   :  { %s26_s24 = sshll.u32 %s10943_s23, 4  ;;  %p10915_p8 = scmp.ne.s32.totalorder %s11827_s1, %s10914_s27  ;;  %s27_s24 = int_to_ptr.vmem [resolvable:$true] %s26_s24 }
  0x14   :  { %p10918_p9 = scmp.lt.u32.totalorder %s10914_s27, %s11827_s1 }
  0x16   :  { %p10920_p10 = pnand %p10918_p9, %p10915_p8 }
  0x18   :  { %10923 = shalt.err (!%p10920_p10)
}
  0x19   :  { %s10924_s4 = scalar_lea.vmem %s27_s24, 17664  ;;  %p10929_p12 = scmp.lt.s32.totalorder %s27_s24, %s27_s24 }
  0x1a   :  { %p10925_p11 = scmp.ne.s32.totalorder %s27_s24, %s10924_s4  ;;  %p10930_p13 = scmp.lt.s32.totalorder %s10924_s4, %s10924_s4 }
  0x1c   :  { %p10931_p0 = por %p10930_p13, %p10929_p12 }
  0x1e   :  { %p10932_p1 = pnand %p10931_p0, %p10925_p11 }
  0x20   :  { %10935 = shalt.err (!%p10932_p1)
}
  0x21   :  { %32 = dma.hbm_to_vmem [thread:$0]  %s11827_s1, 17664, %s27_s24, [#allocation5], %s10941_s19, %s10941_s19, %s10942_s20  }
  0x22   :  { %10936 = dma.done.wait [#allocation3], 256  }
  0x23   :  { %10937 = vsyncadd [#allocation3], 4294967040 }
  0x24   :  { %10938 = dma.done.wait [#allocation5], 17664  }
  0x25   :  { %10939 = vsyncadd [#allocation5], 4294949632  ;;  %v10944_v0 = vmov 0.0|0.0   ;;  %vm10945_vm0 = vmmov 0   ;;  %v10946_v1 = vmov 0.0   ;;  %vm154_vm1 = vcmask 130048  }
  0x26   :  { %10547 = vmatprep.subr.bf16.mxu0 %v10944_v0  ;;  %9852 = vmatprep.mubr.msk.f32.mxu0 %vm10945_vm0, %v10946_v1  ;;  %v64_v2 = vld [vmem:[#allocation4 + $0x8] sm:$0xff]  ;;  %v65_v3 = vld [vmem:[#allocation4 + $0x10] sm:$0xff]  ;;  %v148_v6 = vld [vmem:[#allocation4 + $0x38] sm:$0xff]  ;;  %vm73_vm2 = vcmask 261120   ;;  %v39_v17 = vlaneseq  ;;  %vm470_vm7 = vcmask 64512   ;;  %vm7007_vm14 = vcmask 57344  }
  0x27   :  { %v147_v4 = vld [vmem:[#allocation4 + $0x30] sm:$0xff]  ;;  %v10548_v5 = vpack.c.bf16 %v65_v3, %v64_v2  ;;  %v66_v8 = vld [vmem:[#allocation4 + $0x18] sm:$0xff]  ;;  %v67_v10 = vld [vmem:[#allocation4 + $0x20] sm:$0xff]  ;;  %vm8144_vm15 = vcmask 1041409  }
  0x28   :  { %v10990_v7 = vld [vmem:[#allocation2] sm:$0xff]  ;;  %v10553_v9 = vpack.c.bf16 %v148_v6, %v147_v4  ;;  %v10551_v11 = vpack.c.bf16 %v67_v10, %v66_v8  ;;  %v236_v12 = vld [vmem:[#allocation4 + $0x48] sm:$0xff]  ;;  %v10995_v15 = vld [vmem:[#allocation2 + $0x8] sm:$0xff]  ;;  %v11011_v18 = vand.u32 127, %v39_v17 }
  0x29   :  { %9859 = vmatprep.mubr.msk.f32.mxu1 %vm154_vm1, %v10990_v7  ;;  %10549 = vmatpush3.bf16.msra.mxu0 %v10548_v5  ;;  %v237_v13 = vld [vmem:[#allocation4 + $0x50] sm:$0xff]  ;;  %v63_v16 = vld [vmem:[#allocation4] sm:$0xff]  ;;  %v9328_v21 = vld [vmem:[#allocation4 + $0x28] ss:$0 sm:$0xff] }
  0x2a   :  { %10554 = vmatprep.subr.bf16.mxu1 %v10553_v9  ;;  %10550 = vmatprep.subr.bf16.mxu0 %v10944_v0  ;;  %v10557_v14 = vpack.c.bf16 %v237_v13, %v236_v12  ;;  %v9330_v19 = vld [vmem:[#allocation4 + $0x40] ss:$0 sm:$0xff]  ;;  %vm42_vm3 = vcmp.lt.s32.totalorder %v11011_v18, 8  ;;  %vm46_vm4 = vcmp.ge.s32.totalorder %v11011_v18, 8  ;;  %vm47_vm5 = vcmp.lt.s32.totalorder %v11011_v18, 16 }
  0x2b   :  { %10556 = vmatpush3.bf16.msra.mxu1 %v10553_v9  ;;  %v11021_v26 = vsel %vm42_vm3, 1.0, %v10946_v1  ;;  %vm48_vm6 = vmand %vm46_vm4, %vm47_vm5  ;;  %v9333_v34 = vld [vmem:[#allocation4 + $0x58] ss:$0 sm:$0xff]  ;;  %vm51_vm8 = vcmp.ge.s32.totalorder %v11011_v18, 16  ;;  %vm52_vm9 = vcmp.lt.s32.totalorder %v11011_v18, 24  ;;  %vm56_vm11 = vcmp.ge.s32.totalorder %v11011_v18, 24 }
  0x2c   :  { %10558 = vmatprep.subr.bf16.mxu1 %v10557_v14  ;;  %v11034_v32 = vsel %vm48_vm6, 1.0, %v10946_v1  ;;  %vm53_vm10 = vmand %vm51_vm8, %vm52_vm9  ;;  %vm57_vm12 = vcmp.lt.s32.totalorder %v11011_v18, 32 }
  0x2d   :  { %10552 = vmatpush3.bf16.msra.mxu0 %v10551_v11  ;;  %vm58_vm13 = vmand %vm56_vm11, %vm57_vm12 }
  0x2e   :  { %9860 = vmatmul.mubr.msk.f32.vlgmr.msra.gmra.mrb[0].mxu1 %vm154_vm1, %v10995_v15  ;;  %9869 = vmatprep.subr.mxu0 %v10946_v1 }
  0x2f   :  { %10560 = vmatpush3.bf16.msra.mxu1 %v10557_v14  ;;  %9866 = vmatprep.mubr.msk.f32.mxu1 %vm154_vm1, %v10990_v7 }
  0x30   :  { %9853 = vmatmul.mubr.msk.f32.vlgmr.msra.gmra.mrb[0].mxu0 %vm73_vm2, %v63_v16  ;;  %9874 = vmatprep.subr.mxu1 %v10946_v1 }
  0x31   :  { %9871 = vmatprep.mubr.msk.f32.mxu0 %vm10945_vm0, %v10946_v1 }
  0x32   :  { %9867 = vmatmul.mubr.msk.f32.vlgmr.msra.gmra.mrb[2].mxu1 %vm154_vm1, %v10995_v15 }
  0x33   :  { %9876 = vmatprep.mubr.msk.f32.mxu1 %vm10945_vm0, %v10946_v1 }
 0x101   :  { %v9861_v20 = vpop.f32.mrb[0].mxu1 }
 0x102   :  { %v11016_v22 = vadd.f32 %v9861_v20, %v9330_v19  ;;  %v227_v23 = vpop.f32.mrb[1].mxu1 }
 0x103   :  { %v11018_v24 = vadd.f32 %v9330_v19, %v227_v23  ;;  %v143_v25 = vpop.f32.mrb[0].mxu0 }
 0x104   :  { %v11023_v27 = vadd.f32 %v9328_v21, %v143_v25  ;;  %v9854_v28 = vpop.f32.mrb[1].mxu0  ;;  %9875 = vmatpush3.xpose.msk.msra.mxu1 %vm73_vm2, %v11016_v22 }
 0x105   :  { %9870 = vmatpush3.xpose.msk.msra.mxu0 %vm73_vm2, %v11018_v24  ;;  %9884 = vmatprep.subr.mxu1 %v10946_v1  ;;  %v9868_v29 = vpop.f32.mrb[2].mxu1 }
 0x106   :  { %9879 = vmatprep.subr.mxu0 %v10946_v1  ;;  %v318_v30 = vmul.f32 %v11021_v26, %v11023_v27  ;;  %v309_v31 = vpop.f32.mrb[3].mxu1  ;;  %v495_v33 = vmul.f32 %v11034_v32, %v11023_v27  ;;  %v11056_v35 = vadd.f32 %v9868_v29, %v9333_v34 }
 0x107   :  { %v11058_v36 = vadd.f32 %v9333_v34, %v309_v31 }
 0x108   :  { %9872 = vmatmul.mubr.msk.f32.vlgmr.msra.gmra.mrb[2].mxu0 %vm73_vm2, %v318_v30  ;;  %9877 = vmatmul.mubr.msk.f32.vlgmr.msra.gmra.mrb[4].mxu1 %vm73_vm2, %v318_v30  ;;  %v664_v38 = vmul.f32 %v11034_v32, %v11056_v35 }
 0x109   :  { %9880 = vmatpush3.xpose.msk.msra.mxu0 %vm73_vm2, %v11018_v24  ;;  %9885 = vmatpush3.xpose.msk.msra.mxu1 %vm73_vm2, %v11016_v22  ;;  %v663_v37 = vmul.f32 %v11034_v32, %v11058_v36  ;;  %v493_v25 = vmul.f32 %v11021_v26, %v11058_v36 }
 0x10a   :  { %9881 = vmatprep.mubr.msk.f32.mxu0 %vm10945_vm0, %v10946_v1  ;;  %9886 = vmatprep.mubr.msk.f32.mxu1 %vm10945_vm0, %v10946_v1 }
 0x10b   :  { %9889 = vmatprep.subr.mxu0 %v10946_v1  ;;  %9894 = vmatprep.subr.mxu1 %v10946_v1 }
 0x10c   :  { %9882 = vmatmul.mubr.msk.f32.vlgmr.msra.gmra.mrb[4].mxu0 %vm73_vm2, %v495_v33  ;;  %9887 = vmatmul.mubr.msk.f32.vlgmr.msra.gmra.mrb[6].mxu1 %vm73_vm2, %v495_v33  ;;  %v494_v33 = vmul.f32 %v11021_v26, %v11056_v35 }
 0x10d   :  { %9891 = vmatprep.mubr.msk.f32.mxu0 %vm10945_vm0, %v10946_v1  ;;  %9896 = vmatprep.mubr.msk.f32.mxu1 %vm10945_vm0, %v10946_v1 }
 0x10e   :  { %9890 = vmatpush3.msra.mxu0 %v663_v37  ;;  %9895 = vmatpush3.msra.mxu1 %v664_v38  ;;  %v11091_v38 = vsel %vm53_vm10, 1.0, %v10946_v1 }
 0x10f   :  { %9899 = vmatprep.subr.mxu0 %v10946_v1  ;;  %9904 = vmatprep.subr.mxu1 %v10946_v1 }
 0x1db   :  { %v391_v39 = vpop.f32.mrb[2].mxu0  ;;  %v464_v40 = vpop.f32.mrb[4].mxu1 }
 0x1dc   :  { %v468_v41 = vmul.f32 0.17677669, %v391_v39  ;;  %v9873_v42 = vpop.f32.mrb[3].mxu0  ;;  %v9878_v43 = vpop.f32.mrb[5].mxu1  ;;  %v469_v44 = vmul.f32 0.17677669, %v464_v40  ;;  %v957_v39 = vmul.f32 %v11091_v38, %v11023_v27  ;;  %v1125_v40 = vmul.f32 %v11091_v38, %v11058_v36 }
 0x1de   :  { %v471_v45 = vsel %vm470_vm7, %v468_v41, -inf  ;;  %v474_v52 = vsel %vm470_vm7, %v469_v44, -inf }
 0x1df   :  { %v635_v46 = vpop.f32.mrb[6].mxu1  ;;  %472 = vmax.xlane.f32.xlu1 %v471_v45  ;;  %v565_v47 = vpop.f32.mrb[4].mxu0 }
 0x1e0   :  { %v639_v48 = vmul.f32 0.17677669, %v565_v47  ;;  %v9883_v49 = vpop.f32.mrb[5].mxu0  ;;  %v9888_v50 = vpop.f32.mrb[7].mxu1  ;;  %v640_v51 = vmul.f32 0.17677669, %v635_v46 }
 0x1e2   :  { %v641_v53 = vsel %vm470_vm7, %v639_v48, -inf  ;;  %v644_v54 = vsel %vm470_vm7, %v640_v51, -inf }
 0x1e3   :  { %475 = vmax.xlane.f32.xlu1 %v474_v52  ;;  %642 = vmax.xlane.f32.xlu0 %v641_v53 }
 0x1e7   :  { %645 = vmax.xlane.f32.xlu0 %v644_v54 }
 0x26c   :  { %v473_v55 = vpop.xlane.xlu1 %472 }
 0x26d   :  { %v477_v56 = vsub.f32 %v468_v41, %v473_v55  ;;  %v1126_v41 = vmul.f32 %v11091_v38, %v11056_v35 }
 0x26f   :  { %v479_v62 = vmul.f32 1.442695, %v477_v56 }
 0x270   :  { %v476_v57 = vpop.xlane.xlu1 %475  ;;  %v643_v58 = vpop.xlane.xlu0 %642 }
 0x271   :  { %v647_v59 = vsub.f32 %v639_v48, %v643_v58  ;;  %v478_v60 = vsub.f32 %v469_v44, %v476_v57 }
 0x273   :  { %v649_v61 = vmul.f32 1.442695, %v647_v59  ;;  %v481_v3 = vmul.f32 1.442695, %v478_v60 }
 0x274   :  { %v646_v63 = vpop.xlane.xlu0 %645 }
 0x275   :  { %v648_v2 = vsub.f32 %v640_v51, %v646_v63  ;;  %10728 = vpow2.f32 %v649_v61 }
 0x276   :  { %10730 = vpow2.f32 %v479_v62 }
 0x277   :  { %v651_v4 = vmul.f32 1.442695, %v648_v2 }
 0x279   :  { %10732 = vpow2.f32 %v651_v4 }
 0x27a   :  { %10734 = vpow2.f32 %v481_v3 }
 0x27f   :  { %v10729_v5 = vpop.eup %10728 }
 0x280   :  { %v653_v6 = vsel %vm470_vm7, %v10729_v5, 0.0  ;;  %v10731_v8 = vpop.eup %10730 }
 0x281   :  { %654 = vadd.xlane.f32.xlu0 %v653_v6  ;;  %v483_v12 = vsel %vm470_vm7, %v10731_v8, 0.0 }
 0x283   :  { %v10733_v9 = vpop.eup %10732 }
 0x284   :  { %v656_v10 = vsel %vm470_vm7, %v10733_v9, 0.0  ;;  %v10735_v11 = vpop.eup %10734 }
 0x285   :  { %657 = vadd.xlane.f32.xlu1 %v656_v10  ;;  %484 = vadd.xlane.f32.xlu0 %v483_v12  ;;  %v486_v13 = vsel %vm470_vm7, %v10735_v11, 0.0 }
 0x289   :  { %487 = vadd.xlane.f32.xlu1 %v486_v13  ;;  %v11124_v13 = vsel %vm58_vm13, 1.0, %v10946_v1 }
 0x28a   :  { %v1275_v18 = vmul.f32 %v11124_v13, %v11023_v27 }
 0x30e   :  { %v655_v14 = vpop.xlane.xlu0 %654 }
 0x30f   :  { %10736 = vrcp.f32 %v655_v14 }
 0x312   :  { %v658_v16 = vpop.xlane.xlu1 %657  ;;  %v485_v19 = vpop.xlane.xlu0 %484 }
 0x313   :  { %10738 = vrcp.f32 %v658_v16 }
 0x314   :  { %10740 = vrcp.f32 %v485_v19  ;;  %v1443_v19 = vmul.f32 %v11124_v13, %v11058_v36 }
 0x316   :  { %v488_v20 = vpop.xlane.xlu1 %487 }
 0x317   :  { %10742 = vrcp.f32 %v488_v20 }
 0x319   :  { %v10737_v21 = vpop.eup %10736 }
 0x31a   :  { %v660_v23 = vmul.f32 %v10737_v21, %v10729_v5 }
 0x31c   :  { %9892 = vmatmul.mubr.msk.f32.vlgmr.msra.gmra.mrb[6].mxu0 %vm470_vm7, %v660_v23 }
 0x31d   :  { %v10739_v28 = vpop.eup %10738  ;;  %9900 = vmatpush3.msra.mxu0 %v493_v25  ;;  %9901 = vmatprep.mubr.msk.f32.mxu0 %vm10945_vm0, %v10946_v1 }
 0x31e   :  { %v10741_v29 = vpop.eup %10740  ;;  %v662_v30 = vmul.f32 %v10739_v28, %v10733_v9  ;;  %9909 = vmatprep.subr.mxu0 %v10946_v1 }
 0x31f   :  { %v490_v31 = vmul.f32 %v10741_v29, %v10731_v8 }
 0x320   :  { %9897 = vmatmul.mubr.msk.f32.vlgmr.msra.gmra.mrb[8].mxu1 %vm470_vm7, %v662_v30 }
 0x321   :  { %v10743_v34 = vpop.eup %10742  ;;  %9902 = vmatmul.mubr.msk.f32.vlgmr.msra.gmra.mrb[8].mxu0 %vm470_vm7, %v490_v31  ;;  %9905 = vmatpush3.msra.mxu1 %v494_v33 }
 0x322   :  { %v492_v37 = vmul.f32 %v10743_v34, %v10735_v11  ;;  %9906 = vmatprep.mubr.msk.f32.mxu1 %vm10945_vm0, %v10946_v1  ;;  %9911 = vmatprep.mubr.msk.f32.mxu0 %vm10945_vm0, %v10946_v1 }
 0x323   :  { %9914 = vmatprep.subr.mxu1 %v10946_v1 }
 0x324   :  { %9907 = vmatmul.mubr.msk.f32.vlgmr.msra.gmra.mrb[10].mxu1 %vm470_vm7, %v492_v37  ;;  %9910 = vmatpush3.xpose.msk.msra.mxu0 %vm73_vm2, %v11018_v24 }
 0x325   :  { %9916 = vmatprep.mubr.msk.f32.mxu1 %vm10945_vm0, %v10946_v1  ;;  %9919 = vmatprep.subr.mxu0 %v10946_v1 }
 0x327   :  { %9912 = vmatmul.mubr.msk.f32.vlgmr.msra.gmra.mrb[10].mxu0 %vm73_vm2, %v957_v39 }
 0x328   :  { %9915 = vmatpush3.xpose.msk.msra.mxu1 %vm73_vm2, %v11016_v22  ;;  %9920 = vmatpush3.msra.mxu0 %v1125_v40 }
 0x329   :  { %9924 = vmatprep.subr.mxu1 %v10946_v1  ;;  %9921 = vmatprep.mubr.msk.f32.mxu0 %vm10945_vm0, %v10946_v1 }
 0x32a   :  { %9929 = vmatprep.subr.mxu0 %v10946_v1 }
 0x32b   :  { %9917 = vmatmul.mubr.msk.f32.vlgmr.msra.gmra.mrb[12].mxu1 %vm73_vm2, %v957_v39 }
 0x32c   :  { %9925 = vmatpush3.msra.mxu1 %v1126_v41  ;;  %9926 = vmatprep.mubr.msk.f32.mxu1 %vm10945_vm0, %v10946_v1 }
 0x32d   :  { %9934 = vmatprep.subr.mxu1 %v10946_v1 }
 0x3ef   :  { %v734_v42 = vpop.f32.mrb[6].mxu0 }
 0x3f0   :  { %v9893_v43 = vpop.f32.mrb[7].mxu0 }
 0x3f3   :  { %v807_v44 = vpop.f32.mrb[8].mxu1 }
 0x3f4   :  { %v880_v45 = vpop.f32.mrb[8].mxu0  ;;  %v9898_v46 = vpop.f32.mrb[9].mxu1 }
 0x3f5   :  { %v881_v47 = vadd.f32 %v880_v45, %v734_v42  ;;  %v9903_v48 = vpop.f32.mrb[9].mxu0 }
 0x3f7   :  { %v953_v49 = vpop.f32.mrb[10].mxu1 }
 0x3f8   :  { %v954_v50 = vadd.f32 %v953_v49, %v807_v44  ;;  %v9908_v51 = vpop.f32.mrb[11].mxu1 }
 0x3fa   :  { %v1027_v52 = vpop.f32.mrb[10].mxu0 }
 0x3fb   :  { %v1101_v53 = vmul.f32 0.17677669, %v1027_v52  ;;  %v9913_v54 = vpop.f32.mrb[11].mxu0 }
 0x3fd   :  { %v1103_v56 = vsel %vm470_vm7, %v1101_v53, -inf }
 0x3fe   :  { %v1097_v55 = vpop.f32.mrb[12].mxu1  ;;  %1104 = vmax.xlane.f32.xlu0 %v1103_v56  ;;  %v1596_v56 = vld [vmem:[#allocation4 + $0x68] sm:$0xff] }
 0x3ff   :  { %v1102_v57 = vmul.f32 0.17677669, %v1097_v55  ;;  %v9918_v58 = vpop.f32.mrb[13].mxu1  ;;  %v1595_v55 = vld [vmem:[#allocation4 + $0x60] sm:$0xff] }
 0x400   :  { %v1597_v58 = vld [vmem:[#allocation4 + $0x70] sm:$0xff] }
 0x401   :  { %v1106_v59 = vsel %vm470_vm7, %v1102_v57, -inf }
 0x402   :  { %1107 = vmax.xlane.f32.xlu1 %v1106_v59  ;;  %v1598_v59 = vld [vmem:[#allocation4 + $0x78] sm:$0xff] }
 0x48b   :  { %v1105_v60 = vpop.xlane.xlu0 %1104 }
 0x48c   :  { %v1109_v61 = vsub.f32 %v1101_v53, %v1105_v60  ;;  %v10565_v60 = vpack.c.bf16 %v1598_v59, %v1597_v58 }
 0x48e   :  { %v1111_v62 = vmul.f32 1.442695, %v1109_v61  ;;  %v1689_v61 = vld [vmem:[#allocation4 + $0x88] sm:$0xff] }
 0x48f   :  { %v1108_v63 = vpop.xlane.xlu1 %1107 }
 0x490   :  { %v1110_v2 = vsub.f32 %v1102_v57, %v1108_v63  ;;  %10744 = vpow2.f32 %v1111_v62  ;;  %v10561_v57 = vpack.c.bf16 %v1596_v56, %v1595_v55  ;;  %v1690_v62 = vld [vmem:[#allocation4 + $0x90] sm:$0xff] }
 0x491   :  { %v10569_v63 = vpack.c.bf16 %v1690_v62, %v1689_v61 }
 0x492   :  { %v1113_v3 = vmul.f32 1.442695, %v1110_v2 }
 0x494   :  { %10746 = vpow2.f32 %v1113_v3 }
 0x49a   :  { %v10745_v4 = vpop.eup %10744 }
 0x49b   :  { %v1115_v5 = vsel %vm470_vm7, %v10745_v4, 0.0 }
 0x49c   :  { %1116 = vadd.xlane.f32.xlu0 %v1115_v5 }
 0x49e   :  { %v10747_v6 = vpop.eup %10746 }
 0x49f   :  { %v1118_v8 = vsel %vm470_vm7, %v10747_v6, 0.0 }
 0x4a0   :  { %1119 = vadd.xlane.f32.xlu1 %v1118_v8 }
 0x529   :  { %v1117_v9 = vpop.xlane.xlu0 %1116 }
 0x52a   :  { %10748 = vrcp.f32 %v1117_v9 }
 0x52d   :  { %v1120_v10 = vpop.xlane.xlu1 %1119 }
 0x52e   :  { %10750 = vrcp.f32 %v1120_v10  ;;  %v1771_v10 = vld [vmem:[#allocation4 + $0xa0] sm:$0xff] }
 0x534   :  { %v10749_v11 = vpop.eup %10748 }
 0x535   :  { %v1122_v12 = vmul.f32 %v10749_v11, %v10745_v4  ;;  %v1772_v11 = vld [vmem:[#allocation4 + $0xa8] sm:$0xff] }
 0x537   :  { %9922 = vmatmul.mubr.msk.f32.vlgmr.msra.gmra.mrb[12].mxu0 %vm470_vm7, %v1122_v12  ;;  %v10573_v12 = vpack.c.bf16 %v1772_v11, %v1771_v10 }
 0x538   :  { %v10751_v14 = vpop.eup %10750  ;;  %9930 = vmatpush3.xpose.msk.msra.mxu0 %vm73_vm2, %v11018_v24  ;;  %9931 = vmatprep.mubr.msk.f32.mxu0 %vm10945_vm0, %v10946_v1  ;;  %v1444_v24 = vmul.f32 %v11124_v13, %v11056_v35 }
 0x539   :  { %v1124_v16 = vmul.f32 %v10751_v14, %v10747_v6  ;;  %9939 = vmatprep.subr.mxu0 %v10946_v1  ;;  %v1861_v14 = vld [vmem:[#allocation4 + $0xc8] sm:$0xff] }
 0x53b   :  { %9927 = vmatmul.mubr.msk.f32.vlgmr.msra.gmra.mrb[14].mxu1 %vm470_vm7, %v1124_v16  ;;  %9932 = vmatmul.mubr.msk.f32.vlgmr.msra.gmra.mrb[14].mxu0 %vm73_vm2, %v1275_v18  ;;  %v1862_v16 = vld [vmem:[#allocation4 + $0xd0] sm:$0xff] }
 0x53c   :  { %9935 = vmatpush3.xpose.msk.msra.mxu1 %vm73_vm2, %v11016_v22  ;;  %9940 = vmatpush3.msra.mxu0 %v1443_v19  ;;  %v1774_v19 = vld [vmem:[#allocation4 + $0xb8] sm:$0xff] }
 0x53d   :  { %9936 = vmatprep.mubr.msk.f32.mxu1 %vm10945_vm0, %v10946_v1  ;;  %9944 = vmatprep.subr.mxu1 %v10946_v1 }
 0x53e   :  { %9941 = vmatprep.mubr.msk.f32.mxu0 %vm10945_vm0, %v10946_v1  ;;  %10562 = vmatprep.subr.bf16.mxu0 %v10561_v57 }
 0x53f   :  { %9937 = vmatmul.mubr.msk.f32.vlgmr.msra.gmra.mrb[16].mxu1 %vm73_vm2, %v1275_v18  ;;  %v1773_v18 = vld [vmem:[#allocation4 + $0xb0] sm:$0xff] }
 0x540   :  { %9945 = vmatpush3.msra.mxu1 %v1444_v24  ;;  %9946 = vmatprep.mubr.msk.f32.mxu1 %vm10945_vm0, %v10946_v1  ;;  %v1863_v24 = vld [vmem:[#allocation4 + $0xd8] sm:$0xff] }
 0x541   :  { %10570 = vmatprep.subr.bf16.mxu1 %v10569_v63 }
 0x60a   :  { %v1196_v36 = vpop.f32.mrb[12].mxu0 }
 0x60b   :  { %v1273_v22 = vadd.f32 %v1196_v36, %v881_v47  ;;  %v9923_v20 = vpop.f32.mrb[13].mxu0  ;;  %v10577_v36 = vpack.c.bf16 %v1774_v19, %v1773_v18 }
 0x60e   :  { %v1269_v21 = vpop.f32.mrb[14].mxu1  ;;  %v1345_v25 = vpop.f32.mrb[14].mxu0 }
 0x60f   :  { %v1274_v23 = vadd.f32 %v1269_v21, %v954_v50  ;;  %v9928_v28 = vpop.f32.mrb[15].mxu1  ;;  %v1419_v29 = vmul.f32 0.17677669, %v1345_v25  ;;  %v9933_v30 = vpop.f32.mrb[15].mxu0 }
 0x611   :  { %v1421_v35 = vsel %vm470_vm7, %v1419_v29, -inf }
 0x612   :  { %v1415_v31 = vpop.f32.mrb[16].mxu1  ;;  %1422 = vmax.xlane.f32.xlu0 %v1421_v35 }
 0x613   :  { %v1420_v33 = vmul.f32 0.17677669, %v1415_v31  ;;  %v9938_v34 = vpop.f32.mrb[17].mxu1 }
 0x615   :  { %v1424_v37 = vsel %vm470_vm7, %v1420_v33, -inf }
 0x616   :  { %1425 = vmax.xlane.f32.xlu1 %v1424_v37  ;;  %v9363_v37 = vld [vmem:[#allocation4 + $0x98] ss:$0 sm:$0xff] }
 0x69f   :  { %v1423_v39 = vpop.xlane.xlu0 %1422 }
 0x6a0   :  { %v1427_v40 = vsub.f32 %v1419_v29, %v1423_v39  ;;  %v9366_v39 = vld [vmem:[#allocation4 + $0xc0] ss:$0 sm:$0xff] }
 0x6a2   :  { %v1429_v41 = vmul.f32 1.442695, %v1427_v40 }
 0x6a3   :  { %v1426_v42 = vpop.xlane.xlu1 %1425 }
 0x6a4   :  { %v1428_v43 = vsub.f32 %v1420_v33, %v1426_v42  ;;  %10752 = vpow2.f32 %v1429_v41 }
 0x6a6   :  { %v1431_v44 = vmul.f32 1.442695, %v1428_v43 }
 0x6a8   :  { %10754 = vpow2.f32 %v1431_v44 }
 0x6ae   :  { %v10753_v45 = vpop.eup %10752 }
 0x6af   :  { %v1433_v46 = vsel %vm470_vm7, %v10753_v45, 0.0 }
 0x6b0   :  { %1434 = vadd.xlane.f32.xlu0 %v1433_v46 }
 0x6b2   :  { %v10755_v47 = vpop.eup %10754 }
 0x6b3   :  { %v1436_v48 = vsel %vm470_vm7, %v10755_v47, 0.0 }
 0x6b4   :  { %1437 = vadd.xlane.f32.xlu1 %v1436_v48 }
 0x73d   :  { %v1435_v49 = vpop.xlane.xlu0 %1434 }
 0x73e   :  { %10756 = vrcp.f32 %v1435_v49 }
 0x741   :  { %v1438_v50 = vpop.xlane.xlu1 %1437 }
 0x742   :  { %10758 = vrcp.f32 %v1438_v50 }
 0x748   :  { %v10757_v51 = vpop.eup %10756 }
 0x749   :  { %v1440_v52 = vmul.f32 %v10757_v51, %v10753_v45 }
 0x74b   :  { %9942 = vmatmul.mubr.msk.f32.vlgmr.msra.gmra.mrb[16].mxu0 %vm470_vm7, %v1440_v52 }
 0x74c   :  { %v10759_v53 = vpop.eup %10758  ;;  %10564 = vmatpush3.bf16.msra.mxu0 %v10561_v57 }
 0x74d   :  { %v1442_v54 = vmul.f32 %v10759_v53, %v10755_v47  ;;  %10566 = vmatprep.subr.bf16.mxu0 %v10565_v60  ;;  %v9369_v47 = vld [vmem:[#allocation4 + $0xe8] ss:$0 sm:$0xff] }
 0x74f   :  { %9947 = vmatmul.mubr.msk.f32.vlgmr.msra.gmra.mrb[18].mxu1 %vm470_vm7, %v1442_v54 }
 0x750   :  { %9964 = vmatprep.mubr.msk.f32.mxu1 %vm154_vm1, %v10990_v7  ;;  %10568 = vmatpush3.bf16.msra.mxu0 %v10565_v60 }
 0x751   :  { %10572 = vmatpush3.bf16.msra.mxu1 %v10569_v63 }
 0x752   :  { %10574 = vmatprep.subr.bf16.mxu1 %v10573_v12 }
 0x754   :  { %9965 = vmatmul.mubr.msk.f32.vlgmr.msra.gmra.mrb[20].mxu1 %vm154_vm1, %v10995_v15  ;;  %v10581_v15 = vpack.c.bf16 %v1862_v16, %v1861_v14 }
 0x755   :  { %10576 = vmatpush3.bf16.msra.mxu1 %v10573_v12 }
 0x756   :  { %10582 = vmatprep.subr.bf16.mxu0 %v10581_v15  ;;  %10578 = vmatprep.subr.bf16.mxu1 %v10577_v36 }
 0x759   :  { %10580 = vmatpush3.bf16.msra.mxu1 %v10577_v36 }
 0x75a   :  { %9989 = vmatprep.subr.mxu1 %v10946_v1 }
 0x81e   :  { %v1514_v2 = vpop.f32.mrb[16].mxu0 }
 0x81f   :  { %v1591_v7 = vadd.f32 %v1514_v2, %v1273_v22  ;;  %v9943_v3 = vpop.f32.mrb[17].mxu0  ;;  %v1864_v22 = vld [vmem:[#allocation4 + $0xe0] sm:$0xff] }
 0x820   :  { %v10585_v20 = vpack.c.bf16 %v1864_v22, %v1863_v24 }
 0x821   :  { %v1593_v4 = vadd.f32 %v1591_v7, %v11023_v27 }
 0x822   :  { %v1587_v5 = vpop.f32.mrb[18].mxu1 }
 0x823   :  { %v1592_v6 = vadd.f32 %v1587_v5, %v1274_v23  ;;  %v9948_v8 = vpop.f32.mrb[19].mxu1  ;;  %9957 = vmatprep.mubr.msk.f32.mxu0 %vm73_vm2, %v1593_v4  ;;  %v9360_v23 = vld [vmem:[#allocation4 + $0x80] ss:$0 sm:$0xff] }
 0x825   :  { %v1594_v9 = vadd.f32 %v1592_v6, %v11023_v27 }
 0x827   :  { %9958 = vmatmul.mubr.msk.f32.vlgmr.msra.gmra.mrb[18].mxu0 %vm73_vm2, %v1594_v9  ;;  %v9966_v27 = vpop.f32.mrb[20].mxu1 }
 0x828   :  { %10584 = vmatpush3.bf16.msra.mxu0 %v10581_v15  ;;  %v1762_v21 = vpop.f32.mrb[21].mxu1  ;;  %v11174_v40 = vadd.f32 %v9966_v27, %v9363_v37 }
 0x829   :  { %10586 = vmatprep.subr.bf16.mxu0 %v10585_v20  ;;  %v11176_v43 = vadd.f32 %v9363_v37, %v1762_v21 }
 0x82a   :  { %v1946_v49 = vmul.f32 %v11021_v26, %v11174_v40  ;;  %v2126_v53 = vmul.f32 %v11034_v32, %v11174_v40 }
 0x82b   :  { %v1945_v51 = vmul.f32 %v11021_v26, %v11176_v43  ;;  %v2125_v54 = vmul.f32 %v11034_v32, %v11176_v43 }
 0x82c   :  { %10588 = vmatpush3.bf16.msra.mxu0 %v10585_v20 }
 0x82d   :  { %9994 = vmatprep.subr.mxu0 %v10946_v1 }
 0x8fa   :  { %v9959_v25 = vpop.f32.mrb[18].mxu0 }
 0x8fb   :  { %v1682_v28 = vadd.f32 %v9959_v25, %v9360_v23  ;;  %v1676_v29 = vpop.f32.mrb[19].mxu0 }
 0x8fc   :  { %v1677_v30 = vadd.f32 %v9360_v23, %v1676_v29 }
 0x8fd   :  { %v1686_v31 = vmax.f32 %v1682_v28, 0.0 }
 0x8fe   :  { %v1685_v35 = vmax.f32 %v1677_v30, 0.0 }
 0x8ff   :  { %v1688_v34 = vadd.f32 %v1686_v31, %v1594_v9 }
 0x900   :  { %v1687_v33 = vadd.f32 %v1685_v35, %v1593_v4 }
 0x902   :  { %9975 = vmatprep.mubr.msk.f32.mxu1 %vm73_vm2, %v1687_v33  ;;  %9986 = vmatprep.mubr.msk.f32.mxu0 %vm73_vm2, %v1687_v33 }
 0x903   :  { %9976 = vmatmul.mubr.msk.f32.vlgmr.msra.gmra.mrb[22].mxu1 %vm73_vm2, %v1688_v34  ;;  %9987 = vmatmul.mubr.msk.f32.vlgmr.msra.gmra.mrb[20].mxu0 %vm73_vm2, %v1688_v34 }
 0x904   :  { %9996 = vmatprep.mubr.msk.f32.mxu0 %vm10945_vm0, %v10946_v1  ;;  %9991 = vmatprep.mubr.msk.f32.mxu1 %vm10945_vm0, %v10946_v1 }
 0x9d6   :  { %v9977_v41 = vpop.f32.mrb[22].mxu1  ;;  %v9988_v42 = vpop.f32.mrb[20].mxu0 }
 0x9d7   :  { %v11178_v44 = vadd.f32 %v9977_v41, %v9366_v39  ;;  %v1852_v45 = vpop.f32.mrb[23].mxu1  ;;  %v1936_v46 = vpop.f32.mrb[21].mxu0  ;;  %v11189_v50 = vadd.f32 %v9988_v42, %v9369_v47 }
 0x9d8   :  { %v11180_v48 = vadd.f32 %v9366_v39, %v1852_v45  ;;  %v11194_v52 = vadd.f32 %v9369_v47, %v1936_v46 }
 0x9d9   :  { %9995 = vmatpush3.xpose.msk.msra.mxu0 %vm73_vm2, %v11178_v44  ;;  %v2298_v55 = vmul.f32 %v11034_v32, %v11189_v50  ;;  %v2124_v47 = vmul.f32 %v11021_v26, %v11189_v50 }
 0x9da   :  { %9990 = vmatpush3.xpose.msk.msra.mxu1 %vm73_vm2, %v11180_v48  ;;  %10004 = vmatprep.subr.mxu0 %v10946_v1  ;;  %v2297_v56 = vmul.f32 %v11034_v32, %v11194_v52 }
 0x9db   :  { %9999 = vmatprep.subr.mxu1 %v10946_v1 }
 0x9dc   :  { %9997 = vmatmul.mubr.msk.f32.vlgmr.msra.gmra.mrb[22].mxu0 %vm73_vm2, %v1946_v49  ;;  %v2123_v49 = vmul.f32 %v11021_v26, %v11194_v52 }
 0x9dd   :  { %9992 = vmatmul.mubr.msk.f32.vlgmr.msra.gmra.mrb[24].mxu1 %vm73_vm2, %v1945_v51  ;;  %10005 = vmatpush3.xpose.msk.msra.mxu0 %vm73_vm2, %v11178_v44 }
 0x9de   :  { %10000 = vmatpush3.xpose.msk.msra.mxu1 %vm73_vm2, %v11180_v48  ;;  %10006 = vmatprep.mubr.msk.f32.mxu0 %vm10945_vm0, %v10946_v1 }
 0x9df   :  { %10001 = vmatprep.mubr.msk.f32.mxu1 %vm10945_vm0, %v10946_v1  ;;  %10014 = vmatprep.subr.mxu0 %v10946_v1 }
 0x9e0   :  { %10007 = vmatmul.mubr.msk.f32.vlgmr.msra.gmra.mrb[24].mxu0 %vm73_vm2, %v2126_v53  ;;  %10009 = vmatprep.subr.mxu1 %v10946_v1 }
 0x9e1   :  { %10002 = vmatmul.mubr.msk.f32.vlgmr.msra.gmra.mrb[26].mxu1 %vm73_vm2, %v2125_v54  ;;  %10015 = vmatpush3.msra.mxu0 %v2298_v55 }
 0x9e2   :  { %10010 = vmatpush3.msra.mxu1 %v2297_v56  ;;  %10016 = vmatprep.mubr.msk.f32.mxu0 %vm10945_vm0, %v10946_v1  ;;  %v2592_v56 = vmul.f32 %v11091_v38, %v11174_v40 }
 0x9e3   :  { %10024 = vmatprep.subr.mxu0 %v10946_v1  ;;  %10011 = vmatprep.mubr.msk.f32.mxu1 %vm10945_vm0, %v10946_v1 }
 0x9e4   :  { %10019 = vmatprep.subr.mxu1 %v10946_v1 }
 0xaaf   :  { %v2095_v57 = vpop.f32.mrb[22].mxu0 }
 0xab0   :  { %v2019_v58 = vpop.f32.mrb[24].mxu1  ;;  %v9998_v59 = vpop.f32.mrb[23].mxu0  ;;  %v2100_v4 = vmul.f32 0.17677669, %v2095_v57  ;;  %v2591_v57 = vmul.f32 %v11091_v38, %v11176_v43 }
 0xab1   :  { %v9993_v60 = vpop.f32.mrb[25].mxu1  ;;  %v2099_v6 = vmul.f32 0.17677669, %v2019_v58  ;;  %v2764_v58 = vmul.f32 %v11091_v38, %v11189_v50  ;;  %v2763_v59 = vmul.f32 %v11091_v38, %v11194_v52 }
 0xab2   :  { %v2104_v9 = vsel %vm470_vm7, %v2100_v4, -inf }
 0xab3   :  { %v2269_v61 = vpop.f32.mrb[24].mxu0  ;;  %v2101_v10 = vsel %vm470_vm7, %v2099_v6, -inf }
 0xab4   :  { %v2274_v62 = vmul.f32 0.17677669, %v2269_v61  ;;  %v2196_v63 = vpop.f32.mrb[26].mxu1  ;;  %v10008_v2 = vpop.f32.mrb[25].mxu0 }
 0xab5   :  { %v2273_v7 = vmul.f32 0.17677669, %v2196_v63  ;;  %v10003_v3 = vpop.f32.mrb[27].mxu1 }
 0xab6   :  { %v2278_v5 = vsel %vm470_vm7, %v2274_v62, -inf }
 0xab7   :  { %2279 = vmax.xlane.f32.xlu1 %v2278_v5  ;;  %v2275_v8 = vsel %vm470_vm7, %v2273_v7, -inf }
 0xab8   :  { %2276 = vmax.xlane.f32.xlu0 %v2275_v8 }
 0xabb   :  { %2105 = vmax.xlane.f32.xlu1 %v2104_v9 }
 0xabc   :  { %2102 = vmax.xlane.f32.xlu0 %v2101_v10 }
 0xb44   :  { %v2280_v11 = vpop.xlane.xlu1 %2279 }
 0xb45   :  { %v2282_v12 = vsub.f32 %v2274_v62, %v2280_v11  ;;  %v2277_v14 = vpop.xlane.xlu0 %2276 }
 0xb46   :  { %v2281_v16 = vsub.f32 %v2273_v7, %v2277_v14 }
 0xb47   :  { %v2285_v15 = vmul.f32 1.442695, %v2282_v12 }
 0xb48   :  { %v2283_v18 = vmul.f32 1.442695, %v2281_v16  ;;  %v2106_v19 = vpop.xlane.xlu1 %2105 }
 0xb49   :  { %10760 = vpow2.f32 %v2285_v15  ;;  %v2108_v24 = vsub.f32 %v2100_v4, %v2106_v19  ;;  %v2103_v36 = vpop.xlane.xlu0 %2102 }
 0xb4a   :  { %10762 = vpow2.f32 %v2283_v18  ;;  %v2107_v22 = vsub.f32 %v2099_v6, %v2103_v36 }
 0xb4b   :  { %v2111_v20 = vmul.f32 1.442695, %v2108_v24 }
 0xb4c   :  { %v2109_v27 = vmul.f32 1.442695, %v2107_v22 }
 0xb4d   :  { %10764 = vpow2.f32 %v2111_v20 }
 0xb4e   :  { %10766 = vpow2.f32 %v2109_v27 }
 0xb53   :  { %v10761_v21 = vpop.eup %10760 }
 0xb54   :  { %v10763_v23 = vpop.eup %10762  ;;  %v2290_v25 = vsel %vm470_vm7, %v10761_v21, 0.0 }
 0xb55   :  { %2291 = vadd.xlane.f32.xlu1 %v2290_v25  ;;  %v2287_v28 = vsel %vm470_vm7, %v10763_v23, 0.0 }
 0xb56   :  { %2288 = vadd.xlane.f32.xlu0 %v2287_v28 }
 0xb57   :  { %v10765_v29 = vpop.eup %10764 }
 0xb58   :  { %v10767_v30 = vpop.eup %10766  ;;  %v2116_v31 = vsel %vm470_vm7, %v10765_v29, 0.0 }
 0xb59   :  { %2117 = vadd.xlane.f32.xlu1 %v2116_v31  ;;  %v2113_v35 = vsel %vm470_vm7, %v10767_v30, 0.0 }
 0xb5a   :  { %2114 = vadd.xlane.f32.xlu0 %v2113_v35 }
 0xbe2   :  { %v2292_v33 = vpop.xlane.xlu1 %2291 }
 0xbe3   :  { %10768 = vrcp.f32 %v2292_v33  ;;  %v2289_v34 = vpop.xlane.xlu0 %2288 }
 0xbe4   :  { %10770 = vrcp.f32 %v2289_v34  ;;  %v2914_v34 = vmul.f32 %v11124_v13, %v11174_v40 }
 0xbe6   :  { %v2118_v37 = vpop.xlane.xlu1 %2117 }
 0xbe7   :  { %10772 = vrcp.f32 %v2118_v37  ;;  %v2115_v39 = vpop.xlane.xlu0 %2114  ;;  %v3086_v37 = vmul.f32 %v11124_v13, %v11189_v50 }
 0xbe8   :  { %10774 = vrcp.f32 %v2115_v39 }
 0xbed   :  { %v10769_v41 = vpop.eup %10768 }
 0xbee   :  { %v10771_v42 = vpop.eup %10770  ;;  %v2296_v45 = vmul.f32 %v10769_v41, %v10761_v21 }
 0xbef   :  { %v2294_v46 = vmul.f32 %v10771_v42, %v10763_v23 }
 0xbf0   :  { %10017 = vmatmul.mubr.msk.f32.vlgmr.msra.gmra.mrb[26].mxu0 %vm470_vm7, %v2296_v45 }
 0xbf1   :  { %v10773_v51 = vpop.eup %10772  ;;  %10025 = vmatpush3.msra.mxu0 %v2124_v47  ;;  %10012 = vmatmul.mubr.msk.f32.vlgmr.msra.gmra.mrb[28].mxu1 %vm470_vm7, %v2294_v46 }
 0xbf2   :  { %v10775_v53 = vpop.eup %10774  ;;  %v2122_v54 = vmul.f32 %v10773_v51, %v10765_v29  ;;  %10020 = vmatpush3.msra.mxu1 %v2123_v49  ;;  %10026 = vmatprep.mubr.msk.f32.mxu0 %vm10945_vm0, %v10946_v1 }
 0xbf3   :  { %v2120_v55 = vmul.f32 %v10775_v53, %v10767_v30  ;;  %10021 = vmatprep.mubr.msk.f32.mxu1 %vm10945_vm0, %v10946_v1  ;;  %10034 = vmatprep.subr.mxu0 %v10946_v1 }
 0xbf4   :  { %10027 = vmatmul.mubr.msk.f32.vlgmr.msra.gmra.mrb[28].mxu0 %vm470_vm7, %v2122_v54  ;;  %10029 = vmatprep.subr.mxu1 %v10946_v1 }
 0xbf5   :  { %10022 = vmatmul.mubr.msk.f32.vlgmr.msra.gmra.mrb[30].mxu1 %vm470_vm7, %v2120_v55  ;;  %10036 = vmatprep.mubr.msk.f32.mxu0 %vm10945_vm0, %v10946_v1 }
 0xbf6   :  { %10031 = vmatprep.mubr.msk.f32.mxu1 %vm10945_vm0, %v10946_v1 }
 0xbf8   :  { %10035 = vmatpush3.xpose.msk.msra.mxu0 %vm73_vm2, %v11178_v44 }
 0xbf9   :  { %10030 = vmatpush3.xpose.msk.msra.mxu1 %vm73_vm2, %v11180_v48  ;;  %10044 = vmatprep.subr.mxu0 %v10946_v1 }
 0xbfa   :  { %10039 = vmatprep.subr.mxu1 %v10946_v1 }
 0xbfb   :  { %10037 = vmatmul.mubr.msk.f32.vlgmr.msra.gmra.mrb[30].mxu0 %vm73_vm2, %v2592_v56 }
 0xbfc   :  { %10032 = vmatmul.mubr.msk.f32.vlgmr.msra.gmra.mrb[32].mxu1 %vm73_vm2, %v2591_v57  ;;  %10045 = vmatpush3.msra.mxu0 %v2764_v58 }
 0xbfd   :  { %10040 = vmatpush3.msra.mxu1 %v2763_v59  ;;  %10046 = vmatprep.mubr.msk.f32.mxu0 %vm10945_vm0, %v10946_v1 }
 0xbfe   :  { %10054 = vmatprep.subr.mxu0 %v10946_v1  ;;  %10041 = vmatprep.mubr.msk.f32.mxu1 %vm10945_vm0, %v10946_v1 }
 0xbff   :  { %10049 = vmatprep.subr.mxu1 %v10946_v1 }
 0xcc3   :  { %v2441_v60 = vpop.f32.mrb[26].mxu0 }
 0xcc4   :  { %v2368_v61 = vpop.f32.mrb[28].mxu1  ;;  %v10018_v62 = vpop.f32.mrb[27].mxu0 }
 0xcc5   :  { %v10013_v63 = vpop.f32.mrb[29].mxu1 }
 0xcc7   :  { %v2587_v2 = vpop.f32.mrb[28].mxu0 }
 0xcc8   :  { %v2588_v7 = vadd.f32 %v2587_v2, %v2441_v60  ;;  %v2514_v3 = vpop.f32.mrb[30].mxu1  ;;  %v10028_v4 = vpop.f32.mrb[29].mxu0 }
 0xcc9   :  { %v2515_v5 = vadd.f32 %v2514_v3, %v2368_v61  ;;  %v10023_v6 = vpop.f32.mrb[31].mxu1  ;;  %v3237_v4 = vld [vmem:[#allocation4 + $0xf0] sm:$0xff] }
 0xcce   :  { %v2735_v8 = vpop.f32.mrb[30].mxu0 }
 0xccf   :  { %v2740_v9 = vmul.f32 0.17677669, %v2735_v8  ;;  %v2662_v10 = vpop.f32.mrb[32].mxu1  ;;  %v10038_v11 = vpop.f32.mrb[31].mxu0 }
 0xcd0   :  { %v2739_v12 = vmul.f32 0.17677669, %v2662_v10  ;;  %v10033_v14 = vpop.f32.mrb[33].mxu1 }
 0xcd1   :  { %v2744_v16 = vsel %vm470_vm7, %v2740_v9, -inf }
 0xcd2   :  { %2745 = vmax.xlane.f32.xlu1 %v2744_v16  ;;  %v2741_v15 = vsel %vm470_vm7, %v2739_v12, -inf  ;;  %v3239_v16 = vld [vmem:[#allocation4 + $0x100] sm:$0xff] }
 0xcd3   :  { %2742 = vmax.xlane.f32.xlu0 %v2741_v15  ;;  %v3240_v15 = vld [vmem:[#allocation4 + $0x108] sm:$0xff] }
 0xd5f   :  { %v2746_v18 = vpop.xlane.xlu1 %2745 }
 0xd60   :  { %v2748_v19 = vsub.f32 %v2740_v9, %v2746_v18  ;;  %v2743_v24 = vpop.xlane.xlu0 %2742  ;;  %v10593_v18 = vpack.c.bf16 %v3240_v15, %v3239_v16 }
 0xd61   :  { %v2747_v36 = vsub.f32 %v2739_v12, %v2743_v24  ;;  %v3333_v24 = vld [vmem:[#allocation4 + $0x128] sm:$0xff] }
 0xd62   :  { %v2751_v22 = vmul.f32 1.442695, %v2748_v19  ;;  %v3332_v19 = vld [vmem:[#allocation4 + $0x120] sm:$0xff] }
 0xd63   :  { %v2749_v20 = vmul.f32 1.442695, %v2747_v36  ;;  %v3334_v36 = vld [vmem:[#allocation4 + $0x130] sm:$0xff] }
 0xd64   :  { %10776 = vpow2.f32 %v2751_v22  ;;  %v10598_v22 = vpack.c.bf16 %v3333_v24, %v3332_v19 }
 0xd65   :  { %10778 = vpow2.f32 %v2749_v20  ;;  %v3335_v20 = vld [vmem:[#allocation4 + $0x138] sm:$0xff] }
 0xd6e   :  { %v10777_v27 = vpop.eup %10776 }
 0xd6f   :  { %v10779_v21 = vpop.eup %10778  ;;  %v2756_v23 = vsel %vm470_vm7, %v10777_v27, 0.0 }
 0xd70   :  { %2757 = vadd.xlane.f32.xlu1 %v2756_v23  ;;  %v2753_v25 = vsel %vm470_vm7, %v10779_v21, 0.0 }
 0xd71   :  { %2754 = vadd.xlane.f32.xlu0 %v2753_v25 }
 0xdfd   :  { %v2758_v28 = vpop.xlane.xlu1 %2757 }
 0xdfe   :  { %10780 = vrcp.f32 %v2758_v28  ;;  %v2755_v29 = vpop.xlane.xlu0 %2754 }
 0xdff   :  { %10782 = vrcp.f32 %v2755_v29 }
 0xe08   :  { %v10781_v30 = vpop.eup %10780 }
 0xe09   :  { %v10783_v31 = vpop.eup %10782  ;;  %v2762_v35 = vmul.f32 %v10781_v30, %v10777_v27  ;;  %v10601_v27 = vpack.c.bf16 %v3335_v20, %v3334_v36 }
 0xe0a   :  { %v2760_v33 = vmul.f32 %v10783_v31, %v10779_v21 }
 0xe0b   :  { %10047 = vmatmul.mubr.msk.f32.vlgmr.msra.gmra.mrb[32].mxu0 %vm470_vm7, %v2762_v35 }
 0xe0c   :  { %10055 = vmatpush3.xpose.msk.msra.mxu0 %vm73_vm2, %v11178_v44  ;;  %10042 = vmatmul.mubr.msk.f32.vlgmr.msra.gmra.mrb[34].mxu1 %vm470_vm7, %v2760_v33  ;;  %v2913_v44 = vmul.f32 %v11124_v13, %v11176_v43  ;;  %v3414_v33 = vld [vmem:[#allocation4 + $0x148] sm:$0xff] }
 0xe0d   :  { %10050 = vmatpush3.xpose.msk.msra.mxu1 %vm73_vm2, %v11180_v48  ;;  %10056 = vmatprep.mubr.msk.f32.mxu0 %vm10945_vm0, %v10946_v1  ;;  %v3085_v48 = vmul.f32 %v11124_v13, %v11194_v52 }
 0xe0e   :  { %10064 = vmatprep.subr.mxu0 %v10946_v1  ;;  %10051 = vmatprep.mubr.msk.f32.mxu1 %vm10945_vm0, %v10946_v1 }
 0xe0f   :  { %10057 = vmatmul.mubr.msk.f32.vlgmr.msra.gmra.mrb[34].mxu0 %vm73_vm2, %v2914_v34  ;;  %10059 = vmatprep.subr.mxu1 %v10946_v1  ;;  %v3415_v34 = vld [vmem:[#allocation4 + $0x150] sm:$0xff] }
 0xe10   :  { %10065 = vmatpush3.msra.mxu0 %v3086_v37  ;;  %10052 = vmatmul.mubr.msk.f32.vlgmr.msra.gmra.mrb[36].mxu1 %vm73_vm2, %v2913_v44  ;;  %v3504_v37 = vld [vmem:[#allocation4 + $0x170] sm:$0xff]  ;;  %v10603_v44 = vpack.c.bf16 %v3415_v34, %v3414_v33 }
 0xe11   :  { %10060 = vmatpush3.msra.mxu1 %v3085_v48  ;;  %10066 = vmatprep.mubr.msk.f32.mxu0 %vm10945_vm0, %v10946_v1  ;;  %v3505_v48 = vld [vmem:[#allocation4 + $0x178] sm:$0xff] }
 0xe12   :  { %10061 = vmatprep.mubr.msk.f32.mxu1 %vm10945_vm0, %v10946_v1  ;;  %10597 = vmatprep.subr.bf16.mxu0 %v10944_v0 }
 0xede   :  { %v2907_v50 = vpop.f32.mrb[32].mxu0 }
 0xedf   :  { %v2912_v39 = vadd.f32 %v2907_v50, %v2588_v7  ;;  %v2834_v41 = vpop.f32.mrb[34].mxu1  ;;  %v10048_v42 = vpop.f32.mrb[33].mxu0  ;;  %v10611_v50 = vpack.c.bf16 %v3505_v48, %v3504_v37 }
 0xee0   :  { %v2911_v45 = vadd.f32 %v2834_v41, %v2515_v5  ;;  %v10043_v46 = vpop.f32.mrb[35].mxu1  ;;  %v3238_v5 = vld [vmem:[#allocation4 + $0xf8] sm:$0xff]  ;;  %v3417_v42 = vld [vmem:[#allocation4 + $0x160] sm:$0xff] }
 0xee1   :  { %v10589_v6 = vpack.c.bf16 %v3238_v5, %v3237_v4  ;;  %v3416_v41 = vld [vmem:[#allocation4 + $0x158] sm:$0xff]  ;;  %v9404_v5 = vld [vmem:[#allocation4 + $0x190] ss:$0 sm:$0xff] }
 0xee2   :  { %v3057_v47 = vpop.f32.mrb[34].mxu0 }
 0xee3   :  { %v3062_v52 = vmul.f32 0.17677669, %v3057_v47  ;;  %v2984_v49 = vpop.f32.mrb[36].mxu1  ;;  %v10058_v51 = vpop.f32.mrb[35].mxu0  ;;  %10590 = vmatprep.subr.bf16.mxu1 %v10589_v6  ;;  %v9396_v47 = vld [vmem:[#allocation4 + $0x110] ss:$0 sm:$0xff] }
 0xee4   :  { %v3061_v53 = vmul.f32 0.17677669, %v2984_v49  ;;  %v10053_v54 = vpop.f32.mrb[37].mxu1 }
 0xee5   :  { %v3066_v55 = vsel %vm470_vm7, %v3062_v52, -inf }
 0xee6   :  { %3067 = vmax.xlane.f32.xlu1 %v3066_v55  ;;  %v3063_v56 = vsel %vm470_vm7, %v3061_v53, -inf }
 0xee7   :  { %3064 = vmax.xlane.f32.xlu0 %v3063_v56 }
 0xf73   :  { %v3068_v57 = vpop.xlane.xlu1 %3067 }
 0xf74   :  { %v3070_v58 = vsub.f32 %v3062_v52, %v3068_v57  ;;  %v3065_v59 = vpop.xlane.xlu0 %3064 }
 0xf75   :  { %v3069_v60 = vsub.f32 %v3061_v53, %v3065_v59 }
 0xf76   :  { %v3073_v61 = vmul.f32 1.442695, %v3070_v58 }
 0xf77   :  { %v3071_v62 = vmul.f32 1.442695, %v3069_v60  ;;  %v9399_v60 = vld [vmem:[#allocation4 + $0x140] ss:$0 sm:$0xff] }
 0xf78   :  { %10784 = vpow2.f32 %v3073_v61 }
 0xf79   :  { %10786 = vpow2.f32 %v3071_v62  ;;  %v9401_v62 = vld [vmem:[#allocation4 + $0x168] ss:$0 sm:$0xff] }
 0xf82   :  { %v10785_v63 = vpop.eup %10784 }
 0xf83   :  { %v10787_v2 = vpop.eup %10786  ;;  %v3078_v7 = vsel %vm470_vm7, %v10785_v63, 0.0 }
 0xf84   :  { %3079 = vadd.xlane.f32.xlu1 %v3078_v7  ;;  %v3075_v3 = vsel %vm470_vm7, %v10787_v2, 0.0 }
 0xf85   :  { %3076 = vadd.xlane.f32.xlu0 %v3075_v3 }
0x1011   :  { %v3080_v8 = vpop.xlane.xlu1 %3079 }
0x1012   :  { %10788 = vrcp.f32 %v3080_v8  ;;  %v3077_v9 = vpop.xlane.xlu0 %3076 }
0x1013   :  { %10790 = vrcp.f32 %v3077_v9 }
0x101c   :  { %v10789_v10 = vpop.eup %10788 }
0x101d   :  { %v10791_v11 = vpop.eup %10790  ;;  %v3084_v12 = vmul.f32 %v10789_v10, %v10785_v63 }
0x101e   :  { %v3082_v14 = vmul.f32 %v10791_v11, %v10787_v2 }
0x101f   :  { %10067 = vmatmul.mubr.msk.f32.vlgmr.msra.gmra.mrb[36].mxu0 %vm470_vm7, %v3084_v12 }
0x1020   :  { %10062 = vmatmul.mubr.msk.f32.vlgmr.msra.gmra.mrb[38].mxu1 %vm470_vm7, %v3082_v14  ;;  %10088 = vmatprep.mubr.msk.f32.mxu0 %vm10945_vm0, %v10946_v1 }
0x1021   :  { %10592 = vmatpush3.bf16.msra.mxu1 %v10589_v6  ;;  %10599 = vmatpush3.bf16.msra.mxu0 %v10598_v22 }
0x1022   :  { %10594 = vmatprep.subr.bf16.mxu1 %v10593_v18  ;;  %10600 = vmatprep.subr.bf16.mxu0 %v10944_v0 }
0x1025   :  { %10596 = vmatpush3.bf16.msra.mxu1 %v10593_v18  ;;  %10602 = vmatpush3.bf16.msra.mxu0 %v10601_v27 }
0x1026   :  { %10604 = vmatprep.subr.bf16.mxu1 %v10603_v44  ;;  %10612 = vmatprep.subr.bf16.mxu0 %v10611_v50 }
0x10f2   :  { %v3229_v21 = vpop.f32.mrb[36].mxu0 }
0x10f3   :  { %v3234_v23 = vadd.f32 %v3229_v21, %v2912_v39  ;;  %v3156_v25 = vpop.f32.mrb[38].mxu1  ;;  %v10068_v28 = vpop.f32.mrb[37].mxu0  ;;  %v3331_v39 = vld [vmem:[#allocation4 + $0x118] sm:$0xff] }
0x10f4   :  { %v3233_v29 = vadd.f32 %v3156_v25, %v2911_v45  ;;  %v10063_v30 = vpop.f32.mrb[39].mxu1  ;;  %10089 = vmatmul.mubr.msk.f32.vlgmr.msra.gmra.mrb[38].mxu0 %vm73_vm2, %v3331_v39  ;;  %v3507_v45 = vld [vmem:[#allocation4 + $0x188] sm:$0xff] }
0x10f5   :  { %v3236_v35 = vadd.f32 %v3234_v23, %v11174_v40  ;;  %10614 = vmatpush3.bf16.msra.mxu0 %v10611_v50  ;;  %v10607_v40 = vpack.c.bf16 %v3417_v42, %v3416_v41 }
0x10f6   :  { %v3235_v31 = vadd.f32 %v3233_v29, %v11176_v43  ;;  %v3506_v43 = vld [vmem:[#allocation4 + $0x180] sm:$0xff] }
0x10f7   :  { %v10615_v46 = vpack.c.bf16 %v3507_v45, %v3506_v43 }
0x10f8   :  { %10077 = vmatprep.mubr.msk.f32.mxu1 %vm73_vm2, %v3235_v31 }
0x10f9   :  { %10078 = vmatmul.mubr.msk.f32.vlgmr.msra.gmra.mrb[40].mxu1 %vm73_vm2, %v3236_v35  ;;  %10616 = vmatprep.subr.bf16.mxu0 %v10615_v46 }
0x10fa   :  { %10606 = vmatpush3.bf16.msra.mxu1 %v10603_v44  ;;  %10618 = vmatpush3.bf16.msra.mxu0 %v10615_v46 }
0x10fb   :  { %10608 = vmatprep.subr.bf16.mxu1 %v10607_v40  ;;  %10118 = vmatprep.subr.mxu0 %v10946_v1 }
0x10fe   :  { %10610 = vmatpush3.bf16.msra.mxu1 %v10607_v40 }
0x10ff   :  { %10113 = vmatprep.subr.mxu1 %v10946_v1 }
0x11c7   :  { %v3410_v58 = vpop.f32.mrb[38].mxu0 }
0x11c8   :  { %v10090_v59 = vpop.f32.mrb[39].mxu0  ;;  %v11335_v61 = vadd.f32 %v9399_v60, %v3410_v58 }
0x11ca   :  { %v3588_v8 = vmul.f32 %v11021_v26, %v11335_v61  ;;  %v3764_v11 = vmul.f32 %v11034_v32, %v11335_v61 }
0x11cc   :  { %v10079_v52 = vpop.f32.mrb[40].mxu1 }
0x11cd   :  { %v3324_v49 = vadd.f32 %v10079_v52, %v9396_v47  ;;  %v3318_v51 = vpop.f32.mrb[41].mxu1 }
0x11ce   :  { %v3319_v53 = vadd.f32 %v9396_v47, %v3318_v51 }
0x11cf   :  { %v3328_v54 = vmax.f32 %v3324_v49, 0.0 }
0x11d0   :  { %v3327_v55 = vmax.f32 %v3319_v53, 0.0 }
0x11d1   :  { %v11321_v57 = vadd.f32 %v3328_v54, %v3236_v35 }
0x11d2   :  { %v11319_v56 = vadd.f32 %v3327_v55, %v3235_v31 }
0x11d4   :  { %10099 = vmatprep.mubr.msk.f32.mxu1 %vm73_vm2, %v11319_v56  ;;  %10110 = vmatprep.mubr.msk.f32.mxu0 %vm73_vm2, %v11319_v56 }
0x11d5   :  { %10100 = vmatmul.mubr.msk.f32.vlgmr.msra.gmra.mrb[42].mxu1 %vm73_vm2, %v11321_v57  ;;  %10111 = vmatmul.mubr.msk.f32.vlgmr.msra.gmra.mrb[40].mxu0 %vm73_vm2, %v11321_v57 }
0x11d6   :  { %10120 = vmatprep.mubr.msk.f32.mxu0 %vm10945_vm0, %v10946_v1  ;;  %10115 = vmatprep.mubr.msk.f32.mxu1 %vm10945_vm0, %v10946_v1 }
0x12a8   :  { %v10101_v63 = vpop.f32.mrb[42].mxu1  ;;  %v10112_v2 = vpop.f32.mrb[40].mxu0 }
0x12a9   :  { %v11337_v7 = vadd.f32 %v10101_v63, %v9401_v62  ;;  %v3495_v3 = vpop.f32.mrb[43].mxu1  ;;  %v3579_v4 = vpop.f32.mrb[41].mxu0  ;;  %v11348_v9 = vadd.f32 %v10112_v2, %v9404_v5 }
0x12aa   :  { %v11339_v6 = vadd.f32 %v9401_v62, %v3495_v3  ;;  %v11351_v10 = vadd.f32 %v9404_v5, %v3579_v4 }
0x12ab   :  { %10119 = vmatpush3.xpose.msk.msra.mxu0 %vm73_vm2, %v11337_v7  ;;  %v3933_v12 = vmul.f32 %v11034_v32, %v11348_v9  ;;  %v3763_v4 = vmul.f32 %v11021_v26, %v11348_v9 }
0x12ac   :  { %10114 = vmatpush3.xpose.msk.msra.mxu1 %vm73_vm2, %v11339_v6  ;;  %10128 = vmatprep.subr.mxu0 %v10946_v1  ;;  %v3932_v14 = vmul.f32 %v11034_v32, %v11351_v10  ;;  %v3762_v5 = vmul.f32 %v11021_v26, %v11351_v10 }
0x12ad   :  { %10123 = vmatprep.subr.mxu1 %v10946_v1 }
0x12ae   :  { %10121 = vmatmul.mubr.msk.f32.vlgmr.msra.gmra.mrb[42].mxu0 %vm73_vm2, %v3588_v8 }
0x12af   :  { %10116 = vmatmul.mubr.msk.f32.vlgmr.msra.gmra.mrb[44].mxu1 %vm73_vm2, %v3588_v8  ;;  %10129 = vmatpush3.xpose.msk.msra.mxu0 %vm73_vm2, %v11337_v7 }
0x12b0   :  { %10124 = vmatpush3.xpose.msk.msra.mxu1 %vm73_vm2, %v11339_v6  ;;  %10130 = vmatprep.mubr.msk.f32.mxu0 %vm10945_vm0, %v10946_v1 }
0x12b1   :  { %10125 = vmatprep.mubr.msk.f32.mxu1 %vm10945_vm0, %v10946_v1  ;;  %10138 = vmatprep.subr.mxu0 %v10946_v1 }
0x12b2   :  { %10131 = vmatmul.mubr.msk.f32.vlgmr.msra.gmra.mrb[44].mxu0 %vm73_vm2, %v3764_v11  ;;  %10133 = vmatprep.subr.mxu1 %v10946_v1 }
0x12b3   :  { %10126 = vmatmul.mubr.msk.f32.vlgmr.msra.gmra.mrb[46].mxu1 %vm73_vm2, %v3764_v11  ;;  %10139 = vmatpush3.msra.mxu0 %v3933_v12 }
0x12b4   :  { %10134 = vmatpush3.msra.mxu1 %v3932_v14  ;;  %10140 = vmatprep.mubr.msk.f32.mxu0 %vm10945_vm0, %v10946_v1 }
0x12b5   :  { %10148 = vmatprep.subr.mxu0 %v10946_v1  ;;  %10135 = vmatprep.mubr.msk.f32.mxu1 %vm10945_vm0, %v10946_v1 }
0x12b6   :  { %10143 = vmatprep.subr.mxu1 %v10946_v1 }
0x1381   :  { %v3734_v16 = vpop.f32.mrb[42].mxu0 }
0x1382   :  { %v3661_v15 = vpop.f32.mrb[44].mxu1  ;;  %v10122_v18 = vpop.f32.mrb[43].mxu0  ;;  %v3739_v23 = vmul.f32 0.17677669, %v3734_v16  ;;  %v4226_v16 = vmul.f32 %v11091_v38, %v11335_v61 }
0x1383   :  { %v10117_v19 = vpop.f32.mrb[45].mxu1  ;;  %v3738_v28 = vmul.f32 0.17677669, %v3661_v15  ;;  %v4395_v15 = vmul.f32 %v11091_v38, %v11348_v9  ;;  %v4394_v18 = vmul.f32 %v11091_v38, %v11351_v10 }
0x1384   :  { %v3743_v30 = vsel %vm470_vm7, %v3739_v23, -inf }
0x1385   :  { %v3904_v24 = vpop.f32.mrb[44].mxu0  ;;  %v3740_v31 = vsel %vm470_vm7, %v3738_v28, -inf }
0x1386   :  { %v3909_v36 = vmul.f32 0.17677669, %v3904_v24  ;;  %v3834_v22 = vpop.f32.mrb[46].mxu1  ;;  %v10132_v20 = vpop.f32.mrb[45].mxu0 }
0x1387   :  { %v3908_v27 = vmul.f32 0.17677669, %v3834_v22  ;;  %v10127_v21 = vpop.f32.mrb[47].mxu1 }
0x1388   :  { %v3913_v25 = vsel %vm470_vm7, %v3909_v36, -inf }
0x1389   :  { %3914 = vmax.xlane.f32.xlu1 %v3913_v25  ;;  %v3910_v29 = vsel %vm470_vm7, %v3908_v27, -inf }
0x138a   :  { %3911 = vmax.xlane.f32.xlu0 %v3910_v29 }
0x138d   :  { %3744 = vmax.xlane.f32.xlu1 %v3743_v30 }
0x138e   :  { %3741 = vmax.xlane.f32.xlu0 %v3740_v31 }
0x1416   :  { %v3915_v35 = vpop.xlane.xlu1 %3914 }
0x1417   :  { %v3917_v33 = vsub.f32 %v3909_v36, %v3915_v35  ;;  %v3912_v34 = vpop.xlane.xlu0 %3911 }
0x1418   :  { %v3916_v37 = vsub.f32 %v3908_v27, %v3912_v34 }
0x1419   :  { %v3920_v44 = vmul.f32 1.442695, %v3917_v33 }
0x141a   :  { %v3918_v48 = vmul.f32 1.442695, %v3916_v37  ;;  %v3745_v50 = vpop.xlane.xlu1 %3744 }
0x141b   :  { %10792 = vpow2.f32 %v3920_v44  ;;  %v3747_v39 = vsub.f32 %v3739_v23, %v3745_v50  ;;  %v3742_v41 = vpop.xlane.xlu0 %3741 }
0x141c   :  { %10794 = vpow2.f32 %v3918_v48  ;;  %v3746_v42 = vsub.f32 %v3738_v28, %v3742_v41 }
0x141d   :  { %v3750_v43 = vmul.f32 1.442695, %v3747_v39 }
0x141e   :  { %v3748_v40 = vmul.f32 1.442695, %v3746_v42 }
0x141f   :  { %10796 = vpow2.f32 %v3750_v43 }
0x1420   :  { %10798 = vpow2.f32 %v3748_v40 }
0x1425   :  { %v10793_v45 = vpop.eup %10792 }
0x1426   :  { %v10795_v46 = vpop.eup %10794  ;;  %v3925_v47 = vsel %vm470_vm7, %v10793_v45, 0.0 }
0x1427   :  { %3926 = vadd.xlane.f32.xlu1 %v3925_v47  ;;  %v3922_v52 = vsel %vm470_vm7, %v10795_v46, 0.0 }
0x1428   :  { %3923 = vadd.xlane.f32.xlu0 %v3922_v52 }
0x1429   :  { %v10797_v49 = vpop.eup %10796 }
0x142a   :  { %v10799_v51 = vpop.eup %10798  ;;  %v3755_v53 = vsel %vm470_vm7, %v10797_v49, 0.0 }
0x142b   :  { %3756 = vadd.xlane.f32.xlu1 %v3755_v53  ;;  %v3752_v54 = vsel %vm470_vm7, %v10799_v51, 0.0 }
0x142c   :  { %3753 = vadd.xlane.f32.xlu0 %v3752_v54 }
0x14b4   :  { %v3927_v55 = vpop.xlane.xlu1 %3926 }
0x14b5   :  { %10800 = vrcp.f32 %v3927_v55  ;;  %v3924_v58 = vpop.xlane.xlu0 %3923 }
0x14b6   :  { %10802 = vrcp.f32 %v3924_v58  ;;  %v4544_v58 = vmul.f32 %v11124_v13, %v11335_v61 }
0x14b8   :  { %v3757_v59 = vpop.xlane.xlu1 %3756 }
0x14b9   :  { %10804 = vrcp.f32 %v3757_v59  ;;  %v3754_v60 = vpop.xlane.xlu0 %3753  ;;  %v4713_v59 = vmul.f32 %v11124_v13, %v11348_v9 }
0x14ba   :  { %10806 = vrcp.f32 %v3754_v60 }
0x14bf   :  { %v10801_v62 = vpop.eup %10800 }
0x14c0   :  { %v10803_v63 = vpop.eup %10802  ;;  %v3931_v2 = vmul.f32 %v10801_v62, %v10793_v45 }
0x14c1   :  { %v3929_v3 = vmul.f32 %v10803_v63, %v10795_v46 }
0x14c2   :  { %10141 = vmatmul.mubr.msk.f32.vlgmr.msra.gmra.mrb[46].mxu0 %vm470_vm7, %v3931_v2 }
0x14c3   :  { %v10805_v8 = vpop.eup %10804  ;;  %10149 = vmatpush3.msra.mxu0 %v3763_v4  ;;  %10136 = vmatmul.mubr.msk.f32.vlgmr.msra.gmra.mrb[48].mxu1 %vm470_vm7, %v3929_v3 }
0x14c4   :  { %v10807_v11 = vpop.eup %10806  ;;  %v3761_v12 = vmul.f32 %v10805_v8, %v10797_v49  ;;  %10144 = vmatpush3.msra.mxu1 %v3762_v5  ;;  %10150 = vmatprep.mubr.msk.f32.mxu0 %vm10945_vm0, %v10946_v1 }
0x14c5   :  { %v3759_v14 = vmul.f32 %v10807_v11, %v10799_v51  ;;  %10145 = vmatprep.mubr.msk.f32.mxu1 %vm10945_vm0, %v10946_v1  ;;  %10158 = vmatprep.subr.mxu0 %v10946_v1 }
0x14c6   :  { %10151 = vmatmul.mubr.msk.f32.vlgmr.msra.gmra.mrb[48].mxu0 %vm470_vm7, %v3761_v12  ;;  %10153 = vmatprep.subr.mxu1 %v10946_v1 }
0x14c7   :  { %10146 = vmatmul.mubr.msk.f32.vlgmr.msra.gmra.mrb[50].mxu1 %vm470_vm7, %v3759_v14  ;;  %10160 = vmatprep.mubr.msk.f32.mxu0 %vm10945_vm0, %v10946_v1 }
0x14c8   :  { %10155 = vmatprep.mubr.msk.f32.mxu1 %vm10945_vm0, %v10946_v1 }
0x14ca   :  { %10159 = vmatpush3.xpose.msk.msra.mxu0 %vm73_vm2, %v11337_v7 }
0x14cb   :  { %10154 = vmatpush3.xpose.msk.msra.mxu1 %vm73_vm2, %v11339_v6  ;;  %10168 = vmatprep.subr.mxu0 %v10946_v1 }
0x14cc   :  { %10163 = vmatprep.subr.mxu1 %v10946_v1 }
0x14cd   :  { %10161 = vmatmul.mubr.msk.f32.vlgmr.msra.gmra.mrb[50].mxu0 %vm73_vm2, %v4226_v16 }
0x14ce   :  { %10156 = vmatmul.mubr.msk.f32.vlgmr.msra.gmra.mrb[52].mxu1 %vm73_vm2, %v4226_v16  ;;  %10169 = vmatpush3.msra.mxu0 %v4395_v15 }
0x14cf   :  { %10164 = vmatpush3.msra.mxu1 %v4394_v18  ;;  %10170 = vmatprep.mubr.msk.f32.mxu0 %vm10945_vm0, %v10946_v1 }
0x14d0   :  { %10178 = vmatprep.subr.mxu0 %v10946_v1  ;;  %10165 = vmatprep.mubr.msk.f32.mxu1 %vm10945_vm0, %v10946_v1 }
0x14d1   :  { %10173 = vmatprep.subr.mxu1 %v10946_v1 }
0x1595   :  { %v4076_v19 = vpop.f32.mrb[46].mxu0 }
0x1596   :  { %v4003_v24 = vpop.f32.mrb[48].mxu1  ;;  %v10142_v36 = vpop.f32.mrb[47].mxu0 }
0x1597   :  { %v10137_v22 = vpop.f32.mrb[49].mxu1 }
0x1599   :  { %v4222_v20 = vpop.f32.mrb[48].mxu0 }
0x159a   :  { %v4223_v27 = vadd.f32 %v4222_v20, %v4076_v19  ;;  %v4149_v21 = vpop.f32.mrb[50].mxu1  ;;  %v10152_v23 = vpop.f32.mrb[49].mxu0 }
0x159b   :  { %v4150_v25 = vadd.f32 %v4149_v21, %v4003_v24  ;;  %v10147_v28 = vpop.f32.mrb[51].mxu1  ;;  %v4958_v23 = vld [vmem:[#allocation4 + $0x1c0] sm:$0xff] }
0x15a0   :  { %v4366_v29 = vpop.f32.mrb[50].mxu0 }
0x15a1   :  { %v4371_v30 = vmul.f32 0.17677669, %v4366_v29  ;;  %v4296_v31 = vpop.f32.mrb[52].mxu1  ;;  %v10162_v35 = vpop.f32.mrb[51].mxu0  ;;  %v4864_v29 = vld [vmem:[#allocation4 + $0x198] sm:$0xff] }
0x15a2   :  { %v4370_v33 = vmul.f32 0.17677669, %v4296_v31  ;;  %v10157_v34 = vpop.f32.mrb[53].mxu1 }
0x15a3   :  { %v4375_v37 = vsel %vm470_vm7, %v4371_v30, -inf  ;;  %v4960_v34 = vld [vmem:[#allocation4 + $0x1d0] sm:$0xff] }
0x15a4   :  { %4376 = vmax.xlane.f32.xlu1 %v4375_v37  ;;  %v4372_v44 = vsel %vm470_vm7, %v4370_v33, -inf  ;;  %v4961_v37 = vld [vmem:[#allocation4 + $0x1d8] sm:$0xff] }
0x15a5   :  { %4373 = vmax.xlane.f32.xlu0 %v4372_v44 }
0x1631   :  { %v4377_v48 = vpop.xlane.xlu1 %4376 }
0x1632   :  { %v4379_v50 = vsub.f32 %v4371_v30, %v4377_v48  ;;  %v4374_v39 = vpop.xlane.xlu0 %4373  ;;  %v4865_v30 = vld [vmem:[#allocation4 + $0x1a0] sm:$0xff] }
0x1633   :  { %v4378_v41 = vsub.f32 %v4370_v33, %v4374_v39  ;;  %v10619_v31 = vpack.c.bf16 %v4865_v30, %v4864_v29  ;;  %v10631_v39 = vpack.c.bf16 %v4961_v37, %v4960_v34 }
0x1634   :  { %v4382_v42 = vmul.f32 1.442695, %v4379_v50 }
0x1635   :  { %v4380_v43 = vmul.f32 1.442695, %v4378_v41 }
0x1636   :  { %10808 = vpow2.f32 %v4382_v42  ;;  %v4866_v42 = vld [vmem:[#allocation4 + $0x1a8] sm:$0xff] }
0x1637   :  { %10810 = vpow2.f32 %v4380_v43  ;;  %v4867_v43 = vld [vmem:[#allocation4 + $0x1b0] sm:$0xff] }
0x1640   :  { %v10809_v40 = vpop.eup %10808 }
0x1641   :  { %v10811_v45 = vpop.eup %10810  ;;  %v4387_v46 = vsel %vm470_vm7, %v10809_v40, 0.0 }
0x1642   :  { %4388 = vadd.xlane.f32.xlu1 %v4387_v46  ;;  %v4384_v47 = vsel %vm470_vm7, %v10811_v45, 0.0 }
0x1643   :  { %4385 = vadd.xlane.f32.xlu0 %v4384_v47 }
0x16cf   :  { %v4389_v52 = vpop.xlane.xlu1 %4388 }
0x16d0   :  { %10812 = vrcp.f32 %v4389_v52  ;;  %v4386_v49 = vpop.xlane.xlu0 %4385 }
0x16d1   :  { %10814 = vrcp.f32 %v4386_v49 }
0x16da   :  { %v10813_v51 = vpop.eup %10812 }
0x16db   :  { %v10815_v53 = vpop.eup %10814  ;;  %v4393_v54 = vmul.f32 %v10813_v51, %v10809_v40  ;;  %v10623_v40 = vpack.c.bf16 %v4867_v43, %v4866_v42 }
0x16dc   :  { %v4391_v55 = vmul.f32 %v10815_v53, %v10811_v45 }
0x16dd   :  { %10171 = vmatmul.mubr.msk.f32.vlgmr.msra.gmra.mrb[52].mxu0 %vm470_vm7, %v4393_v54 }
0x16de   :  { %10179 = vmatpush3.xpose.msk.msra.mxu0 %vm73_vm2, %v11337_v7  ;;  %10166 = vmatmul.mubr.msk.f32.vlgmr.msra.gmra.mrb[54].mxu1 %vm470_vm7, %v4391_v55  ;;  %v4712_v7 = vmul.f32 %v11124_v13, %v11351_v10  ;;  %v5042_v55 = vld [vmem:[#allocation4 + $0x1e8] sm:$0xff] }
0x16df   :  { %10174 = vmatpush3.xpose.msk.msra.mxu1 %vm73_vm2, %v11339_v6  ;;  %10180 = vmatprep.mubr.msk.f32.mxu0 %vm10945_vm0, %v10946_v1 }
0x16e0   :  { %10188 = vmatprep.subr.mxu0 %v10946_v1  ;;  %10175 = vmatprep.mubr.msk.f32.mxu1 %vm10945_vm0, %v10946_v1 }
0x16e1   :  { %10181 = vmatmul.mubr.msk.f32.vlgmr.msra.gmra.mrb[54].mxu0 %vm73_vm2, %v4544_v58  ;;  %10183 = vmatprep.subr.mxu1 %v10946_v1 }
0x16e2   :  { %10189 = vmatpush3.msra.mxu0 %v4713_v59  ;;  %10176 = vmatmul.mubr.msk.f32.vlgmr.msra.gmra.mrb[56].mxu1 %vm73_vm2, %v4544_v58  ;;  %v5043_v58 = vld [vmem:[#allocation4 + $0x1f0] sm:$0xff] }
0x16e3   :  { %10184 = vmatpush3.msra.mxu1 %v4712_v7  ;;  %10190 = vmatprep.mubr.msk.f32.mxu0 %vm10945_vm0, %v10946_v1  ;;  %v5132_v59 = vld [vmem:[#allocation4 + $0x210] sm:$0xff]  ;;  %v10635_v7 = vpack.c.bf16 %v5043_v58, %v5042_v55 }
0x16e4   :  { %10185 = vmatprep.mubr.msk.f32.mxu1 %vm10945_vm0, %v10946_v1  ;;  %10620 = vmatprep.subr.bf16.mxu1 %v10619_v31 }
0x17b0   :  { %v4538_v6 = vpop.f32.mrb[52].mxu0 }
0x17b1   :  { %v4543_v60 = vadd.f32 %v4538_v6, %v4223_v27  ;;  %v4465_v9 = vpop.f32.mrb[54].mxu1  ;;  %v10172_v62 = vpop.f32.mrb[53].mxu0  ;;  %v5133_v6 = vld [vmem:[#allocation4 + $0x218] sm:$0xff] }
0x17b2   :  { %v4542_v63 = vadd.f32 %v4465_v9, %v4150_v25  ;;  %v10167_v2 = vpop.f32.mrb[55].mxu1  ;;  %v4959_v25 = vld [vmem:[#allocation4 + $0x1c8] sm:$0xff]  ;;  %v5044_v9 = vld [vmem:[#allocation4 + $0x1f8] sm:$0xff]  ;;  %v5045_v62 = vld [vmem:[#allocation4 + $0x200] sm:$0xff] }
0x17b3   :  { %v10627_v28 = vpack.c.bf16 %v4959_v25, %v4958_v23  ;;  %v5135_v2 = vld [vmem:[#allocation4 + $0x228] sm:$0xff]  ;;  %v9440_v25 = vld [vmem:[#allocation4 + $0x230] ss:$0 sm:$0xff] }
0x17b4   :  { %v4684_v3 = vpop.f32.mrb[54].mxu0 }
0x17b5   :  { %v4689_v4 = vmul.f32 0.17677669, %v4684_v3  ;;  %v4614_v5 = vpop.f32.mrb[56].mxu1  ;;  %v10182_v10 = vpop.f32.mrb[55].mxu0  ;;  %10628 = vmatprep.subr.bf16.mxu0 %v10627_v28 }
0x17b6   :  { %v4688_v8 = vmul.f32 0.17677669, %v4614_v5  ;;  %v10177_v11 = vpop.f32.mrb[57].mxu1 }
0x17b7   :  { %v4693_v12 = vsel %vm470_vm7, %v4689_v4, -inf }
0x17b8   :  { %4694 = vmax.xlane.f32.xlu1 %v4693_v12  ;;  %v4690_v14 = vsel %vm470_vm7, %v4688_v8, -inf }
0x17b9   :  { %4691 = vmax.xlane.f32.xlu0 %v4690_v14 }
0x1845   :  { %v4695_v16 = vpop.xlane.xlu1 %4694 }
0x1846   :  { %v4697_v15 = vsub.f32 %v4689_v4, %v4695_v16  ;;  %v4692_v18 = vpop.xlane.xlu0 %4691  ;;  %v9431_v4 = vld [vmem:[#allocation4 + $0x1b8] ss:$0 sm:$0xff] }
0x1847   :  { %v4696_v19 = vsub.f32 %v4688_v8, %v4692_v18  ;;  %v9434_v18 = vld [vmem:[#allocation4 + $0x1e0] ss:$0 sm:$0xff] }
0x1848   :  { %v4700_v24 = vmul.f32 1.442695, %v4697_v15 }
0x1849   :  { %v4698_v36 = vmul.f32 1.442695, %v4696_v19  ;;  %v9437_v19 = vld [vmem:[#allocation4 + $0x208] ss:$0 sm:$0xff] }
0x184a   :  { %10816 = vpow2.f32 %v4700_v24 }
0x184b   :  { %10818 = vpow2.f32 %v4698_v36 }
0x1854   :  { %v10817_v22 = vpop.eup %10816 }
0x1855   :  { %v10819_v20 = vpop.eup %10818  ;;  %v4705_v27 = vsel %vm470_vm7, %v10817_v22, 0.0 }
0x1856   :  { %4706 = vadd.xlane.f32.xlu1 %v4705_v27  ;;  %v4702_v21 = vsel %vm470_vm7, %v10819_v20, 0.0 }
0x1857   :  { %4703 = vadd.xlane.f32.xlu0 %v4702_v21 }
0x18e3   :  { %v4707_v35 = vpop.xlane.xlu1 %4706 }
0x18e4   :  { %10820 = vrcp.f32 %v4707_v35  ;;  %v4704_v33 = vpop.xlane.xlu0 %4703 }
0x18e5   :  { %10822 = vrcp.f32 %v4704_v33 }
0x18ee   :  { %v10821_v44 = vpop.eup %10820 }
0x18ef   :  { %v10823_v48 = vpop.eup %10822  ;;  %v4711_v50 = vmul.f32 %v10821_v44, %v10817_v22 }
0x18f0   :  { %v4709_v41 = vmul.f32 %v10823_v48, %v10819_v20 }
0x18f1   :  { %10191 = vmatmul.mubr.msk.f32.vlgmr.msra.gmra.mrb[56].mxu0 %vm470_vm7, %v4711_v50 }
0x18f2   :  { %10630 = vmatpush3.bf16.msra.mxu0 %v10627_v28  ;;  %10186 = vmatmul.mubr.msk.f32.vlgmr.msra.gmra.mrb[58].mxu1 %vm470_vm7, %v4709_v41 }
0x18f3   :  { %10212 = vmatprep.mubr.msk.f32.mxu0 %vm73_vm2, %v11319_v56  ;;  %10632 = vmatprep.subr.bf16.mxu0 %v10631_v39 }
0x18f4   :  { %10622 = vmatpush3.bf16.msra.mxu1 %v10619_v31 }
0x18f5   :  { %10624 = vmatprep.subr.bf16.mxu1 %v10623_v40 }
0x18f6   :  { %10634 = vmatpush3.bf16.msra.mxu0 %v10631_v39 }
0x18f8   :  { %10626 = vmatpush3.bf16.msra.mxu1 %v10623_v40 }
0x18f9   :  { %10213 = vmatmul.mubr.msk.f32.vlgmr.msra.gmra.mrb[58].mxu0 %vm73_vm2, %v11321_v57  ;;  %10636 = vmatprep.subr.bf16.mxu1 %v10635_v7 }
0x19c4   :  { %v4856_v45 = vpop.f32.mrb[56].mxu0 }
0x19c5   :  { %v4861_v46 = vadd.f32 %v4856_v45, %v4543_v60  ;;  %v4783_v47 = vpop.f32.mrb[58].mxu1  ;;  %v10192_v52 = vpop.f32.mrb[57].mxu0  ;;  %v10643_v60 = vpack.c.bf16 %v5133_v6, %v5132_v59 }
0x19c6   :  { %v4860_v49 = vadd.f32 %v4783_v47, %v4542_v63  ;;  %v10187_v51 = vpop.f32.mrb[59].mxu1  ;;  %v5134_v63 = vld [vmem:[#allocation4 + $0x220] sm:$0xff] }
0x19c7   :  { %v4863_v56 = vadd.f32 %v4861_v46, %v11335_v61  ;;  %10644 = vmatprep.subr.bf16.mxu0 %v10643_v60  ;;  %v10647_v3 = vpack.c.bf16 %v5135_v2, %v5134_v63 }
0x19c8   :  { %v4862_v53 = vadd.f32 %v4860_v49, %v11335_v61  ;;  %10646 = vmatpush3.bf16.msra.mxu0 %v10643_v60  ;;  %v10639_v61 = vpack.c.bf16 %v5045_v62, %v5044_v9 }
0x19c9   :  { %10648 = vmatprep.subr.bf16.mxu0 %v10647_v3 }
0x19ca   :  { %10201 = vmatprep.mubr.msk.f32.mxu1 %vm73_vm2, %v4862_v53 }
0x19cb   :  { %10202 = vmatmul.mubr.msk.f32.vlgmr.msra.gmra.mrb[60].mxu1 %vm73_vm2, %v4863_v56 }
0x19cc   :  { %v10214_v57 = vpop.f32.mrb[58].mxu0  ;;  %10638 = vmatpush3.bf16.msra.mxu1 %v10635_v7  ;;  %10650 = vmatpush3.bf16.msra.mxu0 %v10647_v3 }
0x19cd   :  { %v5033_v54 = vpop.f32.mrb[59].mxu0  ;;  %10640 = vmatprep.subr.bf16.mxu1 %v10639_v61  ;;  %10242 = vmatprep.subr.mxu0 %v10946_v1  ;;  %v11477_v24 = vadd.f32 %v10214_v57, %v9434_v18 }
0x19ce   :  { %v11479_v20 = vadd.f32 %v9434_v18, %v5033_v54 }
0x19cf   :  { %v5217_v29 = vmul.f32 %v11021_v26, %v11477_v24  ;;  %v5397_v33 = vmul.f32 %v11034_v32, %v11477_v24 }
0x19d0   :  { %10642 = vmatpush3.bf16.msra.mxu1 %v10639_v61  ;;  %v5216_v31 = vmul.f32 %v11021_v26, %v11479_v20  ;;  %v5396_v34 = vmul.f32 %v11034_v32, %v11479_v20 }
0x19d1   :  { %10237 = vmatprep.subr.mxu1 %v10946_v1 }
0x1a9e   :  { %v10203_v5 = vpop.f32.mrb[60].mxu1 }
0x1a9f   :  { %v4951_v10 = vadd.f32 %v10203_v5, %v9431_v4  ;;  %v4945_v8 = vpop.f32.mrb[61].mxu1 }
0x1aa0   :  { %v4946_v11 = vadd.f32 %v9431_v4, %v4945_v8 }
0x1aa1   :  { %v4955_v12 = vmax.f32 %v4951_v10, 0.0 }
0x1aa2   :  { %v4954_v14 = vmax.f32 %v4946_v11, 0.0 }
0x1aa3   :  { %v4957_v15 = vadd.f32 %v4955_v12, %v4863_v56 }
0x1aa4   :  { %v4956_v16 = vadd.f32 %v4954_v14, %v4862_v53 }
0x1aa6   :  { %10223 = vmatprep.mubr.msk.f32.mxu1 %vm73_vm2, %v4956_v16  ;;  %10234 = vmatprep.mubr.msk.f32.mxu0 %vm73_vm2, %v4956_v16 }
0x1aa7   :  { %10224 = vmatmul.mubr.msk.f32.vlgmr.msra.gmra.mrb[62].mxu1 %vm73_vm2, %v4957_v15  ;;  %10235 = vmatmul.mubr.msk.f32.vlgmr.msra.gmra.mrb[60].mxu0 %vm73_vm2, %v4957_v15 }
0x1aa8   :  { %10244 = vmatprep.mubr.msk.f32.mxu0 %vm10945_vm0, %v10946_v1  ;;  %10239 = vmatprep.mubr.msk.f32.mxu1 %vm10945_vm0, %v10946_v1 }
0x1b7a   :  { %v10225_v36 = vpop.f32.mrb[62].mxu1  ;;  %v10236_v22 = vpop.f32.mrb[60].mxu0 }
0x1b7b   :  { %v11481_v27 = vadd.f32 %v10225_v36, %v9437_v19  ;;  %v5123_v21 = vpop.f32.mrb[63].mxu1  ;;  %v5207_v23 = vpop.f32.mrb[61].mxu0  ;;  %v11492_v30 = vadd.f32 %v10236_v22, %v9440_v25 }
0x1b7c   :  { %v11483_v28 = vadd.f32 %v9437_v19, %v5123_v21  ;;  %v11497_v35 = vadd.f32 %v9440_v25, %v5207_v23 }
0x1b7d   :  { %10243 = vmatpush3.xpose.msk.msra.mxu0 %vm73_vm2, %v11481_v27  ;;  %v5569_v37 = vmul.f32 %v11034_v32, %v11492_v30  ;;  %v5395_v25 = vmul.f32 %v11021_v26, %v11492_v30 }
0x1b7e   :  { %10238 = vmatpush3.xpose.msk.msra.mxu1 %vm73_vm2, %v11483_v28  ;;  %10252 = vmatprep.subr.mxu0 %v10946_v1  ;;  %v5568_v44 = vmul.f32 %v11034_v32, %v11497_v35 }
0x1b7f   :  { %10247 = vmatprep.subr.mxu1 %v10946_v1 }
0x1b80   :  { %10245 = vmatmul.mubr.msk.f32.vlgmr.msra.gmra.mrb[62].mxu0 %vm73_vm2, %v5217_v29  ;;  %v5394_v29 = vmul.f32 %v11021_v26, %v11497_v35 }
0x1b81   :  { %10240 = vmatmul.mubr.msk.f32.vlgmr.msra.gmra.mrb[64].mxu1 %vm73_vm2, %v5216_v31  ;;  %10253 = vmatpush3.xpose.msk.msra.mxu0 %vm73_vm2, %v11481_v27 }
0x1b82   :  { %10248 = vmatpush3.xpose.msk.msra.mxu1 %vm73_vm2, %v11483_v28  ;;  %10254 = vmatprep.mubr.msk.f32.mxu0 %vm10945_vm0, %v10946_v1 }
0x1b83   :  { %10249 = vmatprep.mubr.msk.f32.mxu1 %vm10945_vm0, %v10946_v1  ;;  %10262 = vmatprep.subr.mxu0 %v10946_v1 }
0x1b84   :  { %10255 = vmatmul.mubr.msk.f32.vlgmr.msra.gmra.mrb[64].mxu0 %vm73_vm2, %v5397_v33  ;;  %10257 = vmatprep.subr.mxu1 %v10946_v1 }
0x1b85   :  { %10250 = vmatmul.mubr.msk.f32.vlgmr.msra.gmra.mrb[66].mxu1 %vm73_vm2, %v5396_v34  ;;  %10263 = vmatpush3.msra.mxu0 %v5569_v37 }
0x1b86   :  { %10258 = vmatpush3.msra.mxu1 %v5568_v44  ;;  %10264 = vmatprep.mubr.msk.f32.mxu0 %vm10945_vm0, %v10946_v1  ;;  %v5863_v44 = vmul.f32 %v11091_v38, %v11477_v24 }
0x1b87   :  { %10272 = vmatprep.subr.mxu0 %v10946_v1  ;;  %10259 = vmatprep.mubr.msk.f32.mxu1 %vm10945_vm0, %v10946_v1 }
0x1b88   :  { %10267 = vmatprep.subr.mxu1 %v10946_v1 }
0x1c53   :  { %v5366_v48 = vpop.f32.mrb[62].mxu0 }
0x1c54   :  { %v5290_v50 = vpop.f32.mrb[64].mxu1  ;;  %v10246_v39 = vpop.f32.mrb[63].mxu0  ;;  %v5371_v52 = vmul.f32 0.17677669, %v5366_v48  ;;  %v5862_v48 = vmul.f32 %v11091_v38, %v11479_v20 }
0x1c55   :  { %v10241_v41 = vpop.f32.mrb[65].mxu1  ;;  %v5370_v51 = vmul.f32 0.17677669, %v5290_v50  ;;  %v6035_v50 = vmul.f32 %v11091_v38, %v11492_v30  ;;  %v6034_v39 = vmul.f32 %v11091_v38, %v11497_v35 }
0x1c56   :  { %v5375_v56 = vsel %vm470_vm7, %v5371_v52, -inf }
0x1c57   :  { %v5540_v42 = vpop.f32.mrb[64].mxu0  ;;  %v5372_v57 = vsel %vm470_vm7, %v5370_v51, -inf }
0x1c58   :  { %v5545_v43 = vmul.f32 0.17677669, %v5540_v42  ;;  %v5467_v40 = vpop.f32.mrb[66].mxu1  ;;  %v10256_v45 = vpop.f32.mrb[65].mxu0 }
0x1c59   :  { %v5544_v46 = vmul.f32 0.17677669, %v5467_v40  ;;  %v10251_v47 = vpop.f32.mrb[67].mxu1 }
0x1c5a   :  { %v5549_v49 = vsel %vm470_vm7, %v5545_v43, -inf }
0x1c5b   :  { %5550 = vmax.xlane.f32.xlu1 %v5549_v49  ;;  %v5546_v53 = vsel %vm470_vm7, %v5544_v46, -inf }
0x1c5c   :  { %5547 = vmax.xlane.f32.xlu0 %v5546_v53 }
0x1c5f   :  { %5376 = vmax.xlane.f32.xlu1 %v5375_v56 }
0x1c60   :  { %5373 = vmax.xlane.f32.xlu0 %v5372_v57 }
0x1ce8   :  { %v5551_v54 = vpop.xlane.xlu1 %5550 }
0x1ce9   :  { %v5553_v55 = vsub.f32 %v5545_v43, %v5551_v54  ;;  %v5548_v58 = vpop.xlane.xlu0 %5547 }
0x1cea   :  { %v5552_v59 = vsub.f32 %v5544_v46, %v5548_v58 }
0x1ceb   :  { %v5556_v7 = vmul.f32 1.442695, %v5553_v55 }
0x1cec   :  { %v5554_v6 = vmul.f32 1.442695, %v5552_v59  ;;  %v5377_v60 = vpop.xlane.xlu1 %5376 }
0x1ced   :  { %10824 = vpow2.f32 %v5556_v7  ;;  %v5379_v9 = vsub.f32 %v5371_v52, %v5377_v60  ;;  %v5374_v62 = vpop.xlane.xlu0 %5373 }
0x1cee   :  { %10826 = vpow2.f32 %v5554_v6  ;;  %v5378_v63 = vsub.f32 %v5370_v51, %v5374_v62 }
0x1cef   :  { %v5382_v61 = vmul.f32 1.442695, %v5379_v9 }
0x1cf0   :  { %v5380_v2 = vmul.f32 1.442695, %v5378_v63 }
0x1cf1   :  { %10828 = vpow2.f32 %v5382_v61 }
0x1cf2   :  { %10830 = vpow2.f32 %v5380_v2 }
0x1cf7   :  { %v10825_v3 = vpop.eup %10824 }
0x1cf8   :  { %v10827_v4 = vpop.eup %10826  ;;  %v5561_v5 = vsel %vm470_vm7, %v10825_v3, 0.0 }
0x1cf9   :  { %5562 = vadd.xlane.f32.xlu1 %v5561_v5  ;;  %v5558_v10 = vsel %vm470_vm7, %v10827_v4, 0.0 }
0x1cfa   :  { %5559 = vadd.xlane.f32.xlu0 %v5558_v10 }
0x1cfb   :  { %v10829_v8 = vpop.eup %10828 }
0x1cfc   :  { %v10831_v11 = vpop.eup %10830  ;;  %v5387_v12 = vsel %vm470_vm7, %v10829_v8, 0.0 }
0x1cfd   :  { %5388 = vadd.xlane.f32.xlu1 %v5387_v12  ;;  %v5384_v14 = vsel %vm470_vm7, %v10831_v11, 0.0 }
0x1cfe   :  { %5385 = vadd.xlane.f32.xlu0 %v5384_v14 }
0x1d86   :  { %v5563_v16 = vpop.xlane.xlu1 %5562 }
0x1d87   :  { %10832 = vrcp.f32 %v5563_v16  ;;  %v5560_v15 = vpop.xlane.xlu0 %5559 }
0x1d88   :  { %10834 = vrcp.f32 %v5560_v15  ;;  %v6185_v15 = vmul.f32 %v11124_v13, %v11477_v24 }
0x1d8a   :  { %v5389_v18 = vpop.xlane.xlu1 %5388 }
0x1d8b   :  { %10836 = vrcp.f32 %v5389_v18  ;;  %v5386_v19 = vpop.xlane.xlu0 %5385  ;;  %v6357_v18 = vmul.f32 %v11124_v13, %v11492_v30 }
0x1d8c   :  { %10838 = vrcp.f32 %v5386_v19 }
0x1d91   :  { %v10833_v36 = vpop.eup %10832 }
0x1d92   :  { %v10835_v22 = vpop.eup %10834  ;;  %v5567_v21 = vmul.f32 %v10833_v36, %v10825_v3 }
0x1d93   :  { %v5565_v23 = vmul.f32 %v10835_v22, %v10827_v4 }
0x1d94   :  { %10265 = vmatmul.mubr.msk.f32.vlgmr.msra.gmra.mrb[66].mxu0 %vm470_vm7, %v5567_v21 }
0x1d95   :  { %v10837_v31 = vpop.eup %10836  ;;  %10273 = vmatpush3.msra.mxu0 %v5395_v25  ;;  %10260 = vmatmul.mubr.msk.f32.vlgmr.msra.gmra.mrb[68].mxu1 %vm470_vm7, %v5565_v23 }
0x1d96   :  { %v10839_v33 = vpop.eup %10838  ;;  %v5393_v34 = vmul.f32 %v10837_v31, %v10829_v8  ;;  %10268 = vmatpush3.msra.mxu1 %v5394_v29  ;;  %10274 = vmatprep.mubr.msk.f32.mxu0 %vm10945_vm0, %v10946_v1 }
0x1d97   :  { %v5391_v37 = vmul.f32 %v10839_v33, %v10831_v11  ;;  %10269 = vmatprep.mubr.msk.f32.mxu1 %vm10945_vm0, %v10946_v1  ;;  %10282 = vmatprep.subr.mxu0 %v10946_v1 }
0x1d98   :  { %10275 = vmatmul.mubr.msk.f32.vlgmr.msra.gmra.mrb[68].mxu0 %vm470_vm7, %v5393_v34  ;;  %10277 = vmatprep.subr.mxu1 %v10946_v1 }
0x1d99   :  { %10270 = vmatmul.mubr.msk.f32.vlgmr.msra.gmra.mrb[70].mxu1 %vm470_vm7, %v5391_v37  ;;  %10284 = vmatprep.mubr.msk.f32.mxu0 %vm10945_vm0, %v10946_v1 }
0x1d9a   :  { %10279 = vmatprep.mubr.msk.f32.mxu1 %vm10945_vm0, %v10946_v1 }
0x1d9c   :  { %10283 = vmatpush3.xpose.msk.msra.mxu0 %vm73_vm2, %v11481_v27 }
0x1d9d   :  { %10278 = vmatpush3.xpose.msk.msra.mxu1 %vm73_vm2, %v11483_v28  ;;  %10292 = vmatprep.subr.mxu0 %v10946_v1 }
0x1d9e   :  { %10287 = vmatprep.subr.mxu1 %v10946_v1 }
0x1d9f   :  { %10285 = vmatmul.mubr.msk.f32.vlgmr.msra.gmra.mrb[70].mxu0 %vm73_vm2, %v5863_v44 }
0x1da0   :  { %10280 = vmatmul.mubr.msk.f32.vlgmr.msra.gmra.mrb[72].mxu1 %vm73_vm2, %v5862_v48  ;;  %10293 = vmatpush3.msra.mxu0 %v6035_v50 }
0x1da1   :  { %10288 = vmatpush3.msra.mxu1 %v6034_v39  ;;  %10294 = vmatprep.mubr.msk.f32.mxu0 %vm10945_vm0, %v10946_v1 }
0x1da2   :  { %10302 = vmatprep.subr.mxu0 %v10946_v1  ;;  %10289 = vmatprep.mubr.msk.f32.mxu1 %vm10945_vm0, %v10946_v1 }
0x1da3   :  { %10297 = vmatprep.subr.mxu1 %v10946_v1 }
0x1e67   :  { %v5712_v41 = vpop.f32.mrb[66].mxu0 }
0x1e68   :  { %v5639_v42 = vpop.f32.mrb[68].mxu1  ;;  %v10266_v43 = vpop.f32.mrb[67].mxu0 }
0x1e69   :  { %v10261_v40 = vpop.f32.mrb[69].mxu1 }
0x1e6b   :  { %v5858_v45 = vpop.f32.mrb[68].mxu0 }
0x1e6c   :  { %v5859_v46 = vadd.f32 %v5858_v45, %v5712_v41  ;;  %v5785_v47 = vpop.f32.mrb[70].mxu1  ;;  %v10276_v52 = vpop.f32.mrb[69].mxu0 }
0x1e6d   :  { %v5786_v49 = vadd.f32 %v5785_v47, %v5639_v42  ;;  %v10271_v51 = vpop.f32.mrb[71].mxu1  ;;  %v6508_v52 = vld [vmem:[#allocation4 + $0x238] sm:$0xff] }
0x1e72   :  { %v6006_v53 = vpop.f32.mrb[70].mxu0 }
0x1e73   :  { %v6011_v56 = vmul.f32 0.17677669, %v6006_v53  ;;  %v5933_v57 = vpop.f32.mrb[72].mxu1  ;;  %v10286_v54 = vpop.f32.mrb[71].mxu0 }
0x1e74   :  { %v6010_v55 = vmul.f32 0.17677669, %v5933_v57  ;;  %v10281_v58 = vpop.f32.mrb[73].mxu1 }
0x1e75   :  { %v6015_v59 = vsel %vm470_vm7, %v6011_v56, -inf }
0x1e76   :  { %6016 = vmax.xlane.f32.xlu1 %v6015_v59  ;;  %v6012_v7 = vsel %vm470_vm7, %v6010_v55, -inf  ;;  %v6510_v59 = vld [vmem:[#allocation4 + $0x248] sm:$0xff] }
0x1e77   :  { %6013 = vmax.xlane.f32.xlu0 %v6012_v7  ;;  %v6511_v7 = vld [vmem:[#allocation4 + $0x250] sm:$0xff] }
0x1f03   :  { %v6017_v6 = vpop.xlane.xlu1 %6016 }
0x1f04   :  { %v6019_v60 = vsub.f32 %v6011_v56, %v6017_v6  ;;  %v6014_v9 = vpop.xlane.xlu0 %6013  ;;  %v10655_v6 = vpack.c.bf16 %v6511_v7, %v6510_v59 }
0x1f05   :  { %v6018_v62 = vsub.f32 %v6010_v55, %v6014_v9  ;;  %v6604_v9 = vld [vmem:[#allocation4 + $0x270] sm:$0xff] }
0x1f06   :  { %v6022_v63 = vmul.f32 1.442695, %v6019_v60  ;;  %v6603_v60 = vld [vmem:[#allocation4 + $0x268] sm:$0xff] }
0x1f07   :  { %v6020_v61 = vmul.f32 1.442695, %v6018_v62  ;;  %v6605_v62 = vld [vmem:[#allocation4 + $0x278] sm:$0xff] }
0x1f08   :  { %10840 = vpow2.f32 %v6022_v63  ;;  %v10660_v63 = vpack.c.bf16 %v6604_v9, %v6603_v60 }
0x1f09   :  { %10842 = vpow2.f32 %v6020_v61  ;;  %v6606_v61 = vld [vmem:[#allocation4 + $0x280] sm:$0xff] }
0x1f12   :  { %v10841_v2 = vpop.eup %10840 }
0x1f13   :  { %v10843_v3 = vpop.eup %10842  ;;  %v6027_v4 = vsel %vm470_vm7, %v10841_v2, 0.0 }
0x1f14   :  { %6028 = vadd.xlane.f32.xlu1 %v6027_v4  ;;  %v6024_v5 = vsel %vm470_vm7, %v10843_v3, 0.0 }
0x1f15   :  { %6025 = vadd.xlane.f32.xlu0 %v6024_v5 }
0x1fa1   :  { %v6029_v10 = vpop.xlane.xlu1 %6028 }
0x1fa2   :  { %10844 = vrcp.f32 %v6029_v10  ;;  %v6026_v8 = vpop.xlane.xlu0 %6025 }
0x1fa3   :  { %10846 = vrcp.f32 %v6026_v8 }
0x1fac   :  { %v10845_v11 = vpop.eup %10844 }
0x1fad   :  { %v10847_v12 = vpop.eup %10846  ;;  %v6033_v14 = vmul.f32 %v10845_v11, %v10841_v2  ;;  %v10663_v2 = vpack.c.bf16 %v6606_v61, %v6605_v62 }
0x1fae   :  { %v6031_v16 = vmul.f32 %v10847_v12, %v10843_v3 }
0x1faf   :  { %10295 = vmatmul.mubr.msk.f32.vlgmr.msra.gmra.mrb[72].mxu0 %vm470_vm7, %v6033_v14 }
0x1fb0   :  { %10303 = vmatpush3.xpose.msk.msra.mxu0 %vm73_vm2, %v11481_v27  ;;  %10290 = vmatmul.mubr.msk.f32.vlgmr.msra.gmra.mrb[74].mxu1 %vm470_vm7, %v6031_v16  ;;  %v6184_v27 = vmul.f32 %v11124_v13, %v11479_v20  ;;  %v6681_v16 = vld [vmem:[#allocation4 + $0x290] sm:$0xff] }
0x1fb1   :  { %10298 = vmatpush3.xpose.msk.msra.mxu1 %vm73_vm2, %v11483_v28  ;;  %10304 = vmatprep.mubr.msk.f32.mxu0 %vm10945_vm0, %v10946_v1  ;;  %v6356_v28 = vmul.f32 %v11124_v13, %v11497_v35 }
0x1fb2   :  { %10312 = vmatprep.subr.mxu0 %v10946_v1  ;;  %10299 = vmatprep.mubr.msk.f32.mxu1 %vm10945_vm0, %v10946_v1 }
0x1fb3   :  { %10305 = vmatmul.mubr.msk.f32.vlgmr.msra.gmra.mrb[74].mxu0 %vm73_vm2, %v6185_v15  ;;  %10307 = vmatprep.subr.mxu1 %v10946_v1  ;;  %v6682_v15 = vld [vmem:[#allocation4 + $0x298] sm:$0xff] }
0x1fb4   :  { %10313 = vmatpush3.msra.mxu0 %v6357_v18  ;;  %10300 = vmatmul.mubr.msk.f32.vlgmr.msra.gmra.mrb[76].mxu1 %vm73_vm2, %v6184_v27  ;;  %v6771_v18 = vld [vmem:[#allocation4 + $0x2b8] sm:$0xff]  ;;  %v10665_v27 = vpack.c.bf16 %v6682_v15, %v6681_v16 }
0x1fb5   :  { %10308 = vmatpush3.msra.mxu1 %v6356_v28  ;;  %10314 = vmatprep.mubr.msk.f32.mxu0 %vm10945_vm0, %v10946_v1  ;;  %v6772_v28 = vld [vmem:[#allocation4 + $0x2c0] sm:$0xff] }
0x1fb6   :  { %10309 = vmatprep.mubr.msk.f32.mxu1 %vm10945_vm0, %v10946_v1  ;;  %10659 = vmatprep.subr.bf16.mxu0 %v10944_v0 }
0x2082   :  { %v6178_v30 = vpop.f32.mrb[72].mxu0 }
0x2083   :  { %v6183_v19 = vadd.f32 %v6178_v30, %v5859_v46  ;;  %v6105_v36 = vpop.f32.mrb[74].mxu1  ;;  %v10296_v22 = vpop.f32.mrb[73].mxu0  ;;  %v10673_v30 = vpack.c.bf16 %v6772_v28, %v6771_v18 }
0x2084   :  { %v6182_v21 = vadd.f32 %v6105_v36, %v5786_v49  ;;  %v10291_v23 = vpop.f32.mrb[75].mxu1  ;;  %v6509_v49 = vld [vmem:[#allocation4 + $0x240] sm:$0xff]  ;;  %v6684_v22 = vld [vmem:[#allocation4 + $0x2a8] sm:$0xff] }
0x2085   :  { %v10651_v51 = vpack.c.bf16 %v6509_v49, %v6508_v52  ;;  %v6683_v36 = vld [vmem:[#allocation4 + $0x2a0] sm:$0xff]  ;;  %v9474_v49 = vld [vmem:[#allocation4 + $0x2d8] ss:$0 sm:$0xff] }
0x2086   :  { %v6328_v25 = vpop.f32.mrb[74].mxu0 }
0x2087   :  { %v6333_v35 = vmul.f32 0.17677669, %v6328_v25  ;;  %v6255_v29 = vpop.f32.mrb[76].mxu1  ;;  %v10306_v31 = vpop.f32.mrb[75].mxu0  ;;  %10652 = vmatprep.subr.bf16.mxu1 %v10651_v51  ;;  %v9467_v25 = vld [vmem:[#allocation4 + $0x258] ss:$0 sm:$0xff] }
0x2088   :  { %v6332_v33 = vmul.f32 0.17677669, %v6255_v29  ;;  %v10301_v34 = vpop.f32.mrb[77].mxu1 }
0x2089   :  { %v6337_v37 = vsel %vm470_vm7, %v6333_v35, -inf }
0x208a   :  { %6338 = vmax.xlane.f32.xlu1 %v6337_v37  ;;  %v6334_v44 = vsel %vm470_vm7, %v6332_v33, -inf }
0x208b   :  { %6335 = vmax.xlane.f32.xlu0 %v6334_v44 }
0x2117   :  { %v6339_v48 = vpop.xlane.xlu1 %6338 }
0x2118   :  { %v6341_v50 = vsub.f32 %v6333_v35, %v6339_v48  ;;  %v6336_v39 = vpop.xlane.xlu0 %6335 }
0x2119   :  { %v6340_v41 = vsub.f32 %v6332_v33, %v6336_v39 }
0x211a   :  { %v6344_v42 = vmul.f32 1.442695, %v6341_v50 }
0x211b   :  { %v6342_v43 = vmul.f32 1.442695, %v6340_v41  ;;  %v6607_v41 = vld [vmem:[#allocation4 + $0x288] sm:$0x1] }
0x211c   :  { %10848 = vpow2.f32 %v6344_v42 }
0x211d   :  { %10850 = vpow2.f32 %v6342_v43  ;;  %v9471_v43 = vld [vmem:[#allocation4 + $0x2b0] ss:$0 sm:$0xff] }
0x2126   :  { %v10849_v40 = vpop.eup %10848 }
0x2127   :  { %v10851_v45 = vpop.eup %10850  ;;  %v6349_v46 = vsel %vm470_vm7, %v10849_v40, 0.0 }
0x2128   :  { %6350 = vadd.xlane.f32.xlu1 %v6349_v46  ;;  %v6346_v47 = vsel %vm470_vm7, %v10851_v45, 0.0 }
0x2129   :  { %6347 = vadd.xlane.f32.xlu0 %v6346_v47 }
0x21b5   :  { %v6351_v53 = vpop.xlane.xlu1 %6350 }
0x21b6   :  { %10852 = vrcp.f32 %v6351_v53  ;;  %v6348_v56 = vpop.xlane.xlu0 %6347 }
0x21b7   :  { %10854 = vrcp.f32 %v6348_v56 }
0x21c0   :  { %v10853_v57 = vpop.eup %10852 }
0x21c1   :  { %v10855_v54 = vpop.eup %10854  ;;  %v6355_v55 = vmul.f32 %v10853_v57, %v10849_v40 }
0x21c2   :  { %v6353_v58 = vmul.f32 %v10855_v54, %v10851_v45 }
0x21c3   :  { %10315 = vmatmul.mubr.msk.f32.vlgmr.msra.gmra.mrb[76].mxu0 %vm470_vm7, %v6355_v55 }
0x21c4   :  { %10310 = vmatmul.mubr.msk.f32.vlgmr.msra.gmra.mrb[78].mxu1 %vm470_vm7, %v6353_v58  ;;  %10336 = vmatprep.mubr.msk.f32.mxu0 %vm10945_vm0, %v10946_v1 }
0x21c5   :  { %10654 = vmatpush3.bf16.msra.mxu1 %v10651_v51  ;;  %10661 = vmatpush3.bf16.msra.mxu0 %v10660_v63 }
0x21c6   :  { %10656 = vmatprep.subr.bf16.mxu1 %v10655_v6  ;;  %10662 = vmatprep.subr.bf16.mxu0 %v10944_v0 }
0x21c9   :  { %10658 = vmatpush3.bf16.msra.mxu1 %v10655_v6  ;;  %10664 = vmatpush3.bf16.msra.mxu0 %v10663_v2 }
0x21ca   :  { %10666 = vmatprep.subr.bf16.mxu1 %v10665_v27  ;;  %10674 = vmatprep.subr.bf16.mxu0 %v10673_v30 }
0x2296   :  { %v6500_v3 = vpop.f32.mrb[76].mxu0 }
0x2297   :  { %v6505_v4 = vadd.f32 %v6500_v3, %v6183_v19  ;;  %v6427_v5 = vpop.f32.mrb[78].mxu1  ;;  %v10316_v10 = vpop.f32.mrb[77].mxu0  ;;  %v6602_v19 = vld [vmem:[#allocation4 + $0x260] sm:$0x1] }
0x2298   :  { %v6504_v8 = vadd.f32 %v6427_v5, %v6182_v21  ;;  %v10311_v11 = vpop.f32.mrb[79].mxu1  ;;  %10337 = vmatmul.mubr.msk.f32.vlgmr.msra.gmra.mrb[78].mxu0 %vm73_vm2, %v6602_v19  ;;  %v6774_v21 = vld [vmem:[#allocation4 + $0x2d0] sm:$0xff] }
0x2299   :  { %v6507_v14 = vadd.f32 %v6505_v4, %v11477_v24  ;;  %10676 = vmatpush3.bf16.msra.mxu0 %v10673_v30  ;;  %v10669_v24 = vpack.c.bf16 %v6684_v22, %v6683_v36 }
0x229a   :  { %v6506_v12 = vadd.f32 %v6504_v8, %v11479_v20  ;;  %v6773_v20 = vld [vmem:[#allocation4 + $0x2c8] sm:$0xff] }
0x229b   :  { %v10677_v23 = vpack.c.bf16 %v6774_v21, %v6773_v20 }
0x229c   :  { %10325 = vmatprep.mubr.msk.f32.mxu1 %vm73_vm2, %v6506_v12 }
0x229d   :  { %10326 = vmatmul.mubr.msk.f32.vlgmr.msra.gmra.mrb[80].mxu1 %vm73_vm2, %v6507_v14  ;;  %10678 = vmatprep.subr.bf16.mxu0 %v10677_v23 }
0x229e   :  { %10668 = vmatpush3.bf16.msra.mxu1 %v10665_v27  ;;  %10680 = vmatpush3.bf16.msra.mxu0 %v10677_v23 }
0x229f   :  { %10670 = vmatprep.subr.bf16.mxu1 %v10669_v24  ;;  %10366 = vmatprep.subr.mxu0 %v10946_v1 }
0x22a2   :  { %10672 = vmatpush3.bf16.msra.mxu1 %v10669_v24 }
0x22a3   :  { %10361 = vmatprep.subr.mxu1 %v10946_v1 }
0x236b   :  { %v6677_v50 = vpop.f32.mrb[78].mxu0 }
0x236c   :  { %v10338_v39 = vpop.f32.mrb[79].mxu0  ;;  %v11630_v42 = vadd.f32 %v6677_v50, %v6607_v41 }
0x236e   :  { %v6855_v53 = vmul.f32 %v11021_v26, %v11630_v42  ;;  %v7032_v54 = vmul.f32 %v11034_v32, %v11630_v42 }
0x2370   :  { %v10327_v35 = vpop.f32.mrb[80].mxu1 }
0x2371   :  { %v6595_v29 = vadd.f32 %v10327_v35, %v9467_v25  ;;  %v6589_v31 = vpop.f32.mrb[81].mxu1 }
0x2372   :  { %v6590_v33 = vadd.f32 %v9467_v25, %v6589_v31 }
0x2373   :  { %v6599_v34 = vmax.f32 %v6595_v29, 0.0 }
0x2374   :  { %v6598_v37 = vmax.f32 %v6590_v33, 0.0 }
0x2375   :  { %v6601_v48 = vadd.f32 %v6599_v34, %v6507_v14 }
0x2376   :  { %v6600_v44 = vadd.f32 %v6598_v37, %v6506_v12 }
0x2378   :  { %10347 = vmatprep.mubr.msk.f32.mxu1 %vm73_vm2, %v6600_v44  ;;  %10358 = vmatprep.mubr.msk.f32.mxu0 %vm73_vm2, %v6600_v44 }
0x2379   :  { %10348 = vmatmul.mubr.msk.f32.vlgmr.msra.gmra.mrb[82].mxu1 %vm73_vm2, %v6601_v48  ;;  %10359 = vmatmul.mubr.msk.f32.vlgmr.msra.gmra.mrb[80].mxu0 %vm73_vm2, %v6601_v48 }
0x237a   :  { %10368 = vmatprep.mubr.msk.f32.mxu0 %vm10945_vm0, %v10946_v1  ;;  %10363 = vmatprep.mubr.msk.f32.mxu1 %vm10945_vm0, %v10946_v1 }
0x244c   :  { %v10349_v40 = vpop.f32.mrb[82].mxu1  ;;  %v10360_v45 = vpop.f32.mrb[80].mxu0 }
0x244d   :  { %v11632_v46 = vadd.f32 %v10349_v40, %v9471_v43  ;;  %v6762_v47 = vpop.f32.mrb[83].mxu1  ;;  %v6846_v52 = vpop.f32.mrb[81].mxu0  ;;  %v11643_v56 = vadd.f32 %v10360_v45, %v9474_v49 }
0x244e   :  { %v11634_v51 = vadd.f32 %v9471_v43, %v6762_v47  ;;  %v11646_v57 = vadd.f32 %v9474_v49, %v6846_v52 }
0x244f   :  { %10367 = vmatpush3.xpose.msk.msra.mxu0 %vm73_vm2, %v11632_v46  ;;  %v7201_v55 = vmul.f32 %v11034_v32, %v11643_v56  ;;  %v7031_v40 = vmul.f32 %v11021_v26, %v11643_v56 }
0x2450   :  { %10362 = vmatpush3.xpose.msk.msra.mxu1 %vm73_vm2, %v11634_v51  ;;  %10376 = vmatprep.subr.mxu0 %v10946_v1  ;;  %v7200_v58 = vmul.f32 %v11034_v32, %v11646_v57  ;;  %v7030_v45 = vmul.f32 %v11021_v26, %v11646_v57  ;;  %v7494_v26 = vmul.f32 %v11091_v38, %v11630_v42 }
0x2451   :  { %10371 = vmatprep.subr.mxu1 %v10946_v1 }
0x2452   :  { %10369 = vmatmul.mubr.msk.f32.vlgmr.msra.gmra.mrb[82].mxu0 %vm73_vm2, %v6855_v53 }
0x2453   :  { %10364 = vmatmul.mubr.msk.f32.vlgmr.msra.gmra.mrb[84].mxu1 %vm73_vm2, %v6855_v53  ;;  %10377 = vmatpush3.xpose.msk.msra.mxu0 %vm73_vm2, %v11632_v46 }
0x2454   :  { %10372 = vmatpush3.xpose.msk.msra.mxu1 %vm73_vm2, %v11634_v51  ;;  %10378 = vmatprep.mubr.msk.f32.mxu0 %vm10945_vm0, %v10946_v1 }
0x2455   :  { %10373 = vmatprep.mubr.msk.f32.mxu1 %vm10945_vm0, %v10946_v1  ;;  %10386 = vmatprep.subr.mxu0 %v10946_v1 }
0x2456   :  { %10379 = vmatmul.mubr.msk.f32.vlgmr.msra.gmra.mrb[84].mxu0 %vm73_vm2, %v7032_v54  ;;  %10381 = vmatprep.subr.mxu1 %v10946_v1 }
0x2457   :  { %10374 = vmatmul.mubr.msk.f32.vlgmr.msra.gmra.mrb[86].mxu1 %vm73_vm2, %v7032_v54  ;;  %10387 = vmatpush3.msra.mxu0 %v7201_v55  ;;  %v7663_v54 = vmul.f32 %v11091_v38, %v11643_v56  ;;  %v7662_v55 = vmul.f32 %v11091_v38, %v11646_v57 }
0x2458   :  { %10382 = vmatpush3.msra.mxu1 %v7200_v58  ;;  %10388 = vmatprep.mubr.msk.f32.mxu0 %vm10945_vm0, %v10946_v1 }
0x2459   :  { %10396 = vmatprep.subr.mxu0 %v10946_v1  ;;  %10383 = vmatprep.mubr.msk.f32.mxu1 %vm10945_vm0, %v10946_v1 }
0x245a   :  { %10391 = vmatprep.subr.mxu1 %v10946_v1 }
0x2525   :  { %v7001_v59 = vpop.f32.mrb[82].mxu0 }
0x2526   :  { %v6928_v7 = vpop.f32.mrb[84].mxu1  ;;  %v10370_v6 = vpop.f32.mrb[83].mxu0  ;;  %v7006_v3 = vmul.f32 0.17677669, %v7001_v59 }
0x2527   :  { %v10365_v60 = vpop.f32.mrb[85].mxu1  ;;  %v7005_v5 = vmul.f32 0.17677669, %v6928_v7 }
0x2528   :  { %v7011_v8 = vsel %vm7007_vm14, %v7006_v3, -inf }
0x2529   :  { %v7172_v9 = vpop.f32.mrb[84].mxu0  ;;  %v7008_v11 = vsel %vm7007_vm14, %v7005_v5, -inf }
0x252a   :  { %v7177_v32 = vmul.f32 0.17677669, %v7172_v9  ;;  %v7102_v62 = vpop.f32.mrb[86].mxu1  ;;  %v10380_v63 = vpop.f32.mrb[85].mxu0 }
0x252b   :  { %v7176_v61 = vmul.f32 0.17677669, %v7102_v62  ;;  %v10375_v2 = vpop.f32.mrb[87].mxu1 }
0x252c   :  { %v7181_v4 = vsel %vm7007_vm14, %v7177_v32, -inf }
0x252d   :  { %7182 = vmax.xlane.f32.xlu0 %v7181_v4  ;;  %v7178_v10 = vsel %vm7007_vm14, %v7176_v61, -inf }
0x252e   :  { %7179 = vmax.xlane.f32.xlu1 %v7178_v10 }
0x2531   :  { %7012 = vmax.xlane.f32.xlu0 %v7011_v8 }
0x2532   :  { %7009 = vmax.xlane.f32.xlu1 %v7008_v11 }
0x25ba   :  { %v7183_v12 = vpop.xlane.xlu0 %7182 }
0x25bb   :  { %v7185_v14 = vsub.f32 %v7177_v32, %v7183_v12  ;;  %v7180_v16 = vpop.xlane.xlu1 %7179 }
0x25bc   :  { %v7184_v15 = vsub.f32 %v7176_v61, %v7180_v16 }
0x25bd   :  { %v7188_v18 = vmul.f32 1.442695, %v7185_v14 }
0x25be   :  { %v7186_v27 = vmul.f32 1.442695, %v7184_v15  ;;  %v7013_v28 = vpop.xlane.xlu0 %7012 }
0x25bf   :  { %10856 = vpow2.f32 %v7188_v18  ;;  %v7015_v30 = vsub.f32 %v7006_v3, %v7013_v28  ;;  %v7010_v19 = vpop.xlane.xlu1 %7009 }
0x25c0   :  { %10858 = vpow2.f32 %v7186_v27  ;;  %v7014_v36 = vsub.f32 %v7005_v5, %v7010_v19 }
0x25c1   :  { %v7018_v22 = vmul.f32 1.442695, %v7015_v30 }
0x25c2   :  { %v7016_v20 = vmul.f32 1.442695, %v7014_v36 }
0x25c3   :  { %10860 = vpow2.f32 %v7018_v22 }
0x25c4   :  { %10862 = vpow2.f32 %v7016_v20 }
0x25c9   :  { %v10857_v24 = vpop.eup %10856 }
0x25ca   :  { %v10859_v21 = vpop.eup %10858  ;;  %v7193_v23 = vsel %vm7007_vm14, %v10857_v24, 0.0 }
0x25cb   :  { %7194 = vadd.xlane.f32.xlu0 %v7193_v23  ;;  %v7190_v25 = vsel %vm7007_vm14, %v10859_v21, 0.0 }
0x25cc   :  { %7191 = vadd.xlane.f32.xlu1 %v7190_v25 }
0x25cd   :  { %v10861_v35 = vpop.eup %10860 }
0x25ce   :  { %v10863_v29 = vpop.eup %10862  ;;  %v7023_v31 = vsel %vm7007_vm14, %v10861_v35, 0.0 }
0x25cf   :  { %7024 = vadd.xlane.f32.xlu0 %v7023_v31  ;;  %v7020_v33 = vsel %vm7007_vm14, %v10863_v29, 0.0 }
0x25d0   :  { %7021 = vadd.xlane.f32.xlu1 %v7020_v33 }
0x2658   :  { %v7195_v34 = vpop.xlane.xlu0 %7194 }
0x2659   :  { %10864 = vrcp.f32 %v7195_v34  ;;  %v7192_v37 = vpop.xlane.xlu1 %7191 }
0x265a   :  { %10866 = vrcp.f32 %v7192_v37 }
0x265c   :  { %v7025_v44 = vpop.xlane.xlu0 %7024 }
0x265d   :  { %10868 = vrcp.f32 %v7025_v44  ;;  %v7022_v48 = vpop.xlane.xlu1 %7021 }
0x265e   :  { %10870 = vrcp.f32 %v7022_v48 }
0x2663   :  { %v10865_v50 = vpop.eup %10864 }
0x2664   :  { %v10867_v39 = vpop.eup %10866  ;;  %v7199_v41 = vmul.f32 %v10865_v50, %v10857_v24 }
0x2665   :  { %v7197_v43 = vmul.f32 %v10867_v39, %v10859_v21 }
0x2666   :  { %10389 = vmatmul.mubr.msk.f32.vlgmr.msra.gmra.mrb[86].mxu0 %vm470_vm7, %v7199_v41 }
0x2667   :  { %v10869_v47 = vpop.eup %10868  ;;  %10397 = vmatpush3.msra.mxu0 %v7031_v40  ;;  %10384 = vmatmul.mubr.msk.f32.vlgmr.msra.gmra.mrb[88].mxu1 %vm470_vm7, %v7197_v43 }
0x2668   :  { %v10871_v52 = vpop.eup %10870  ;;  %v7029_v49 = vmul.f32 %v10869_v47, %v10861_v35  ;;  %10392 = vmatpush3.msra.mxu1 %v7030_v45  ;;  %10398 = vmatprep.mubr.msk.f32.mxu0 %vm10945_vm0, %v10946_v1  ;;  %v7812_v35 = vmul.f32 %v11124_v13, %v11630_v42 }
0x2669   :  { %v7027_v53 = vmul.f32 %v10871_v52, %v10863_v29  ;;  %10393 = vmatprep.mubr.msk.f32.mxu1 %vm10945_vm0, %v10946_v1  ;;  %10406 = vmatprep.subr.mxu0 %v10946_v1  ;;  %v7981_v29 = vmul.f32 %v11124_v13, %v11643_v56 }
0x266a   :  { %10399 = vmatmul.mubr.msk.f32.vlgmr.msra.gmra.mrb[88].mxu0 %vm470_vm7, %v7029_v49  ;;  %10401 = vmatprep.subr.mxu1 %v10946_v1 }
0x266b   :  { %10394 = vmatmul.mubr.msk.f32.vlgmr.msra.gmra.mrb[90].mxu1 %vm470_vm7, %v7027_v53  ;;  %10408 = vmatprep.mubr.msk.f32.mxu0 %vm10945_vm0, %v10946_v1 }
0x266c   :  { %10403 = vmatprep.mubr.msk.f32.mxu1 %vm10945_vm0, %v10946_v1 }
0x266e   :  { %10407 = vmatpush3.xpose.msk.msra.mxu0 %vm73_vm2, %v11632_v46 }
0x266f   :  { %10402 = vmatpush3.xpose.msk.msra.mxu1 %vm73_vm2, %v11634_v51  ;;  %10416 = vmatprep.subr.mxu0 %v10946_v1 }
0x2670   :  { %10411 = vmatprep.subr.mxu1 %v10946_v1 }
0x2671   :  { %10409 = vmatmul.mubr.msk.f32.vlgmr.msra.gmra.mrb[90].mxu0 %vm73_vm2, %v7494_v26 }
0x2672   :  { %10404 = vmatmul.mubr.msk.f32.vlgmr.msra.gmra.mrb[92].mxu1 %vm73_vm2, %v7494_v26  ;;  %10417 = vmatpush3.msra.mxu0 %v7663_v54 }
0x2673   :  { %10412 = vmatpush3.msra.mxu1 %v7662_v55  ;;  %10418 = vmatprep.mubr.msk.f32.mxu0 %vm10945_vm0, %v10946_v1 }
0x2674   :  { %10426 = vmatprep.subr.mxu0 %v10946_v1  ;;  %10413 = vmatprep.mubr.msk.f32.mxu1 %vm10945_vm0, %v10946_v1 }
0x2675   :  { %10421 = vmatprep.subr.mxu1 %v10946_v1 }
0x2739   :  { %v7344_v58 = vpop.f32.mrb[86].mxu0 }
0x273a   :  { %v7271_v59 = vpop.f32.mrb[88].mxu1  ;;  %v10390_v7 = vpop.f32.mrb[87].mxu0 }
0x273b   :  { %v10385_v6 = vpop.f32.mrb[89].mxu1 }
0x273d   :  { %v7490_v60 = vpop.f32.mrb[88].mxu0 }
0x273e   :  { %v7491_v38 = vadd.f32 %v7490_v60, %v7344_v58  ;;  %v7417_v9 = vpop.f32.mrb[90].mxu1  ;;  %v10400_v32 = vpop.f32.mrb[89].mxu0 }
0x273f   :  { %v7418_v62 = vadd.f32 %v7417_v9, %v7271_v59  ;;  %v10395_v63 = vpop.f32.mrb[91].mxu1  ;;  %v8132_v32 = vld [vmem:[#allocation4 + $0x2e0] sm:$0xff] }
0x2744   :  { %v7634_v61 = vpop.f32.mrb[90].mxu0 }
0x2745   :  { %v7639_v2 = vmul.f32 0.17677669, %v7634_v61  ;;  %v7564_v3 = vpop.f32.mrb[92].mxu1  ;;  %v10410_v4 = vpop.f32.mrb[91].mxu0  ;;  %v8134_v61 = vld [vmem:[#allocation4 + $0x2f0] sm:$0xff] }
0x2746   :  { %v7638_v5 = vmul.f32 0.17677669, %v7564_v3  ;;  %v10405_v10 = vpop.f32.mrb[93].mxu1 }
0x2747   :  { %v7643_v8 = vsel %vm7007_vm14, %v7639_v2, -inf }
0x2748   :  { %7644 = vmax.xlane.f32.xlu0 %v7643_v8  ;;  %v7640_v11 = vsel %vm7007_vm14, %v7638_v5, -inf }
0x2749   :  { %7641 = vmax.xlane.f32.xlu1 %v7640_v11 }
0x27d5   :  { %v7645_v12 = vpop.xlane.xlu0 %7644 }
0x27d6   :  { %v7647_v14 = vsub.f32 %v7639_v2, %v7645_v12  ;;  %v7642_v16 = vpop.xlane.xlu1 %7641  ;;  %v8135_v2 = vld [vmem:[#allocation4 + $0x2f8] sm:$0xff] }
0x27d7   :  { %v7646_v15 = vsub.f32 %v7638_v5, %v7642_v16  ;;  %v10685_v3 = vpack.c.bf16 %v8135_v2, %v8134_v61  ;;  %v8500_v61 = vld [vmem:[#allocation4 + $0x398] sm:$0xff] }
0x27d8   :  { %v7650_v18 = vmul.f32 1.442695, %v7647_v14 }
0x27d9   :  { %v7648_v27 = vmul.f32 1.442695, %v7646_v15 }
0x27da   :  { %10872 = vpow2.f32 %v7650_v18 }
0x27db   :  { %10874 = vpow2.f32 %v7648_v27  ;;  %v8246_v27 = vld [vmem:[#allocation4 + $0x308] sm:$0xff] }
0x27e4   :  { %v10873_v28 = vpop.eup %10872 }
0x27e5   :  { %v10875_v30 = vpop.eup %10874  ;;  %v7655_v19 = vsel %vm7007_vm14, %v10873_v28, 0.0 }
0x27e6   :  { %7656 = vadd.xlane.f32.xlu0 %v7655_v19  ;;  %v7652_v36 = vsel %vm7007_vm14, %v10875_v30, 0.0  ;;  %v8248_v19 = vld [vmem:[#allocation4 + $0x318] sm:$0xff] }
0x27e7   :  { %7653 = vadd.xlane.f32.xlu1 %v7652_v36  ;;  %v8249_v36 = vld [vmem:[#allocation4 + $0x320] sm:$0xff] }
0x2873   :  { %v7657_v22 = vpop.xlane.xlu0 %7656 }
0x2874   :  { %10876 = vrcp.f32 %v7657_v22  ;;  %v7654_v20 = vpop.xlane.xlu1 %7653  ;;  %v10691_v22 = vpack.c.bf16 %v8249_v36, %v8248_v19  ;;  %v9511_v36 = vld [vmem:[#allocation4 + $0x3b8] ss:$0 sm:$0xff] }
0x2875   :  { %10878 = vrcp.f32 %v7654_v20  ;;  %v8332_v20 = vld [vmem:[#allocation4 + $0x338] sm:$0xff] }
0x287e   :  { %v10877_v24 = vpop.eup %10876 }
0x287f   :  { %v10879_v21 = vpop.eup %10878  ;;  %v7661_v23 = vmul.f32 %v10877_v24, %v10873_v28  ;;  %v8247_v28 = vld [vmem:[#allocation4 + $0x310] sm:$0xff] }
0x2880   :  { %v7659_v25 = vmul.f32 %v10879_v21, %v10875_v30  ;;  %v10688_v30 = vpack.c.bf16 %v8247_v28, %v8246_v27  ;;  %v10947_v21 = vmov 1966171168   ;;  %v8660_v28 = vld [vmem:[#allocation4 + $0x3c0] sm:$0xff] }
0x2881   :  { %10419 = vmatmul.mubr.msk.f32.vlgmr.msra.gmra.mrb[92].mxu0 %vm470_vm7, %v7661_v23  ;;  %v8221_v23 = vunpack.c.l.s4 %v10947_v21  ;;  %v8742_v21 = vld [vmem:[#allocation4 + $0x3e0] sm:$0xff] }
0x2882   :  { %10427 = vmatpush3.xpose.msk.msra.mxu0 %vm73_vm2, %v11632_v46  ;;  %10414 = vmatmul.mubr.msk.f32.vlgmr.msra.gmra.mrb[94].mxu1 %vm470_vm7, %v7659_v25  ;;  %v7980_v46 = vmul.f32 %v11124_v13, %v11646_v57 }
0x2883   :  { %10422 = vmatpush3.xpose.msk.msra.mxu1 %vm73_vm2, %v11634_v51  ;;  %10428 = vmatprep.mubr.msk.f32.mxu0 %vm10945_vm0, %v10946_v1  ;;  %v8222_v25 = vunpack.c.0.s8 %v8221_v23 }
0x2884   :  { %10436 = vmatprep.subr.mxu0 %v10946_v1  ;;  %10423 = vmatprep.mubr.msk.f32.mxu1 %vm10945_vm0, %v10946_v1 }
0x2885   :  { %10429 = vmatmul.mubr.msk.f32.vlgmr.msra.gmra.mrb[94].mxu0 %vm73_vm2, %v7812_v35  ;;  %10431 = vmatprep.subr.mxu1 %v10946_v1 }
0x2886   :  { %10437 = vmatpush3.msra.mxu0 %v7981_v29  ;;  %10424 = vmatmul.mubr.msk.f32.vlgmr.msra.gmra.mrb[96].mxu1 %vm73_vm2, %v7812_v35  ;;  %v8224_v35 = vshrl.u32 %v39_v17, 7  ;;  %v9501_v29 = vld [vmem:[#allocation4 + $0x300] ss:$0 sm:$0xff] }
0x2887   :  { %10432 = vmatpush3.msra.mxu1 %v7980_v46  ;;  %10438 = vmatprep.mubr.msk.f32.mxu0 %vm10945_vm0, %v10946_v1  ;;  %v8333_v17 = vld [vmem:[#allocation4 + $0x340] sm:$0xff] }
0x2888   :  { %10433 = vmatprep.mubr.msk.f32.mxu1 %vm10945_vm0, %v10946_v1  ;;  %10681 = vmatprep.subr.bf16.mxu1 %v10944_v0 }
0x2889   :  { %10687 = vmatprep.subr.bf16.mxu0 %v10944_v0 }
0x2954   :  { %v7806_v51 = vpop.f32.mrb[92].mxu0 }
0x2955   :  { %v7811_v56 = vadd.f32 %v7806_v51, %v7491_v38  ;;  %v7733_v31 = vpop.f32.mrb[94].mxu1  ;;  %v10420_v33 = vpop.f32.mrb[93].mxu0 }
0x2956   :  { %v7810_v34 = vadd.f32 %v7733_v31, %v7418_v62  ;;  %v10415_v13 = vpop.f32.mrb[95].mxu1  ;;  %v8133_v62 = vld [vmem:[#allocation4 + $0x2e8] sm:$0xff] }
0x2957   :  { %v10682_v63 = vpack.c.bf16 %v8133_v62, %v8132_v32 }
0x2958   :  { %v7952_v57 = vpop.f32.mrb[94].mxu0 }
0x2959   :  { %v7957_v37 = vmul.f32 0.17677669, %v7952_v57  ;;  %v7882_v44 = vpop.f32.mrb[96].mxu1  ;;  %v10430_v48 = vpop.f32.mrb[95].mxu0 }
0x295a   :  { %v7956_v50 = vmul.f32 0.17677669, %v7882_v44  ;;  %v10425_v39 = vpop.f32.mrb[97].mxu1 }
0x295b   :  { %v7961_v41 = vsel %vm7007_vm14, %v7957_v37, -inf }
0x295c   :  { %7962 = vmax.xlane.f32.xlu0 %v7961_v41  ;;  %v7958_v43 = vsel %vm7007_vm14, %v7956_v50, -inf  ;;  %v8334_v41 = vld [vmem:[#allocation4 + $0x348] sm:$0xff] }
0x295d   :  { %7959 = vmax.xlane.f32.xlu1 %v7958_v43  ;;  %v10697_v43 = vpack.c.bf16 %v8334_v41, %v8333_v17  ;;  %v8981_v17 = vld [vmem:[#allocation4 + $0x410] sm:$0xff]  ;;  %v9519_v41 = vld [vmem:[#allocation4 + $0x408] ss:$0 sm:$0xff] }
0x29e9   :  { %v7963_v40 = vpop.xlane.xlu0 %7962 }
0x29ea   :  { %v7965_v45 = vsub.f32 %v7957_v37, %v7963_v40  ;;  %v7960_v47 = vpop.xlane.xlu1 %7959  ;;  %v8414_v40 = vld [vmem:[#allocation4 + $0x358] sm:$0xff] }
0x29eb   :  { %v7964_v52 = vsub.f32 %v7956_v50, %v7960_v47 }
0x29ec   :  { %v7968_v49 = vmul.f32 1.442695, %v7965_v45  ;;  %v8415_v45 = vld [vmem:[#allocation4 + $0x360] sm:$0xff] }
0x29ed   :  { %v7966_v53 = vmul.f32 1.442695, %v7964_v52  ;;  %v10700_v47 = vpack.c.bf16 %v8415_v45, %v8414_v40  ;;  %v9503_v52 = vld [vmem:[#allocation4 + $0x328] ss:$0 sm:$0xff] }
0x29ee   :  { %10880 = vpow2.f32 %v7968_v49 }
0x29ef   :  { %10882 = vpow2.f32 %v7966_v53 }
0x29f8   :  { %v10881_v26 = vpop.eup %10880 }
0x29f9   :  { %v10883_v54 = vpop.eup %10882  ;;  %v7973_v55 = vsel %vm7007_vm14, %v10881_v26, 0.0 }
0x29fa   :  { %7974 = vadd.xlane.f32.xlu0 %v7973_v55  ;;  %v7970_v58 = vsel %vm7007_vm14, %v10883_v54, 0.0  ;;  %v8417_v55 = vld [vmem:[#allocation4 + $0x370] sm:$0xff] }
0x29fb   :  { %7971 = vadd.xlane.f32.xlu1 %v7970_v58 }
0x2a87   :  { %v7975_v59 = vpop.xlane.xlu0 %7974 }
0x2a88   :  { %10884 = vrcp.f32 %v7975_v59  ;;  %v7972_v7 = vpop.xlane.xlu1 %7971  ;;  %v8497_v59 = vld [vmem:[#allocation4 + $0x380] sm:$0xff] }
0x2a89   :  { %10886 = vrcp.f32 %v7972_v7  ;;  %v8498_v7 = vld [vmem:[#allocation4 + $0x388] sm:$0xff] }
0x2a92   :  { %v10885_v6 = vpop.eup %10884 }
0x2a93   :  { %v10887_v60 = vpop.eup %10886  ;;  %v7979_v38 = vmul.f32 %v10885_v6, %v10881_v26  ;;  %v10706_v6 = vpack.c.bf16 %v8498_v7, %v8497_v59 }
0x2a94   :  { %v7977_v9 = vmul.f32 %v10887_v60, %v10883_v54  ;;  %v8416_v54 = vld [vmem:[#allocation4 + $0x368] sm:$0xff]  ;;  %v9505_v60 = vld [vmem:[#allocation4 + $0x350] ss:$0 sm:$0xff] }
0x2a95   :  { %10439 = vmatmul.mubr.msk.f32.vlgmr.msra.gmra.mrb[96].mxu0 %vm470_vm7, %v7979_v38  ;;  %v10703_v58 = vpack.c.bf16 %v8417_v55, %v8416_v54  ;;  %v9145_v55 = vld [vmem:[#allocation4 + $0x430] sm:$0xf] }
0x2a96   :  { %10434 = vmatmul.mubr.msk.f32.vlgmr.msra.gmra.mrb[98].mxu1 %vm470_vm7, %v7977_v9  ;;  %10460 = vmatprep.mubr.msk.f32.mxu0 %vm10945_vm0, %v10946_v1 }
0x2a97   :  { %10449 = vmatprep.mubr.msk.f32.mxu1 %vm10945_vm0, %v10946_v1  ;;  %10683 = vmatpush3.bf16.msra.mxu1 %v10682_v63  ;;  %v8499_v63 = vld [vmem:[#allocation4 + $0x390] sm:$0xff] }
0x2a98   :  { %10684 = vmatprep.subr.bf16.mxu1 %v10944_v0  ;;  %10689 = vmatpush3.bf16.msra.mxu0 %v10688_v30  ;;  %v10709_v2 = vpack.c.bf16 %v8500_v61, %v8499_v63  ;;  %v8661_v30 = vld [vmem:[#allocation4 + $0x3c8] sm:$0xff] }
0x2a99   :  { %10690 = vmatprep.subr.bf16.mxu0 %v10944_v0  ;;  %v10715_v19 = vpack.c.bf16 %v8661_v30, %v8660_v28 }
0x2a9b   :  { %10686 = vmatpush3.bf16.msra.mxu1 %v10685_v3  ;;  %v9507_v3 = vld [vmem:[#allocation4 + $0x378] ss:$0 sm:$0xff] }
0x2a9c   :  { %10693 = vmatprep.subr.bf16.mxu1 %v10944_v0  ;;  %10692 = vmatpush3.bf16.msra.mxu0 %v10691_v22 }
0x2a9d   :  { %10699 = vmatprep.subr.bf16.mxu0 %v10944_v0 }
0x2b68   :  { %v8124_v4 = vpop.f32.mrb[96].mxu0 }
0x2b69   :  { %v8129_v5 = vadd.f32 %v8124_v4, %v7811_v56  ;;  %v8051_v10 = vpop.f32.mrb[98].mxu1  ;;  %v10440_v8 = vpop.f32.mrb[97].mxu0  ;;  %v8225_v56 = vsub.s32 %v8222_v25, %v8224_v35  ;;  %v9513_v25 = vld [vmem:[#allocation4 + $0x3d0] ss:$0 sm:$0xff] }
0x2b6a   :  { %v8128_v11 = vadd.f32 %v8051_v10, %v7810_v34  ;;  %v10435_v12 = vpop.f32.mrb[99].mxu1 }
0x2b6b   :  { %v8131_v14 = vadd.f32 %v8129_v5, %v11630_v42  ;;  %v8580_v12 = vld [vmem:[#allocation4 + $0x3b0] sm:$0xff] }
0x2b6c   :  { %v8130_v16 = vadd.f32 %v8128_v11, %v11630_v42  ;;  %v8331_v42 = vld [vmem:[#allocation4 + $0x330] sm:$0xff]  ;;  %v8579_v11 = vld [vmem:[#allocation4 + $0x3a8] sm:$0xff] }
0x2b6d   :  { %v8143_v15 = vrot.slane %v8131_v14, 7  ;;  %v10694_v24 = vpack.c.bf16 %v8332_v20, %v8331_v42 }
0x2b6f   :  { %v8145_v18 = vsel %vm8144_vm15, %v8143_v15, %v8130_v16 }
0x2b70   :  { %10450 = vmatmul.mubr.msk.f32.vlgmr.msra.gmra.mrb[100].mxu1 %vm73_vm2, %v8145_v18 }
0x2b71   :  { %10471 = vmatprep.mubr.msk.f32.mxu1 %vm10945_vm0, %v10946_v1  ;;  %10695 = vmatpush3.bf16.msra.mxu1 %v10694_v24  ;;  %v8741_v24 = vld [vmem:[#allocation4 + $0x3d8] sm:$0xff] }
0x2b72   :  { %10696 = vmatprep.subr.bf16.mxu1 %v10944_v0  ;;  %v10718_v23 = vpack.c.bf16 %v8742_v21, %v8741_v24 }
0x2b75   :  { %10698 = vmatpush3.bf16.msra.mxu1 %v10697_v43 }
0x2b76   :  { %10705 = vmatprep.subr.bf16.mxu1 %v10944_v0 }
0x2c43   :  { %v8214_v46 = vpop.f32.mrb[100].mxu1 }
0x2c44   :  { %v8215_v51 = vadd.f32 %v9501_v29, %v8214_v46  ;;  %v10451_v31 = vpop.f32.mrb[101].mxu1 }
0x2c45   :  { %v9515_v31 = vld [vmem:[#allocation4 + $0x3e8] ss:$0 sm:$0xff] }
0x2c46   :  { %v8218_v33 = vmax.f32 %v8215_v51, 0.0 }
0x2c48   :  { %v8226_v34 = vrot.slane %v8218_v33, %v8225_v56 }
0x2c4a   :  { %v8227_v13 = vcombine.high %v8226_v34, %v8226_v34  ;;  %v8234_v57 = vrot.slane %v8226_v34, %v8225_v56 }
0x2c4c   :  { %v8241_v37 = vrot.slane %v8227_v13, %v8225_v56  ;;  %v8244_v48 = vadd.f32 %v8234_v57, %v8130_v16  ;;  %v9509_v16 = vld [vmem:[#allocation4 + $0x3a0] ss:$0 sm:$0xff]  ;;  %v8821_v56 = vld [vmem:[#allocation4 + $0x3f0] sm:$0xff] }
0x2c4d   :  { %v8901_v57 = vld [vmem:[#allocation4 + $0x400] sm:$0xff] }
0x2c4e   :  { %v8245_v44 = vadd.f32 %v8241_v37, %v8131_v14  ;;  %v10712_v14 = vpack.c.bf16 %v8580_v12, %v8579_v11  ;;  %v9517_v37 = vld [vmem:[#allocation4 + $0x3f8] ss:$0 sm:$0xff] }
0x2c50   :  { %v8257_v50 = vrot.slane %v8245_v44, 7 }
0x2c52   :  { %v8258_v39 = vsel %vm8144_vm15, %v8257_v50, %v8244_v48 }
0x2c53   :  { %10461 = vmatmul.mubr.msk.f32.vlgmr.msra.gmra.mrb[98].mxu0 %vm73_vm2, %v8258_v39 }
0x2c54   :  { %10482 = vmatprep.mubr.msk.f32.mxu0 %vm10945_vm0, %v10946_v1  ;;  %10701 = vmatpush3.bf16.msra.mxu0 %v10700_v47 }
0x2c55   :  { %10702 = vmatprep.subr.bf16.mxu0 %v10944_v0 }
0x2c58   :  { %10704 = vmatpush3.bf16.msra.mxu0 %v10703_v58  ;;  %v9523_v58 = vld [vmem:[#allocation4 + $0x428] ss:$0 sm:$0xff] }
0x2c59   :  { %10711 = vmatprep.subr.bf16.mxu0 %v10944_v0 }
0x2d26   :  { %v8327_v49 = vpop.f32.mrb[98].mxu0 }
0x2d27   :  { %v8328_v53 = vadd.f32 %v9503_v52, %v8327_v49  ;;  %v10462_v26 = vpop.f32.mrb[99].mxu0  ;;  %v9060_v52 = vld [vmem:[#allocation4 + $0x420] sm:$0xf]  ;;  %v9521_v49 = vld [vmem:[#allocation4 + $0x418] ss:$0 sm:$0xff] }
0x2d29   :  { %10472 = vmatmul.mubr.msk.f32.vlgmr.msra.gmra.mrb[102].mxu1 %vm73_vm2, %v8328_v53 }
0x2d2a   :  { %10493 = vmatprep.mubr.msk.f32.mxu1 %vm10945_vm0, %v10946_v1  ;;  %10707 = vmatpush3.bf16.msra.mxu1 %v10706_v6 }
0x2d2b   :  { %10708 = vmatprep.subr.bf16.mxu1 %v10944_v0 }
0x2d2e   :  { %10710 = vmatpush3.bf16.msra.mxu1 %v10709_v2 }
0x2d2f   :  { %10717 = vmatprep.subr.bf16.mxu1 %v10944_v0 }
0x2dfc   :  { %v8409_v38 = vpop.f32.mrb[102].mxu1 }
0x2dfd   :  { %v8410_v9 = vadd.f32 %v9505_v60, %v8409_v38  ;;  %v10473_v32 = vpop.f32.mrb[103].mxu1  ;;  %v9228_v38 = vld [vmem:[#allocation4 + $0x440] sm:$0xf] }
0x2dff   :  { %v8413_v62 = vmax.f32 %v8410_v9, 0.0  ;;  %v9526_v9 = vld [vmem:[#allocation4 + $0x438] ss:$0 sm:$0xff] }
0x2e01   :  { %10483 = vmatmul.mubr.msk.f32.vlgmr.msra.gmra.mrb[100].mxu0 %vm73_vm2, %v8413_v62 }
0x2e02   :  { %10500 = vmatprep.mubr.msk.f32.mxu0 %vm10945_vm0, %v10946_v1  ;;  %10713 = vmatpush3.bf16.msra.mxu0 %v10712_v14 }
0x2e03   :  { %10714 = vmatprep.subr.bf16.mxu0 %v10944_v0 }
0x2ed4   :  { %v8492_v4 = vpop.f32.mrb[100].mxu0 }
0x2ed5   :  { %v8493_v5 = vadd.f32 %v9507_v3, %v8492_v4  ;;  %v10484_v10 = vpop.f32.mrb[101].mxu0 }
0x2ed7   :  { %v8496_v8 = vmax.f32 %v8493_v5, 0.0 }
0x2ed9   :  { %10494 = vmatmul.mubr.msk.f32.vlgmr.msra.gmra.mrb[104].mxu1 %vm73_vm2, %v8496_v8  ;;  %vm9066_vm2 = vcmask 31744  }
0x2eda   :  { %10514 = vmatprep.mubr.msk.f32.mxu1 %vm10945_vm0, %v10946_v1  ;;  %10719 = vmatpush3.bf16.msra.mxu1 %v10718_v23 }
0x2edb   :  { %10522 = vmatprep.subr.mxu1 %v10946_v1 }
0x2fac   :  { %v8575_v15 = vpop.f32.mrb[104].mxu1 }
0x2fad   :  { %v8576_v18 = vadd.f32 %v9509_v16, %v8575_v15  ;;  %v10495_v27 = vpop.f32.mrb[105].mxu1 }
0x2faf   :  { %10501 = vmatmul.mubr.msk.f32.vlgmr.msra.gmra.mrb[102].mxu0 %vm154_vm1, %v8576_v18 }
0x2fb0   :  { %10507 = vmatprep.mubr.msk.f32.mxu0 %vm10945_vm0, %v10946_v1  ;;  %10716 = vmatpush3.bf16.msra.mxu0 %v10715_v19 }
0x2fb1   :  { %10517 = vmatprep.subr.mxu0 %v10946_v1 }
0x3082   :  { %v8655_v22 = vpop.f32.mrb[102].mxu0 }
0x3083   :  { %v8656_v42 = vadd.f32 %v9511_v36, %v8655_v22  ;;  %v10502_v20 = vpop.f32.mrb[103].mxu0 }
0x3085   :  { %v8659_v0 = vmax.f32 %v8656_v42, 0.0 }
0x3087   :  { %10508 = vmatmul.mubr.msk.f32.vlgmr.msra.gmra.mrb[104].mxu0 %vm154_vm1, %v8659_v0 }
0x3088   :  { %10519 = vmatprep.mubr.msk.f32.mxu0 %vm10945_vm0, %v10946_v1  ;;  %10518 = vmatpush3.msra.mxu0 %v8821_v56 }
0x3089   :  { %10527 = vmatprep.subr.mxu0 %v10946_v1 }
0x315a   :  { %v8736_v35 = vpop.f32.mrb[104].mxu0 }
0x315b   :  { %v8737_v29 = vadd.f32 %v9513_v25, %v8736_v35  ;;  %v10509_v46 = vpop.f32.mrb[105].mxu0 }
0x315d   :  { %v8740_v51 = vmax.f32 %v8737_v29, 0.0 }
0x315f   :  { %10515 = vmatmul.mubr.msk.f32.vlgmr.msra.gmra.mrb[106].mxu1 %vm154_vm1, %v8740_v51  ;;  %vm9070_vm1 = vcmask 1043456  }
0x3160   :  { %10524 = vmatprep.mubr.msk.f32.mxu1 %vm10945_vm0, %v10946_v1  ;;  %10523 = vmatpush3.msra.mxu1 %v8901_v57 }
0x3161   :  { %10532 = vmatprep.subr.mxu1 %v10946_v1 }
0x3232   :  { %v8817_v33 = vpop.f32.mrb[106].mxu1 }
0x3233   :  { %v8818_v34 = vadd.f32 %v9515_v31, %v8817_v33  ;;  %v10516_v13 = vpop.f32.mrb[107].mxu1 }
0x3235   :  { %10520 = vmatmul.mubr.msk.f32.vlgmr.msra.gmra.mrb[106].mxu0 %vm470_vm7, %v8818_v34 }
0x3236   :  { %10529 = vmatprep.mubr.msk.f32.mxu0 %vm10945_vm0, %v10946_v1  ;;  %10528 = vmatpush3.msra.mxu0 %v8981_v17 }
0x3237   :  { %10537 = vmatprep.subr.mxu0 %v10946_v1 }
0x3308   :  { %v8896_v44 = vpop.f32.mrb[106].mxu0 }
0x3309   :  { %v8897_v48 = vadd.f32 %v9517_v37, %v8896_v44  ;;  %v10521_v50 = vpop.f32.mrb[107].mxu0 }
0x330b   :  { %v8900_v39 = vmax.f32 %v8897_v48, 0.0 }
0x330d   :  { %10525 = vmatmul.mubr.msk.f32.vlgmr.msra.gmra.mrb[108].mxu1 %vm470_vm7, %v8900_v39 }
0x330e   :  { %10534 = vmatprep.mubr.msk.f32.mxu1 %vm10945_vm0, %v10946_v1  ;;  %10533 = vmatpush3.msk.msra.mxu1 %vm9070_vm1, %v9060_v52 }
0x330f   :  { %10542 = vmatprep.subr.mxu1 %v10946_v1 }
0x33e0   :  { %v8976_v43 = vpop.f32.mrb[108].mxu1 }
0x33e1   :  { %v8977_v40 = vadd.f32 %v9519_v41, %v8976_v43  ;;  %v10526_v45 = vpop.f32.mrb[109].mxu1 }
0x33e3   :  { %v8980_v47 = vmax.f32 %v8977_v40, 0.0 }
0x33e5   :  { %10530 = vmatmul.mubr.msk.f32.vlgmr.msra.gmra.mrb[108].mxu0 %vm470_vm7, %v8980_v47 }
0x33e6   :  { %10539 = vmatprep.mubr.msk.f32.mxu0 %vm10945_vm0, %v10946_v1  ;;  %10538 = vmatpush3.msk.msra.mxu0 %vm9070_vm1, %v9145_v55 }
0x34b8   :  { %v9056_v53 = vpop.f32.mrb[108].mxu0 }
0x34b9   :  { %v9057_v26 = vadd.f32 %v9521_v49, %v9056_v53  ;;  %v10531_v54 = vpop.f32.mrb[109].mxu0 }
0x34bb   :  { %10535 = vmatmul.mubr.msk.f32.vlgmr.msra.gmra.mrb[110].mxu1 %vm9066_vm2, %v9057_v26 }
0x34bc   :  { %10544 = vmatprep.mubr.msk.f32.mxu1 %vm10945_vm0, %v10946_v1  ;;  %10543 = vmatpush3.msk.msra.mxu1 %vm9070_vm1, %v9228_v38  ;;  %v9529_v1 = vld [vmem:[#allocation4 + $0x448] ss:$0 sm:$0xff]  ;;  %vm9316_vm0 = vcmask 1024  }
0x358e   :  { %v9140_v59 = vpop.f32.mrb[110].mxu1 }
0x358f   :  { %v9141_v7 = vadd.f32 %v9523_v58, %v9140_v59  ;;  %v10536_v6 = vpop.f32.mrb[111].mxu1 }
0x3591   :  { %v9144_v60 = vmax.f32 %v9141_v7, 0.0 }
0x3593   :  { %10540 = vmatmul.mubr.msk.f32.vlgmr.msra.gmra.mrb[110].mxu0 %vm9066_vm2, %v9144_v60 }
0x3666   :  { %v9223_v32 = vpop.f32.mrb[110].mxu0 }
0x3667   :  { %v9224_v62 = vadd.f32 %v9526_v9, %v9223_v32  ;;  %v10541_v63 = vpop.f32.mrb[111].mxu0 }
0x3669   :  { %v9227_v61 = vmax.f32 %v9224_v62, 0.0 }
0x366b   :  { %10545 = vmatmul.mubr.msk.f32.vlgmr.msra.gmra.mrb[112].mxu1 %vm9066_vm2, %v9227_v61 }
0x373e   :  { %v9306_v2 = vpop.f32.mrb[112].mxu1 }
0x373f   :  { %v9307_v3 = vadd.f32 %v9529_v1, %v9306_v2  ;;  %v10546_v4 = vpop.f32.mrb[113].mxu1 }
0x3741   :  { %v9532_v5 = vmul.f32 -1.442695, %v9307_v3 }
0x3743   :  { %10888 = vpow2.f32 %v9532_v5 }
0x374d   :  { %v10889_v10 = vpop.eup %10888 }
0x374e   :  { %v9313_v8 = vadd.f32 1.0, %v10889_v10 }
0x3750   :  { %10890 = vrcp.f32 %v9313_v8 }
0x375a   :  { %v10891_v11 = vpop.eup %10890 }
0x375b   :  { %9317 = vst.msk [vmem:[%s11828_s2] sm:$0x3] %vm9316_vm0, %v10891_v11 }
0x375c   :  { %9322 = vsyncpa [#allocation3], 1 }
0x375d   :  { %9323 = vsyncpa [#allocation5], 1 }

</bundles_post_ra>
